<compile_context>
chip_gen: v5e
topology: v5e:2x2
jax: 0.10.0
libtpu: 0.0.40
codegen_flags: <defaults>
</compile_context>

<pallas_src>
import functools

import jax
import jax.numpy as jnp
from jax.experimental import pallas as pl
from jax.experimental.pallas import tpu as pltpu


# ------------------------------- helpers ------------------------------------

def _round_up(x, m):
    return (x + m - 1) // m * m


def _pick_tile_m(m_valid):
    m128 = _round_up(m_valid, 128)
    return m128 if m128 <= 512 else 512


_VMEM_LIMIT = 32 * 1024 * 1024  # explicit scoped-VMEM budget (fits v5e/v6e/v7x)


# ----------------------------- Pallas kernels -------------------------------

def _gemm_bias_leaky_kernel(w_ref, x_ref, b_ref, o_ref):
    """o(OC, TM) = leaky_relu(W(OC,K) @ X(K,TM) + b(OC,1)).  W/X bf16, acc f32."""
    y = jnp.dot(w_ref[...], x_ref[...], preferred_element_type=jnp.float32)
    y = y + b_ref[...]
    o_ref[...] = jnp.where(y > 0, y, 0.01 * y)  # PyTorch default slope 0.01


def _gemm_bias_stats_kernel(w_ref, x_ref, b_ref, y_ref, mean_ref, rstd_ref,
                            sum_ref, sumsq_ref, *, m_valid):
    """Pass 1 of BN conv: y = W @ X + b  (stored), plus cross-tile accumulation
    of per-channel sum / sum-of-squares over the *valid* M columns only
    (padded columns are masked out).  Stats finalized on the last tile."""
    i = pl.program_id(0)

    @pl.when(i == 0)
    def _():
        sum_ref[...] = jnp.zeros_like(sum_ref)
        sumsq_ref[...] = jnp.zeros_like(sumsq_ref)

    y = jnp.dot(w_ref[...], x_ref[...], preferred_element_type=jnp.float32)
    y = y + b_ref[...]
    y_ref[...] = y

    tile_m = y.shape[1]
    col = jax.lax.broadcasted_iota(jnp.int32, y.shape, 1) + i * tile_m
    valid = (col < m_valid).astype(jnp.float32)
    ym = y * valid
    sum_ref[...] += jnp.sum(ym, axis=1, keepdims=True)
    sumsq_ref[...] += jnp.sum(ym * ym, axis=1, keepdims=True)

    @pl.when(i == pl.num_programs(0) - 1)
    def _():
        inv_n = 1.0 / m_valid
        mean = sum_ref[...] * inv_n
        var = sumsq_ref[...] * inv_n - mean * mean   # biased var (train mode)
        mean_ref[...] = mean
        rstd_ref[...] = jax.lax.rsqrt(var + 1e-5)


def _bn_apply_leaky_kernel(y_ref, mean_ref, rstd_ref, g_ref, beta_ref, o_ref):
    """Pass 2 of BN conv: normalize + affine + leaky_relu, tiled over M."""
    y = (y_ref[...] - mean_ref[...]) * rstd_ref[...]
    y = y * g_ref[...] + beta_ref[...]
    o_ref[...] = jnp.where(y > 0, y, 0.01 * y)


def _label_fc_kernel(lab_ref, w_ref, b_ref, o_ref):
    """Fused fc_labels_{1,2,3}: out(B, Npad) = tanh(labels @ W_all^T + b_all).
    K = num_classes is tiny, so skip the MXU: unrolled rank-1 VPU FMAs."""
    lab = lab_ref[...]
    w = w_ref[...]
    acc = jnp.broadcast_to(b_ref[...], o_ref.shape)
    for k in range(lab.shape[1]):                       # static unroll (K=nc)
        acc = acc + lab[:, k:k + 1] * w[k:k + 1, :]
    o_ref[...] = jnp.tanh(acc)


def _head_kernel(x_ref, w1_ref, b1_ref, lab_ref, w2x_ref, w2l_ref, b2_ref, o_ref):
    """Fused head: h = x @ W1 + b1 ; out = [h, labels] @ W2 + b2.
    W2 is pre-split (feature / label rows) and lane-padded to 128 columns."""
    h = jnp.dot(x_ref[...], w1_ref[...], preferred_element_type=jnp.float32)
    h = h + b1_ref[...]
    y = jnp.dot(h, w2x_ref[...], preferred_element_type=jnp.float32)
    y = y + jnp.dot(lab_ref[...], w2l_ref[...], preferred_element_type=jnp.float32)
    o_ref[...] = y + b2_ref[...]


# ----------------------------- kernel wrappers ------------------------------

def _pallas_gemm_leaky(w_mat, patches, b, tile_m):
    OC, K = w_mat.shape
    M = patches.shape[1]
    return pl.pallas_call(
        _gemm_bias_leaky_kernel,
        out_shape=jax.ShapeDtypeStruct((OC, M), jnp.float32),
        grid=(M // tile_m,),
        in_specs=[
            pl.BlockSpec((OC, K), lambda i: (0, 0)),
            pl.BlockSpec((K, tile_m), lambda i: (0, i)),
            pl.BlockSpec((OC, 1), lambda i: (0, 0)),
        ],
        out_specs=pl.BlockSpec((OC, tile_m), lambda i: (0, i)),
        compiler_params=pltpu.CompilerParams(
            dimension_semantics=("parallel",),
            vmem_limit_bytes=_VMEM_LIMIT),
    )(w_mat, patches, b)


def _pallas_gemm_bn_leaky(w_mat, patches, b, gamma, beta, tile_m, m_valid):
    OC, K = w_mat.shape
    M = patches.shape[1]
    grid_m = M // tile_m

    kernel = functools.partial(_gemm_bias_stats_kernel, m_valid=m_valid)
    y, mean, rstd = pl.pallas_call(
        kernel,
        out_shape=(jax.ShapeDtypeStruct((OC, M), jnp.float32),
                   jax.ShapeDtypeStruct((OC, 1), jnp.float32),
                   jax.ShapeDtypeStruct((OC, 1), jnp.float32)),
        grid=(grid_m,),
        in_specs=[
            pl.BlockSpec((OC, K), lambda i: (0, 0)),
            pl.BlockSpec((K, tile_m), lambda i: (0, i)),
            pl.BlockSpec((OC, 1), lambda i: (0, 0)),
        ],
        out_specs=(pl.BlockSpec((OC, tile_m), lambda i: (0, i)),
                   pl.BlockSpec((OC, 1), lambda i: (0, 0)),
                   pl.BlockSpec((OC, 1), lambda i: (0, 0))),
        scratch_shapes=[pltpu.VMEM((OC, 1), jnp.float32),
                        pltpu.VMEM((OC, 1), jnp.float32)],
        compiler_params=pltpu.CompilerParams(
            dimension_semantics=("arbitrary",),   # stats accumulate across M
            vmem_limit_bytes=_VMEM_LIMIT),
    )(w_mat, patches, b)

    return pl.pallas_call(
        _bn_apply_leaky_kernel,
        out_shape=jax.ShapeDtypeStruct((OC, M), jnp.float32),
        grid=(grid_m,),
        in_specs=[
            pl.BlockSpec((OC, tile_m), lambda i: (0, i)),
            pl.BlockSpec((OC, 1), lambda i: (0, 0)),
            pl.BlockSpec((OC, 1), lambda i: (0, 0)),
            pl.BlockSpec((OC, 1), lambda i: (0, 0)),
            pl.BlockSpec((OC, 1), lambda i: (0, 0)),
        ],
        out_specs=pl.BlockSpec((OC, tile_m), lambda i: (0, i)),
        compiler_params=pltpu.CompilerParams(
            dimension_semantics=("parallel",),
            vmem_limit_bytes=_VMEM_LIMIT),
    )(y, mean, rstd, gamma, beta)


def _pallas_label_fc(labels, w_all, b_all):
    B = labels.shape[0]
    n_pad = w_all.shape[1]
    return pl.pallas_call(
        _label_fc_kernel,
        out_shape=jax.ShapeDtypeStruct((B, n_pad), jnp.float32),
    )(labels, w_all, b_all)


def _pallas_head(feat, labels, fc1_w, fc1_b, fc2_w, fc2_b):
    B = feat.shape[0]
    h1 = fc1_w.shape[0]                       # 128
    w1 = fc1_w.T                              # (F1, h1)
    b1 = fc1_b.reshape(1, h1)
    w2 = fc2_w.T                              # (h1 + nc, 1)
    n_pad = 128                               # lane-pad the N=1 output
    w2x = jnp.pad(w2[:h1, :], ((0, 0), (0, n_pad - 1)))
    w2l = jnp.pad(w2[h1:, :], ((0, 0), (0, n_pad - 1)))
    b2 = jnp.pad(fc2_b.reshape(1, 1), ((0, 0), (0, n_pad - 1)))
    y = pl.pallas_call(
        _head_kernel,
        out_shape=jax.ShapeDtypeStruct((B, n_pad), jnp.float32),
    )(feat, w1, b1, labels, w2x, w2l, b2)
    return y[:, :1]


# ------------------- conv3d = channel-major im2col + GEMM -------------------

def _im2col_cm(x_cm, ksize, stride, padding):
    """x_cm: (C, B, D, H, W) -> (C*kd*kh*kw, B*Do*Ho*Wo).
    K ordering (C, kd, kh, kw) matches PyTorch Conv3d weight flattening.
    No transposes: channel-major in, channel-major (GEMM rhs) out."""
    # TODO(synk): patch extraction is plain-JAX data movement (strided slices);
    # could be replaced by lax.conv_general_dilated_patches / in-kernel gather.
    C, B, D, H, W = x_cm.shape
    kd, kh, kw = ksize
    sd, sh, sw = stride
    pd, ph, pw = padding
    xp = jnp.pad(x_cm, ((0, 0), (0, 0), (pd, pd), (ph, ph), (pw, pw)))
    Do = (D + 2 * pd - kd) // sd + 1
    Ho = (H + 2 * ph - kh) // sh + 1
    Wo = (W + 2 * pw - kw) // sw + 1
    cols = []
    for dk in range(kd):
        for hk in range(kh):
            for wk in range(kw):
                cols.append(xp[:, :,
                               dk:dk + (Do - 1) * sd + 1:sd,
                               hk:hk + (Ho - 1) * sh + 1:sh,
                               wk:wk + (Wo - 1) * sw + 1:sw])
    p = jnp.stack(cols, axis=1)                       # (C, K3, B, Do, Ho, Wo)
    p = p.reshape(C * kd * kh * kw, B * Do * Ho * Wo)
    return p, (Do, Ho, Wo)


def _conv3d_cm(x_cm, w, b, stride, padding, bn=None):
    """Conv3d (+ optional train-mode BatchNorm3d) + leaky_relu.
    Input/output activations are channel-major (C, B, D, H, W)."""
    C, B = x_cm.shape[0], x_cm.shape[1]
    OC, IC, kd, kh, kw = w.shape
    patches, (Do, Ho, Wo) = _im2col_cm(
        x_cm.astype(jnp.bfloat16), (kd, kh, kw), stride, padding)
    m_valid = B * Do * Ho * Wo
    tile_m = _pick_tile_m(m_valid)
    m_pad = _round_up(m_valid, tile_m)
    if m_pad != m_valid:
        patches = jnp.pad(patches, ((0, 0), (0, m_pad - m_valid)))

    w_mat = w.reshape(OC, IC * kd * kh * kw).astype(jnp.bfloat16)   # (OC, K)
    b2 = b.reshape(OC, 1).astype(jnp.float32)

    if bn is None:
        y = _pallas_gemm_leaky(w_mat, patches, b2, tile_m)
    else:
        gamma, beta = bn
        y = _pallas_gemm_bn_leaky(w_mat, patches, b2,
                                  gamma.reshape(OC, 1).astype(jnp.float32),
                                  beta.reshape(OC, 1).astype(jnp.float32),
                                  tile_m, m_valid)
    return y[:, :m_valid].reshape(OC, B, Do, Ho, Wo)


# ------------------------------ Critic forward -------------------------------

def critic_forward(params, images, labels, *, dimensionality, num_classes,
                   conditioning_dimensionality):
    dim = dimensionality
    cond = conditioning_dimensionality
    B = labels.shape[0]

    # --- fused label-conditioning FCs (one kernel for fc_labels_1/2/3) ---
    spatials = [(13, 15, 11), (7, 8, 6), (3, 4, 3)]
    sizes = [cond * d * h * w for (d, h, w) in spatials]
    w_all = jnp.concatenate([params["fc_l1_w"].T, params["fc_l2_w"].T,
                             params["fc_l3_w"].T], axis=1)          # (nc, 5034)
    b_all = jnp.concatenate([params["fc_l1_b"], params["fc_l2_b"],
                             params["fc_l3_b"]])
    n_total = w_all.shape[1]
    n_pad = _round_up(n_total, 128)
    w_all = jnp.pad(w_all, ((0, 0), (0, n_pad - n_total)))
    b_all = jnp.pad(b_all, (0, n_pad - n_total)).reshape(1, n_pad)
    lab_all = _pallas_label_fc(labels, w_all, b_all)                # (B, n_pad)

    lab_cm = []
    off = 0
    for (d, h, w), sz in zip(spatials, sizes):
        l = lab_all[:, off:off + sz].reshape(B, cond, d, h, w)
        lab_cm.append(l.transpose(1, 0, 2, 3, 4))                   # (cond,B,d,h,w)
        off += sz

    # --- conv stack, channel-major activations throughout ---
    out = images.reshape(1, B, 13, 15, 11)                          # (1,B,13,15,11)
    out = jnp.concatenate([out, lab_cm[0]], axis=0)                 # (1+cond, ...)
    out = _conv3d_cm(out, params["conv1_w"], params["conv1_b"],
                     (2, 2, 2), (2, 2, 2))                          # (dim,B,7,8,6)

    out = jnp.concatenate([out, lab_cm[1]], axis=0)
    out = _conv3d_cm(out, params["conv2_w"], params["conv2_b"],
                     (2, 2, 2), (1, 1, 1),
                     bn=(params["bn2_g"], params["bn2_b"]))         # (2dim,B,3,4,3)

    out = jnp.concatenate([out, lab_cm[2]], axis=0)
    out = _conv3d_cm(out, params["conv3_w"], params["conv3_b"],
                     (2, 2, 2), (2, 1, 2),
                     bn=(params["bn3_g"], params["bn3_b"]))         # (4dim,B,2,2,2)

    # --- fused head: fc_1 -> concat(labels) -> fc_2 (one kernel) ---
    feat = out.transpose(1, 0, 2, 3, 4).reshape(B, 2 * 2 * 2 * 4 * dim)
    return _pallas_head(feat, labels, params["fc1_w"], params["fc1_b"],
                        params["fc2_w"], params["fc2_b"])           # (B, 1)


# ------------------------------ parameter init -------------------------------

def init_params(key, dimensionality, num_classes, conditioning_dimensionality):
    dim, cond, nc = dimensionality, conditioning_dimensionality, num_classes
    ks = jax.random.split(key, 16)
    scale = 0.05

    def lin(k, out_f, in_f):
        return scale * jax.random.normal(k, (out_f, in_f), jnp.float32)

    def conv(k, oc, ic):
        return scale * jax.random.normal(k, (oc, ic, 4, 4, 4), jnp.float32)

    return {
        "fc_l1_w": lin(ks[0], 13 * 15 * 11 * cond, nc),
        "fc_l1_b": scale * jax.random.normal(ks[1], (13 * 15 * 11 * cond,), jnp.float32),
        "conv1_w": conv(ks[2], dim, 1 + cond),
        "conv1_b": scale * jax.random.normal(ks[3], (dim,), jnp.float32),
        "fc_l2_w": lin(ks[4], 7 * 8 * 6 * cond, nc),
        "fc_l2_b": scale * jax.random.normal(ks[5], (7 * 8 * 6 * cond,), jnp.float32),
        "conv2_w": conv(ks[6], 2 * dim, dim + cond),
        "conv2_b": scale * jax.random.normal(ks[7], (2 * dim,), jnp.float32),
        "bn2_g": jnp.ones((2 * dim,), jnp.float32),
        "bn2_b": jnp.zeros((2 * dim,), jnp.float32),
        "fc_l3_w": lin(ks[8], 3 * 4 * 3 * cond, nc),
        "fc_l3_b": scale * jax.random.normal(ks[9], (3 * 4 * 3 * cond,), jnp.float32),
        "conv3_w": conv(ks[10], 4 * dim, 2 * dim + cond),
        "conv3_b": scale * jax.random.normal(ks[11], (4 * dim,), jnp.float32),
        "bn3_g": jnp.ones((4 * dim,), jnp.float32),
        "bn3_b": jnp.zeros((4 * dim,), jnp.float32),
        "fc1_w": lin(ks[12], 128, 2 * 2 * 2 * 4 * dim),
        "fc1_b": scale * jax.random.normal(ks[13], (128,), jnp.float32),
        "fc2_w": lin(ks[14], 1, 128 + nc),
        "fc2_b": scale * jax.random.normal(ks[15], (1,), jnp.float32),
    }


# ----------------------------------- main ------------------------------------

if __name__ == "__main__":
    # Spatial volume is fixed at 13x15x11 by the module itself.
    B = 2
    dimensionality = 8
    num_classes = 4
    conditioning_dimensionality = 2

    key = jax.random.PRNGKey(0)
    k_param, k_img, k_lab = jax.random.split(key, 3)

    params = init_params(k_param, dimensionality, num_classes,
                         conditioning_dimensionality)
    images = jax.random.normal(k_img, (B, 13 * 15 * 11), jnp.float32)
    labels = jax.random.normal(k_lab, (B, num_classes), jnp.float32)

    fwd = jax.jit(functools.partial(
        critic_forward,
        dimensionality=dimensionality,
        num_classes=num_classes,
        conditioning_dimensionality=conditioning_dimensionality,
    ))
    out = fwd(params, images, labels)
    jax.block_until_ready(out)

    assert out.shape == (B, 1), out.shape
    assert out.dtype == jnp.float32
    # TODO(synk): training-mode BatchNorm batch statistics are used (module's
    # default .train() mode); running-stat eval mode is not modeled.
    print("KERNEL_OK")
</pallas_src>

<mosaic_0001>
module attributes {stable_mosaic.version = 11 : i64} {
  func.func @_label_fc_kernel(%arg0: memref<2x4xf32, #tpu.memory_space<vmem>>, %arg1: memref<4x5120xf32, #tpu.memory_space<vmem>>, %arg2: memref<1x5120xf32, #tpu.memory_space<vmem>>, %arg3: memref<2x5120xf32, #tpu.memory_space<vmem>>) attributes {dimension_semantics = [], scalar_prefetch = 0 : i64, scratch_operands = 0 : i64, tpu.core_type = #tpu.core_type<tc>} {
    %c0 = arith.constant 0 : index
    %c0_0 = arith.constant 0 : index
    %0 = vector.load %arg0[%c0, %c0_0] : memref<2x4xf32, #tpu.memory_space<vmem>>, vector<2x4xf32>
    %c0_1 = arith.constant 0 : index
    %c0_2 = arith.constant 0 : index
    %1 = vector.load %arg1[%c0_1, %c0_2] : memref<4x5120xf32, #tpu.memory_space<vmem>>, vector<4x5120xf32>
    %c0_3 = arith.constant 0 : index
    %c0_4 = arith.constant 0 : index
    %2 = vector.load %arg2[%c0_3, %c0_4] : memref<1x5120xf32, #tpu.memory_space<vmem>>, vector<1x5120xf32>
    %3 = vector.shape_cast %2 : vector<1x5120xf32> to vector<1x5120xf32>
    %4 = vector.broadcast %3 : vector<1x5120xf32> to vector<2x5120xf32>
    %5 = vector.extract_strided_slice %0 {offsets = [0, 0], sizes = [2, 1], strides = [1, 1]} : vector<2x4xf32> to vector<2x1xf32>
    %6 = vector.extract_strided_slice %1 {offsets = [0, 0], sizes = [1, 5120], strides = [1, 1]} : vector<4x5120xf32> to vector<1x5120xf32>
    %7 = vector.broadcast %5 : vector<2x1xf32> to vector<2x5120xf32>
    %8 = vector.broadcast %6 : vector<1x5120xf32> to vector<2x5120xf32>
    %9 = arith.mulf %7, %8 : vector<2x5120xf32>
    %10 = arith.addf %4, %9 : vector<2x5120xf32>
    %11 = vector.extract_strided_slice %0 {offsets = [0, 1], sizes = [2, 1], strides = [1, 1]} : vector<2x4xf32> to vector<2x1xf32>
    %12 = vector.extract_strided_slice %1 {offsets = [1, 0], sizes = [1, 5120], strides = [1, 1]} : vector<4x5120xf32> to vector<1x5120xf32>
    %13 = vector.broadcast %11 : vector<2x1xf32> to vector<2x5120xf32>
    %14 = vector.broadcast %12 : vector<1x5120xf32> to vector<2x5120xf32>
    %15 = arith.mulf %13, %14 : vector<2x5120xf32>
    %16 = arith.addf %10, %15 : vector<2x5120xf32>
    %17 = vector.extract_strided_slice %0 {offsets = [0, 2], sizes = [2, 1], strides = [1, 1]} : vector<2x4xf32> to vector<2x1xf32>
    %18 = vector.extract_strided_slice %1 {offsets = [2, 0], sizes = [1, 5120], strides = [1, 1]} : vector<4x5120xf32> to vector<1x5120xf32>
    %19 = vector.broadcast %17 : vector<2x1xf32> to vector<2x5120xf32>
    %20 = vector.broadcast %18 : vector<1x5120xf32> to vector<2x5120xf32>
    %21 = arith.mulf %19, %20 : vector<2x5120xf32>
    %22 = arith.addf %16, %21 : vector<2x5120xf32>
    %23 = vector.extract_strided_slice %0 {offsets = [0, 3], sizes = [2, 1], strides = [1, 1]} : vector<2x4xf32> to vector<2x1xf32>
    %24 = vector.extract_strided_slice %1 {offsets = [3, 0], sizes = [1, 5120], strides = [1, 1]} : vector<4x5120xf32> to vector<1x5120xf32>
    %25 = vector.broadcast %23 : vector<2x1xf32> to vector<2x5120xf32>
    %26 = vector.broadcast %24 : vector<1x5120xf32> to vector<2x5120xf32>
    %27 = arith.mulf %25, %26 : vector<2x5120xf32>
    %28 = arith.addf %22, %27 : vector<2x5120xf32>
    %29 = math.tanh %28 : vector<2x5120xf32>
    %c0_5 = arith.constant 0 : index
    %c0_6 = arith.constant 0 : index
    %30 = vector.load %arg3[%c0_5, %c0_6] : memref<2x5120xf32, #tpu.memory_space<vmem>>, vector<2x5120xf32>
    tpu.vector_store %arg3[%c0_5, %c0_6], %29 {strides = array<i32>} : memref<2x5120xf32, #tpu.memory_space<vmem>>, vector<2x5120xf32>,
    return
  }
}

module attributes {stable_mosaic.version = 11 : i64} {
  func.func @_gemm_bias_leaky_kernel(%arg0: i32, %arg1: memref<8x192xbf16, #tpu.memory_space<vmem>>, %arg2: memref<192x512xbf16, #tpu.memory_space<vmem>>, %arg3: memref<8x1xf32, #tpu.memory_space<vmem>>, %arg4: memref<8x512xf32, #tpu.memory_space<vmem>>) attributes {dimension_semantics = [#tpu.dimension_semantics<parallel>], iteration_bounds = array<i64: 2>, scalar_prefetch = 0 : i64, scratch_operands = 0 : i64, tpu.core_type = #tpu.core_type<tc>, window_params = [{pipeline_mode = #tpu.pipeline_mode<synchronous>, transform_indices = @transform_0, window_bounds = array<i64: 8, 192>}, {transform_indices = @transform_1, window_bounds = array<i64: 192, 512>}, {pipeline_mode = #tpu.pipeline_mode<synchronous>, transform_indices = @transform_2, window_bounds = array<i64: 8, 1>}, {transform_indices = @transform_3, window_bounds = array<i64: 8, 512>}]} {
    %c0 = arith.constant 0 : index
    %c0_0 = arith.constant 0 : index
    %0 = vector.load %arg1[%c0, %c0_0] : memref<8x192xbf16, #tpu.memory_space<vmem>>, vector<8x192xbf16>
    %c0_1 = arith.constant 0 : index
    %c0_2 = arith.constant 0 : index
    %1 = vector.load %arg2[%c0_1, %c0_2] : memref<192x512xbf16, #tpu.memory_space<vmem>>, vector<192x512xbf16>
    %cst = arith.constant dense<0.000000e+00> : vector<8x512xf32>
    %2 = tpu.matmul %0, %1, %cst {dimension_numbers = #tpu.dot_dimension_numbers<[1], [0], [0], [1], [0, 0, 1, 1], [], []>} : vector<8x192xbf16>, vector<192x512xbf16>, vector<8x512xf32> -> vector<8x512xf32>
    %c0_3 = arith.constant 0 : index
    %c0_4 = arith.constant 0 : index
    %3 = vector.load %arg3[%c0_3, %c0_4] : memref<8x1xf32, #tpu.memory_space<vmem>>, vector<8x1xf32>
    %4 = vector.broadcast %3 : vector<8x1xf32> to vector<8x512xf32>
    %5 = arith.addf %2, %4 : vector<8x512xf32>
    %cst_5 = arith.constant 0.000000e+00 : f32
    %6 = vector.broadcast %cst_5 : f32 to vector<8x512xf32>
    %7 = arith.cmpf ogt, %5, %6 : vector<8x512xf32>
    %cst_6 = arith.constant 0.00999999977 : f32
    %8 = vector.broadcast %cst_6 : f32 to vector<8x512xf32>
    %9 = arith.mulf %8, %5 : vector<8x512xf32>
    %10 = arith.select %7, %5, %9 : vector<8x512xi1>, vector<8x512xf32>
    %c0_7 = arith.constant 0 : index
    %c0_8 = arith.constant 0 : index
    %11 = vector.load %arg4[%c0_7, %c0_8] : memref<8x512xf32, #tpu.memory_space<vmem>>, vector<8x512xf32>
    tpu.vector_store %arg4[%c0_7, %c0_8], %10 {strides = array<i32>} : memref<8x512xf32, #tpu.memory_space<vmem>>, vector<8x512xf32>,
    return
  }
  func.func @transform_0(%arg0: i32) -> (i32, i32) {
    %c0_i32 = arith.constant 0 : i32
    %c0_i32_0 = arith.constant 0 : i32
    %c0_i32_1 = arith.constant 0 : i32
    return %c0_i32, %c0_i32_0 : i32, i32
  }
  func.func @transform_1(%arg0: i32) -> (i32, i32) {
    %c0_i32 = arith.constant 0 : i32
    %c0_i32_0 = arith.constant 0 : i32
    return %c0_i32, %arg0 : i32, i32
  }
  func.func @transform_2(%arg0: i32) -> (i32, i32) {
    %c0_i32 = arith.constant 0 : i32
    %c0_i32_0 = arith.constant 0 : i32
    %c0_i32_1 = arith.constant 0 : i32
    return %c0_i32, %c0_i32_0 : i32, i32
  }
  func.func @transform_3(%arg0: i32) -> (i32, i32) {
    %c0_i32 = arith.constant 0 : i32
    %c0_i32_0 = arith.constant 0 : i32
    return %c0_i32, %arg0 : i32, i32
  }
}

module attributes {stable_mosaic.version = 11 : i64} {
  func.func @_gemm_bias_stats_kernel(%arg0: i32, %arg1: memref<16x640xbf16, #tpu.memory_space<vmem>>, %arg2: memref<640x128xbf16, #tpu.memory_space<vmem>>, %arg3: memref<16x1xf32, #tpu.memory_space<vmem>>, %arg4: memref<16x128xf32, #tpu.memory_space<vmem>>, %arg5: memref<16x1xf32, #tpu.memory_space<vmem>>, %arg6: memref<16x1xf32, #tpu.memory_space<vmem>>, %arg7: memref<16x1xf32, #tpu.memory_space<vmem>>, %arg8: memref<16x1xf32, #tpu.memory_space<vmem>>) attributes {dimension_semantics = [#tpu.dimension_semantics<arbitrary>], iteration_bounds = array<i64: 1>, scalar_prefetch = 0 : i64, scratch_operands = 2 : i64, tpu.core_type = #tpu.core_type<tc>, window_params = [{pipeline_mode = #tpu.pipeline_mode<synchronous>, transform_indices = @transform_0, window_bounds = array<i64: 16, 640>}, {transform_indices = @transform_1, window_bounds = array<i64: 640, 128>}, {pipeline_mode = #tpu.pipeline_mode<synchronous>, transform_indices = @transform_2, window_bounds = array<i64: 16, 1>}, {transform_indices = @transform_3, window_bounds = array<i64: 16, 128>}, {pipeline_mode = #tpu.pipeline_mode<synchronous>, transform_indices = @transform_4, window_bounds = array<i64: 16, 1>}, {pipeline_mode = #tpu.pipeline_mode<synchronous>, transform_indices = @transform_5, window_bounds = array<i64: 16, 1>}]} {
    %c0_i32 = arith.constant 0 : i32
    %0 = arith.cmpi eq, %arg0, %c0_i32 : i32
    %1 = arith.extui %0 : i1 to i32
    %c0_i32_0 = arith.constant 0 : i32
    %2 = arith.cmpi ne, %1, %c0_i32_0 : i32
    scf.if %2 {
      %cst_20 = arith.constant 0.000000e+00 : f32
      %33 = vector.broadcast %cst_20 : f32 to vector<16x1xf32>
      %c0_21 = arith.constant 0 : index
      %c0_22 = arith.constant 0 : index
      %34 = vector.load %arg7[%c0_21, %c0_22] : memref<16x1xf32, #tpu.memory_space<vmem>>, vector<16x1xf32>
      tpu.vector_store %arg7[%c0_21, %c0_22], %33 {strides = array<i32>} : memref<16x1xf32, #tpu.memory_space<vmem>>, vector<16x1xf32>,
      %cst_23 = arith.constant 0.000000e+00 : f32
      %35 = vector.broadcast %cst_23 : f32 to vector<16x1xf32>
      %c0_24 = arith.constant 0 : index
      %c0_25 = arith.constant 0 : index
      %36 = vector.load %arg8[%c0_24, %c0_25] : memref<16x1xf32, #tpu.memory_space<vmem>>, vector<16x1xf32>
      tpu.vector_store %arg8[%c0_24, %c0_25], %35 {strides = array<i32>} : memref<16x1xf32, #tpu.memory_space<vmem>>, vector<16x1xf32>,
    } else {
    }
    %c0 = arith.constant 0 : index
    %c0_1 = arith.constant 0 : index
    %3 = vector.load %arg1[%c0, %c0_1] : memref<16x640xbf16, #tpu.memory_space<vmem>>, vector<16x640xbf16>
    %c0_2 = arith.constant 0 : index
    %c0_3 = arith.constant 0 : index
    %4 = vector.load %arg2[%c0_2, %c0_3] : memref<640x128xbf16, #tpu.memory_space<vmem>>, vector<640x128xbf16>
    %cst = arith.constant dense<0.000000e+00> : vector<16x128xf32>
    %5 = tpu.matmul %3, %4, %cst {dimension_numbers = #tpu.dot_dimension_numbers<[1], [0], [0], [1], [0, 0, 1, 1], [], []>} : vector<16x640xbf16>, vector<640x128xbf16>, vector<16x128xf32> -> vector<16x128xf32>
    %c0_4 = arith.constant 0 : index
    %c0_5 = arith.constant 0 : index
    %6 = vector.load %arg3[%c0_4, %c0_5] : memref<16x1xf32, #tpu.memory_space<vmem>>, vector<16x1xf32>
    %7 = vector.broadcast %6 : vector<16x1xf32> to vector<16x128xf32>
    %8 = arith.addf %5, %7 : vector<16x128xf32>
    %c0_6 = arith.constant 0 : index
    %c0_7 = arith.constant 0 : index
    %9 = vector.load %arg4[%c0_6, %c0_7] : memref<16x128xf32, #tpu.memory_space<vmem>>, vector<16x128xf32>
    tpu.vector_store %arg4[%c0_6, %c0_7], %8 {strides = array<i32>} : memref<16x128xf32, #tpu.memory_space<vmem>>, vector<16x128xf32>,
    %10 = tpu.iota {dimensions = array<i32: 1>} : vector<16x128xi32>
    %c128_i32 = arith.constant 128 : i32
    %11 = arith.muli %arg0, %c128_i32 : i32
    %12 = vector.broadcast %11 : i32 to vector<16x128xi32>
    %13 = arith.addi %10, %12 : vector<16x128xi32>
    %c72_i32 = arith.constant 72 : i32
    %14 = vector.broadcast %c72_i32 : i32 to vector<16x128xi32>
    %15 = arith.cmpi slt, %13, %14 : vector<16x128xi32>
    %16 = arith.extui %15 : vector<16x128xi1> to vector<16x128xi32>
    %17 = arith.sitofp %16 : vector<16x128xi32> to vector<16x128xf32>
    %18 = arith.mulf %8, %17 : vector<16x128xf32>
    %c0_8 = arith.constant 0 : index
    %c0_9 = arith.constant 0 : index
    %19 = vector.load %arg7[%c0_8, %c0_9] : memref<16x1xf32, #tpu.memory_space<vmem>>, vector<16x1xf32>
    %cst_10 = arith.constant dense<0.000000e+00> : vector<16xf32>
    %20 = vector.multi_reduction <add>, %18, %cst_10 [1] : vector<16x128xf32> to vector<16xf32>
    %21 = vector.shape_cast %20 : vector<16xf32> to vector<16x1xf32>
    %22 = arith.addf %19, %21 : vector<16x1xf32>
    %c0_11 = arith.constant 0 : index
    %c0_12 = arith.constant 0 : index
    %23 = vector.load %arg7[%c0_11, %c0_12] : memref<16x1xf32, #tpu.memory_space<vmem>>, vector<16x1xf32>
    tpu.vector_store %arg7[%c0_11, %c0_12], %22 {strides = array<i32>} : memref<16x1xf32, #tpu.memory_space<vmem>>, vector<16x1xf32>,
    %c0_13 = arith.constant 0 : index
    %c0_14 = arith.constant 0 : index
    %24 = vector.load %arg8[%c0_13, %c0_14] : memref<16x1xf32, #tpu.memory_space<vmem>>, vector<16x1xf32>
    %25 = arith.mulf %18, %18 : vector<16x128xf32>
    %cst_15 = arith.constant dense<0.000000e+00> : vector<16xf32>
    %26 = vector.multi_reduction <add>, %25, %cst_15 [1] : vector<16x128xf32> to vector<16xf32>
    %27 = vector.shape_cast %26 : vector<16xf32> to vector<16x1xf32>
    %28 = arith.addf %24, %27 : vector<16x1xf32>
    %c0_16 = arith.constant 0 : index
    %c0_17 = arith.constant 0 : index
    %29 = vector.load %arg8[%c0_16, %c0_17] : memref<16x1xf32, #tpu.memory_space<vmem>>, vector<16x1xf32>
    tpu.vector_store %arg8[%c0_16, %c0_17], %28 {strides = array<i32>} : memref<16x1xf32, #tpu.memory_space<vmem>>, vector<16x1xf32>,
    %c0_i32_18 = arith.constant 0 : i32
    %30 = arith.cmpi eq, %arg0, %c0_i32_18 : i32
    %31 = arith.extui %30 : i1 to i32
    %c0_i32_19 = arith.constant 0 : i32
    %32 = arith.cmpi ne, %31, %c0_i32_19 : i32
    scf.if %32 {
      %c0_20 = arith.constant 0 : index
      %c0_21 = arith.constant 0 : index
      %33 = vector.load %arg7[%c0_20, %c0_21] : memref<16x1xf32, #tpu.memory_space<vmem>>, vector<16x1xf32>
      %cst_22 = arith.constant 0.013888889 : f32
      %34 = vector.broadcast %cst_22 : f32 to vector<16x1xf32>
      %35 = arith.mulf %33, %34 : vector<16x1xf32>
      %c0_23 = arith.constant 0 : index
      %c0_24 = arith.constant 0 : index
      %36 = vector.load %arg8[%c0_23, %c0_24] : memref<16x1xf32, #tpu.memory_space<vmem>>, vector<16x1xf32>
      %cst_25 = arith.constant 0.013888889 : f32
      %37 = vector.broadcast %cst_25 : f32 to vector<16x1xf32>
      %38 = arith.mulf %36, %37 : vector<16x1xf32>
      %39 = arith.mulf %35, %35 : vector<16x1xf32>
      %40 = arith.subf %38, %39 : vector<16x1xf32>
      %c0_26 = arith.constant 0 : index
      %c0_27 = arith.constant 0 : index
      %41 = vector.load %arg5[%c0_26, %c0_27] : memref<16x1xf32, #tpu.memory_space<vmem>>, vector<16x1xf32>
      tpu.vector_store %arg5[%c0_26, %c0_27], %35 {strides = array<i32>} : memref<16x1xf32, #tpu.memory_space<vmem>>, vector<16x1xf32>,
      %cst_28 = arith.constant 9.99999974E-6 : f32
      %42 = vector.broadcast %cst_28 : f32 to vector<16x1xf32>
      %43 = arith.addf %40, %42 : vector<16x1xf32>
      %44 = math.rsqrt %43 : vector<16x1xf32>
      %c0_29 = arith.constant 0 : index
      %c0_30 = arith.constant 0 : index
      %45 = vector.load %arg6[%c0_29, %c0_30] : memref<16x1xf32, #tpu.memory_space<vmem>>, vector<16x1xf32>
      tpu.vector_store %arg6[%c0_29, %c0_30], %44 {strides = array<i32>} : memref<16x1xf32, #tpu.memory_space<vmem>>, vector<16x1xf32>,
    } else {
    }
    return
  }
  func.func @transform_0(%arg0: i32) -> (i32, i32) {
    %c0_i32 = arith.constant 0 : i32
    %c0_i32_0 = arith.constant 0 : i32
    %c0_i32_1 = arith.constant 0 : i32
    return %c0_i32, %c0_i32_0 : i32, i32
  }
  func.func @transform_1(%arg0: i32) -> (i32, i32) {
    %c0_i32 = arith.constant 0 : i32
    %c0_i32_0 = arith.constant 0 : i32
    return %c0_i32, %arg0 : i32, i32
  }
  func.func @transform_2(%arg0: i32) -> (i32, i32) {
    %c0_i32 = arith.constant 0 : i32
    %c0_i32_0 = arith.constant 0 : i32
    %c0_i32_1 = arith.constant 0 : i32
    return %c0_i32, %c0_i32_0 : i32, i32
  }
  func.func @transform_3(%arg0: i32) -> (i32, i32) {
    %c0_i32 = arith.constant 0 : i32
    %c0_i32_0 = arith.constant 0 : i32
    return %c0_i32, %arg0 : i32, i32
  }
  func.func @transform_4(%arg0: i32) -> (i32, i32) {
    %c0_i32 = arith.constant 0 : i32
    %c0_i32_0 = arith.constant 0 : i32
    %c0_i32_1 = arith.constant 0 : i32
    return %c0_i32, %c0_i32_0 : i32, i32
  }
  func.func @transform_5(%arg0: i32) -> (i32, i32) {
    %c0_i32 = arith.constant 0 : i32
    %c0_i32_0 = arith.constant 0 : i32
    %c0_i32_1 = arith.constant 0 : i32
    return %c0_i32, %c0_i32_0 : i32, i32
  }
}

module attributes {stable_mosaic.version = 11 : i64} {
  func.func @_bn_apply_leaky_kernel(%arg0: i32, %arg1: memref<16x128xf32, #tpu.memory_space<vmem>>, %arg2: memref<16x1xf32, #tpu.memory_space<vmem>>, %arg3: memref<16x1xf32, #tpu.memory_space<vmem>>, %arg4: memref<16x1xf32, #tpu.memory_space<vmem>>, %arg5: memref<16x1xf32, #tpu.memory_space<vmem>>, %arg6: memref<16x128xf32, #tpu.memory_space<vmem>>) attributes {dimension_semantics = [#tpu.dimension_semantics<parallel>], iteration_bounds = array<i64: 1>, scalar_prefetch = 0 : i64, scratch_operands = 0 : i64, tpu.core_type = #tpu.core_type<tc>, window_params = [{transform_indices = @transform_0, window_bounds = array<i64: 16, 128>}, {pipeline_mode = #tpu.pipeline_mode<synchronous>, transform_indices = @transform_1, window_bounds = array<i64: 16, 1>}, {pipeline_mode = #tpu.pipeline_mode<synchronous>, transform_indices = @transform_2, window_bounds = array<i64: 16, 1>}, {pipeline_mode = #tpu.pipeline_mode<synchronous>, transform_indices = @transform_3, window_bounds = array<i64: 16, 1>}, {pipeline_mode = #tpu.pipeline_mode<synchronous>, transform_indices = @transform_4, window_bounds = array<i64: 16, 1>}, {transform_indices = @transform_5, window_bounds = array<i64: 16, 128>}]} {
    %c0 = arith.constant 0 : index
    %c0_0 = arith.constant 0 : index
    %0 = vector.load %arg1[%c0, %c0_0] : memref<16x128xf32, #tpu.memory_space<vmem>>, vector<16x128xf32>
    %c0_1 = arith.constant 0 : index
    %c0_2 = arith.constant 0 : index
    %1 = vector.load %arg2[%c0_1, %c0_2] : memref<16x1xf32, #tpu.memory_space<vmem>>, vector<16x1xf32>
    %2 = vector.broadcast %1 : vector<16x1xf32> to vector<16x128xf32>
    %3 = arith.subf %0, %2 : vector<16x128xf32>
    %c0_3 = arith.constant 0 : index
    %c0_4 = arith.constant 0 : index
    %4 = vector.load %arg3[%c0_3, %c0_4] : memref<16x1xf32, #tpu.memory_space<vmem>>, vector<16x1xf32>
    %5 = vector.broadcast %4 : vector<16x1xf32> to vector<16x128xf32>
    %6 = arith.mulf %3, %5 : vector<16x128xf32>
    %c0_5 = arith.constant 0 : index
    %c0_6 = arith.constant 0 : index
    %7 = vector.load %arg4[%c0_5, %c0_6] : memref<16x1xf32, #tpu.memory_space<vmem>>, vector<16x1xf32>
    %8 = vector.broadcast %7 : vector<16x1xf32> to vector<16x128xf32>
    %9 = arith.mulf %6, %8 : vector<16x128xf32>
    %c0_7 = arith.constant 0 : index
    %c0_8 = arith.constant 0 : index
    %10 = vector.load %arg5[%c0_7, %c0_8] : memref<16x1xf32, #tpu.memory_space<vmem>>, vector<16x1xf32>
    %11 = vector.broadcast %10 : vector<16x1xf32> to vector<16x128xf32>
    %12 = arith.addf %9, %11 : vector<16x128xf32>
    %cst = arith.constant 0.000000e+00 : f32
    %13 = vector.broadcast %cst : f32 to vector<16x128xf32>
    %14 = arith.cmpf ogt, %12, %13 : vector<16x128xf32>
    %cst_9 = arith.constant 0.00999999977 : f32
    %15 = vector.broadcast %cst_9 : f32 to vector<16x128xf32>
    %16 = arith.mulf %15, %12 : vector<16x128xf32>
    %17 = arith.select %14, %12, %16 : vector<16x128xi1>, vector<16x128xf32>
    %c0_10 = arith.constant 0 : index
    %c0_11 = arith.constant 0 : index
    %18 = vector.load %arg6[%c0_10, %c0_11] : memref<16x128xf32, #tpu.memory_space<vmem>>, vector<16x128xf32>
    tpu.vector_store %arg6[%c0_10, %c0_11], %17 {strides = array<i32>} : memref<16x128xf32, #tpu.memory_space<vmem>>, vector<16x128xf32>,
    return
  }
  func.func @transform_0(%arg0: i32) -> (i32, i32) {
    %c0_i32 = arith.constant 0 : i32
    %c0_i32_0 = arith.constant 0 : i32
    return %c0_i32, %arg0 : i32, i32
  }
  func.func @transform_1(%arg0: i32) -> (i32, i32) {
    %c0_i32 = arith.constant 0 : i32
    %c0_i32_0 = arith.constant 0 : i32
    %c0_i32_1 = arith.constant 0 : i32
    return %c0_i32, %c0_i32_0 : i32, i32
  }
  func.func @transform_2(%arg0: i32) -> (i32, i32) {
    %c0_i32 = arith.constant 0 : i32
    %c0_i32_0 = arith.constant 0 : i32
    %c0_i32_1 = arith.constant 0 : i32
    return %c0_i32, %c0_i32_0 : i32, i32
  }
  func.func @transform_3(%arg0: i32) -> (i32, i32) {
    %c0_i32 = arith.constant 0 : i32
    %c0_i32_0 = arith.constant 0 : i32
    %c0_i32_1 = arith.constant 0 : i32
    return %c0_i32, %c0_i32_0 : i32, i32
  }
  func.func @transform_4(%arg0: i32) -> (i32, i32) {
    %c0_i32 = arith.constant 0 : i32
    %c0_i32_0 = arith.constant 0 : i32
    %c0_i32_1 = arith.constant 0 : i32
    return %c0_i32, %c0_i32_0 : i32, i32
  }
  func.func @transform_5(%arg0: i32) -> (i32, i32) {
    %c0_i32 = arith.constant 0 : i32
    %c0_i32_0 = arith.constant 0 : i32
    return %c0_i32, %arg0 : i32, i32
  }
}

module attributes {stable_mosaic.version = 11 : i64} {
  func.func @_gemm_bias_stats_kernel(%arg0: i32, %arg1: memref<32x1152xbf16, #tpu.memory_space<vmem>>, %arg2: memref<1152x128xbf16, #tpu.memory_space<vmem>>, %arg3: memref<32x1xf32, #tpu.memory_space<vmem>>, %arg4: memref<32x128xf32, #tpu.memory_space<vmem>>, %arg5: memref<32x1xf32, #tpu.memory_space<vmem>>, %arg6: memref<32x1xf32, #tpu.memory_space<vmem>>, %arg7: memref<32x1xf32, #tpu.memory_space<vmem>>, %arg8: memref<32x1xf32, #tpu.memory_space<vmem>>) attributes {dimension_semantics = [#tpu.dimension_semantics<arbitrary>], iteration_bounds = array<i64: 1>, scalar_prefetch = 0 : i64, scratch_operands = 2 : i64, tpu.core_type = #tpu.core_type<tc>, window_params = [{pipeline_mode = #tpu.pipeline_mode<synchronous>, transform_indices = @transform_0, window_bounds = array<i64: 32, 1152>}, {transform_indices = @transform_1, window_bounds = array<i64: 1152, 128>}, {pipeline_mode = #tpu.pipeline_mode<synchronous>, transform_indices = @transform_2, window_bounds = array<i64: 32, 1>}, {transform_indices = @transform_3, window_bounds = array<i64: 32, 128>}, {pipeline_mode = #tpu.pipeline_mode<synchronous>, transform_indices = @transform_4, window_bounds = array<i64: 32, 1>}, {pipeline_mode = #tpu.pipeline_mode<synchronous>, transform_indices = @transform_5, window_bounds = array<i64: 32, 1>}]} {
    %c0_i32 = arith.constant 0 : i32
    %0 = arith.cmpi eq, %arg0, %c0_i32 : i32
    %1 = arith.extui %0 : i1 to i32
    %c0_i32_0 = arith.constant 0 : i32
    %2 = arith.cmpi ne, %1, %c0_i32_0 : i32
    scf.if %2 {
      %cst_20 = arith.constant 0.000000e+00 : f32
      %33 = vector.broadcast %cst_20 : f32 to vector<32x1xf32>
      %c0_21 = arith.constant 0 : index
      %c0_22 = arith.constant 0 : index
      %34 = vector.load %arg7[%c0_21, %c0_22] : memref<32x1xf32, #tpu.memory_space<vmem>>, vector<32x1xf32>
      tpu.vector_store %arg7[%c0_21, %c0_22], %33 {strides = array<i32>} : memref<32x1xf32, #tpu.memory_space<vmem>>, vector<32x1xf32>,
      %cst_23 = arith.constant 0.000000e+00 : f32
      %35 = vector.broadcast %cst_23 : f32 to vector<32x1xf32>
      %c0_24 = arith.constant 0 : index
      %c0_25 = arith.constant 0 : index
      %36 = vector.load %arg8[%c0_24, %c0_25] : memref<32x1xf32, #tpu.memory_space<vmem>>, vector<32x1xf32>
      tpu.vector_store %arg8[%c0_24, %c0_25], %35 {strides = array<i32>} : memref<32x1xf32, #tpu.memory_space<vmem>>, vector<32x1xf32>,
    } else {
    }
    %c0 = arith.constant 0 : index
    %c0_1 = arith.constant 0 : index
    %3 = vector.load %arg1[%c0, %c0_1] : memref<32x1152xbf16, #tpu.memory_space<vmem>>, vector<32x1152xbf16>
    %c0_2 = arith.constant 0 : index
    %c0_3 = arith.constant 0 : index
    %4 = vector.load %arg2[%c0_2, %c0_3] : memref<1152x128xbf16, #tpu.memory_space<vmem>>, vector<1152x128xbf16>
    %cst = arith.constant dense<0.000000e+00> : vector<32x128xf32>
    %5 = tpu.matmul %3, %4, %cst {dimension_numbers = #tpu.dot_dimension_numbers<[1], [0], [0], [1], [0, 0, 1, 1], [], []>} : vector<32x1152xbf16>, vector<1152x128xbf16>, vector<32x128xf32> -> vector<32x128xf32>
    %c0_4 = arith.constant 0 : index
    %c0_5 = arith.constant 0 : index
    %6 = vector.load %arg3[%c0_4, %c0_5] : memref<32x1xf32, #tpu.memory_space<vmem>>, vector<32x1xf32>
    %7 = vector.broadcast %6 : vector<32x1xf32> to vector<32x128xf32>
    %8 = arith.addf %5, %7 : vector<32x128xf32>
    %c0_6 = arith.constant 0 : index
    %c0_7 = arith.constant 0 : index
    %9 = vector.load %arg4[%c0_6, %c0_7] : memref<32x128xf32, #tpu.memory_space<vmem>>, vector<32x128xf32>
    tpu.vector_store %arg4[%c0_6, %c0_7], %8 {strides = array<i32>} : memref<32x128xf32, #tpu.memory_space<vmem>>, vector<32x128xf32>,
    %10 = tpu.iota {dimensions = array<i32: 1>} : vector<32x128xi32>
    %c128_i32 = arith.constant 128 : i32
    %11 = arith.muli %arg0, %c128_i32 : i32
    %12 = vector.broadcast %11 : i32 to vector<32x128xi32>
    %13 = arith.addi %10, %12 : vector<32x128xi32>
    %c16_i32 = arith.constant 16 : i32
    %14 = vector.broadcast %c16_i32 : i32 to vector<32x128xi32>
    %15 = arith.cmpi slt, %13, %14 : vector<32x128xi32>
    %16 = arith.extui %15 : vector<32x128xi1> to vector<32x128xi32>
    %17 = arith.sitofp %16 : vector<32x128xi32> to vector<32x128xf32>
    %18 = arith.mulf %8, %17 : vector<32x128xf32>
    %c0_8 = arith.constant 0 : index
    %c0_9 = arith.constant 0 : index
    %19 = vector.load %arg7[%c0_8, %c0_9] : memref<32x1xf32, #tpu.memory_space<vmem>>, vector<32x1xf32>
    %cst_10 = arith.constant dense<0.000000e+00> : vector<32xf32>
    %20 = vector.multi_reduction <add>, %18, %cst_10 [1] : vector<32x128xf32> to vector<32xf32>
    %21 = vector.shape_cast %20 : vector<32xf32> to vector<32x1xf32>
    %22 = arith.addf %19, %21 : vector<32x1xf32>
    %c0_11 = arith.constant 0 : index
    %c0_12 = arith.constant 0 : index
    %23 = vector.load %arg7[%c0_11, %c0_12] : memref<32x1xf32, #tpu.memory_space<vmem>>, vector<32x1xf32>
    tpu.vector_store %arg7[%c0_11, %c0_12], %22 {strides = array<i32>} : memref<32x1xf32, #tpu.memory_space<vmem>>, vector<32x1xf32>,
    %c0_13 = arith.constant 0 : index
    %c0_14 = arith.constant 0 : index
    %24 = vector.load %arg8[%c0_13, %c0_14] : memref<32x1xf32, #tpu.memory_space<vmem>>, vector<32x1xf32>
    %25 = arith.mulf %18, %18 : vector<32x128xf32>
    %cst_15 = arith.constant dense<0.000000e+00> : vector<32xf32>
    %26 = vector.multi_reduction <add>, %25, %cst_15 [1] : vector<32x128xf32> to vector<32xf32>
    %27 = vector.shape_cast %26 : vector<32xf32> to vector<32x1xf32>
    %28 = arith.addf %24, %27 : vector<32x1xf32>
    %c0_16 = arith.constant 0 : index
    %c0_17 = arith.constant 0 : index
    %29 = vector.load %arg8[%c0_16, %c0_17] : memref<32x1xf32, #tpu.memory_space<vmem>>, vector<32x1xf32>
    tpu.vector_store %arg8[%c0_16, %c0_17], %28 {strides = array<i32>} : memref<32x1xf32, #tpu.memory_space<vmem>>, vector<32x1xf32>,
    %c0_i32_18 = arith.constant 0 : i32
    %30 = arith.cmpi eq, %arg0, %c0_i32_18 : i32
    %31 = arith.extui %30 : i1 to i32
    %c0_i32_19 = arith.constant 0 : i32
    %32 = arith.cmpi ne, %31, %c0_i32_19 : i32
    scf.if %32 {
      %c0_20 = arith.constant 0 : index
      %c0_21 = arith.constant 0 : index
      %33 = vector.load %arg7[%c0_20, %c0_21] : memref<32x1xf32, #tpu.memory_space<vmem>>, vector<32x1xf32>
      %cst_22 = arith.constant 6.250000e-02 : f32
      %34 = vector.broadcast %cst_22 : f32 to vector<32x1xf32>
      %35 = arith.mulf %33, %34 : vector<32x1xf32>
      %c0_23 = arith.constant 0 : index
      %c0_24 = arith.constant 0 : index
      %36 = vector.load %arg8[%c0_23, %c0_24] : memref<32x1xf32, #tpu.memory_space<vmem>>, vector<32x1xf32>
      %cst_25 = arith.constant 6.250000e-02 : f32
      %37 = vector.broadcast %cst_25 : f32 to vector<32x1xf32>
      %38 = arith.mulf %36, %37 : vector<32x1xf32>
      %39 = arith.mulf %35, %35 : vector<32x1xf32>
      %40 = arith.subf %38, %39 : vector<32x1xf32>
      %c0_26 = arith.constant 0 : index
      %c0_27 = arith.constant 0 : index
      %41 = vector.load %arg5[%c0_26, %c0_27] : memref<32x1xf32, #tpu.memory_space<vmem>>, vector<32x1xf32>
      tpu.vector_store %arg5[%c0_26, %c0_27], %35 {strides = array<i32>} : memref<32x1xf32, #tpu.memory_space<vmem>>, vector<32x1xf32>,
      %cst_28 = arith.constant 9.99999974E-6 : f32
      %42 = vector.broadcast %cst_28 : f32 to vector<32x1xf32>
      %43 = arith.addf %40, %42 : vector<32x1xf32>
      %44 = math.rsqrt %43 : vector<32x1xf32>
      %c0_29 = arith.constant 0 : index
      %c0_30 = arith.constant 0 : index
      %45 = vector.load %arg6[%c0_29, %c0_30] : memref<32x1xf32, #tpu.memory_space<vmem>>, vector<32x1xf32>
      tpu.vector_store %arg6[%c0_29, %c0_30], %44 {strides = array<i32>} : memref<32x1xf32, #tpu.memory_space<vmem>>, vector<32x1xf32>,
    } else {
    }
    return
  }
  func.func @transform_0(%arg0: i32) -> (i32, i32) {
    %c0_i32 = arith.constant 0 : i32
    %c0_i32_0 = arith.constant 0 : i32
    %c0_i32_1 = arith.constant 0 : i32
    return %c0_i32, %c0_i32_0 : i32, i32
  }
  func.func @transform_1(%arg0: i32) -> (i32, i32) {
    %c0_i32 = arith.constant 0 : i32
    %c0_i32_0 = arith.constant 0 : i32
    return %c0_i32, %arg0 : i32, i32
  }
  func.func @transform_2(%arg0: i32) -> (i32, i32) {
    %c0_i32 = arith.constant 0 : i32
    %c0_i32_0 = arith.constant 0 : i32
    %c0_i32_1 = arith.constant 0 : i32
    return %c0_i32, %c0_i32_0 : i32, i32
  }
  func.func @transform_3(%arg0: i32) -> (i32, i32) {
    %c0_i32 = arith.constant 0 : i32
    %c0_i32_0 = arith.constant 0 : i32
    return %c0_i32, %arg0 : i32, i32
  }
  func.func @transform_4(%arg0: i32) -> (i32, i32) {
    %c0_i32 = arith.constant 0 : i32
    %c0_i32_0 = arith.constant 0 : i32
    %c0_i32_1 = arith.constant 0 : i32
    return %c0_i32, %c0_i32_0 : i32, i32
  }
  func.func @transform_5(%arg0: i32) -> (i32, i32) {
    %c0_i32 = arith.constant 0 : i32
    %c0_i32_0 = arith.constant 0 : i32
    %c0_i32_1 = arith.constant 0 : i32
    return %c0_i32, %c0_i32_0 : i32, i32
  }
}

module attributes {stable_mosaic.version = 11 : i64} {
  func.func @_bn_apply_leaky_kernel(%arg0: i32, %arg1: memref<32x128xf32, #tpu.memory_space<vmem>>, %arg2: memref<32x1xf32, #tpu.memory_space<vmem>>, %arg3: memref<32x1xf32, #tpu.memory_space<vmem>>, %arg4: memref<32x1xf32, #tpu.memory_space<vmem>>, %arg5: memref<32x1xf32, #tpu.memory_space<vmem>>, %arg6: memref<32x128xf32, #tpu.memory_space<vmem>>) attributes {dimension_semantics = [#tpu.dimension_semantics<parallel>], iteration_bounds = array<i64: 1>, scalar_prefetch = 0 : i64, scratch_operands = 0 : i64, tpu.core_type = #tpu.core_type<tc>, window_params = [{transform_indices = @transform_0, window_bounds = array<i64: 32, 128>}, {pipeline_mode = #tpu.pipeline_mode<synchronous>, transform_indices = @transform_1, window_bounds = array<i64: 32, 1>}, {pipeline_mode = #tpu.pipeline_mode<synchronous>, transform_indices = @transform_2, window_bounds = array<i64: 32, 1>}, {pipeline_mode = #tpu.pipeline_mode<synchronous>, transform_indices = @transform_3, window_bounds = array<i64: 32, 1>}, {pipeline_mode = #tpu.pipeline_mode<synchronous>, transform_indices = @transform_4, window_bounds = array<i64: 32, 1>}, {transform_indices = @transform_5, window_bounds = array<i64: 32, 128>}]} {
    %c0 = arith.constant 0 : index
    %c0_0 = arith.constant 0 : index
    %0 = vector.load %arg1[%c0, %c0_0] : memref<32x128xf32, #tpu.memory_space<vmem>>, vector<32x128xf32>
    %c0_1 = arith.constant 0 : index
    %c0_2 = arith.constant 0 : index
    %1 = vector.load %arg2[%c0_1, %c0_2] : memref<32x1xf32, #tpu.memory_space<vmem>>, vector<32x1xf32>
    %2 = vector.broadcast %1 : vector<32x1xf32> to vector<32x128xf32>
    %3 = arith.subf %0, %2 : vector<32x128xf32>
    %c0_3 = arith.constant 0 : index
    %c0_4 = arith.constant 0 : index
    %4 = vector.load %arg3[%c0_3, %c0_4] : memref<32x1xf32, #tpu.memory_space<vmem>>, vector<32x1xf32>
    %5 = vector.broadcast %4 : vector<32x1xf32> to vector<32x128xf32>
    %6 = arith.mulf %3, %5 : vector<32x128xf32>
    %c0_5 = arith.constant 0 : index
    %c0_6 = arith.constant 0 : index
    %7 = vector.load %arg4[%c0_5, %c0_6] : memref<32x1xf32, #tpu.memory_space<vmem>>, vector<32x1xf32>
    %8 = vector.broadcast %7 : vector<32x1xf32> to vector<32x128xf32>
    %9 = arith.mulf %6, %8 : vector<32x128xf32>
    %c0_7 = arith.constant 0 : index
    %c0_8 = arith.constant 0 : index
    %10 = vector.load %arg5[%c0_7, %c0_8] : memref<32x1xf32, #tpu.memory_space<vmem>>, vector<32x1xf32>
    %11 = vector.broadcast %10 : vector<32x1xf32> to vector<32x128xf32>
    %12 = arith.addf %9, %11 : vector<32x128xf32>
    %cst = arith.constant 0.000000e+00 : f32
    %13 = vector.broadcast %cst : f32 to vector<32x128xf32>
    %14 = arith.cmpf ogt, %12, %13 : vector<32x128xf32>
    %cst_9 = arith.constant 0.00999999977 : f32
    %15 = vector.broadcast %cst_9 : f32 to vector<32x128xf32>
    %16 = arith.mulf %15, %12 : vector<32x128xf32>
    %17 = arith.select %14, %12, %16 : vector<32x128xi1>, vector<32x128xf32>
    %c0_10 = arith.constant 0 : index
    %c0_11 = arith.constant 0 : index
    %18 = vector.load %arg6[%c0_10, %c0_11] : memref<32x128xf32, #tpu.memory_space<vmem>>, vector<32x128xf32>
    tpu.vector_store %arg6[%c0_10, %c0_11], %17 {strides = array<i32>} : memref<32x128xf32, #tpu.memory_space<vmem>>, vector<32x128xf32>,
    return
  }
  func.func @transform_0(%arg0: i32) -> (i32, i32) {
    %c0_i32 = arith.constant 0 : i32
    %c0_i32_0 = arith.constant 0 : i32
    return %c0_i32, %arg0 : i32, i32
  }
  func.func @transform_1(%arg0: i32) -> (i32, i32) {
    %c0_i32 = arith.constant 0 : i32
    %c0_i32_0 = arith.constant 0 : i32
    %c0_i32_1 = arith.constant 0 : i32
    return %c0_i32, %c0_i32_0 : i32, i32
  }
  func.func @transform_2(%arg0: i32) -> (i32, i32) {
    %c0_i32 = arith.constant 0 : i32
    %c0_i32_0 = arith.constant 0 : i32
    %c0_i32_1 = arith.constant 0 : i32
    return %c0_i32, %c0_i32_0 : i32, i32
  }
  func.func @transform_3(%arg0: i32) -> (i32, i32) {
    %c0_i32 = arith.constant 0 : i32
    %c0_i32_0 = arith.constant 0 : i32
    %c0_i32_1 = arith.constant 0 : i32
    return %c0_i32, %c0_i32_0 : i32, i32
  }
  func.func @transform_4(%arg0: i32) -> (i32, i32) {
    %c0_i32 = arith.constant 0 : i32
    %c0_i32_0 = arith.constant 0 : i32
    %c0_i32_1 = arith.constant 0 : i32
    return %c0_i32, %c0_i32_0 : i32, i32
  }
  func.func @transform_5(%arg0: i32) -> (i32, i32) {
    %c0_i32 = arith.constant 0 : i32
    %c0_i32_0 = arith.constant 0 : i32
    return %c0_i32, %arg0 : i32, i32
  }
}

module attributes {stable_mosaic.version = 11 : i64} {
  func.func @_head_kernel(%arg0: memref<2x256xf32, #tpu.memory_space<vmem>>, %arg1: memref<256x128xf32, #tpu.memory_space<vmem>>, %arg2: memref<1x128xf32, #tpu.memory_space<vmem>>, %arg3: memref<2x4xf32, #tpu.memory_space<vmem>>, %arg4: memref<128x128xf32, #tpu.memory_space<vmem>>, %arg5: memref<4x128xf32, #tpu.memory_space<vmem>>, %arg6: memref<1x128xf32, #tpu.memory_space<vmem>>, %arg7: memref<2x128xf32, #tpu.memory_space<vmem>>) attributes {dimension_semantics = [], scalar_prefetch = 0 : i64, scratch_operands = 0 : i64, tpu.core_type = #tpu.core_type<tc>} {
    %c0 = arith.constant 0 : index
    %c0_0 = arith.constant 0 : index
    %0 = vector.load %arg0[%c0, %c0_0] : memref<2x256xf32, #tpu.memory_space<vmem>>, vector<2x256xf32>
    %c0_1 = arith.constant 0 : index
    %c0_2 = arith.constant 0 : index
    %1 = vector.load %arg1[%c0_1, %c0_2] : memref<256x128xf32, #tpu.memory_space<vmem>>, vector<256x128xf32>
    %cst = arith.constant dense<0.000000e+00> : vector<2x128xf32>
    %2 = tpu.matmul %0, %1, %cst {dimension_numbers = #tpu.dot_dimension_numbers<[1], [0], [0], [1], [0, 0, 1, 1], [], []>} : vector<2x256xf32>, vector<256x128xf32>, vector<2x128xf32> -> vector<2x128xf32>
    %c0_3 = arith.constant 0 : index
    %c0_4 = arith.constant 0 : index
    %3 = vector.load %arg2[%c0_3, %c0_4] : memref<1x128xf32, #tpu.memory_space<vmem>>, vector<1x128xf32>
    %4 = vector.broadcast %3 : vector<1x128xf32> to vector<2x128xf32>
    %5 = arith.addf %2, %4 : vector<2x128xf32>
    %c0_5 = arith.constant 0 : index
    %c0_6 = arith.constant 0 : index
    %6 = vector.load %arg4[%c0_5, %c0_6] : memref<128x128xf32, #tpu.memory_space<vmem>>, vector<128x128xf32>
    %cst_7 = arith.constant dense<0.000000e+00> : vector<2x128xf32>
    %7 = tpu.matmul %5, %6, %cst_7 {dimension_numbers = #tpu.dot_dimension_numbers<[1], [0], [0], [1], [0, 0, 1, 1], [], []>} : vector<2x128xf32>, vector<128x128xf32>, vector<2x128xf32> -> vector<2x128xf32>
    %c0_8 = arith.constant 0 : index
    %c0_9 = arith.constant 0 : index
    %8 = vector.load %arg3[%c0_8, %c0_9] : memref<2x4xf32, #tpu.memory_space<vmem>>, vector<2x4xf32>
    %c0_10 = arith.constant 0 : index
    %c0_11 = arith.constant 0 : index
    %9 = vector.load %arg5[%c0_10, %c0_11] : memref<4x128xf32, #tpu.memory_space<vmem>>, vector<4x128xf32>
    %cst_12 = arith.constant dense<0.000000e+00> : vector<2x128xf32>
    %10 = tpu.matmul %8, %9, %cst_12 {dimension_numbers = #tpu.dot_dimension_numbers<[1], [0], [0], [1], [0, 0, 1, 1], [], []>} : vector<2x4xf32>, vector<4x128xf32>, vector<2x128xf32> -> vector<2x128xf32>
    %11 = arith.addf %7, %10 : vector<2x128xf32>
    %c0_13 = arith.constant 0 : index
    %c0_14 = arith.constant 0 : index
    %12 = vector.load %arg6[%c0_13, %c0_14] : memref<1x128xf32, #tpu.memory_space<vmem>>, vector<1x128xf32>
    %13 = vector.broadcast %12 : vector<1x128xf32> to vector<2x128xf32>
    %14 = arith.addf %11, %13 : vector<2x128xf32>
    %c0_15 = arith.constant 0 : index
    %c0_16 = arith.constant 0 : index
    %15 = vector.load %arg7[%c0_15, %c0_16] : memref<2x128xf32, #tpu.memory_space<vmem>>, vector<2x128xf32>
    tpu.vector_store %arg7[%c0_15, %c0_16], %14 {strides = array<i32>} : memref<2x128xf32, #tpu.memory_space<vmem>>, vector<2x128xf32>,
    return
  }
}

</mosaic_0001>

<bundles_post_ra>
// kernel: critic_forward.7
= control target key start
LH: loop header
LB: loop body
LE: loop exit
PB: predicated region body
PF: predicated region fallthrough
CT: control target
= control target key end

     0   :  { %8 = vsyncpa [#allocation3], 0  ;;  %s1266_s15 = smov [#allocation2]   ;;  %s2487_s0 = inlined_call_operand.hbm [shape: f32[2,4], index: 0, kind: input, shape index: {}]   ;;  %s2488_s1 = inlined_call_operand.vmem [shape: f32[4,5120], index: 1, kind: input, shape index: {}]   ;;  %s2489_s2 = inlined_call_operand.vmem [shape: f32[1,5120], index: 2, kind: input, shape index: {}]   ;;  %s2490_s3 = inlined_call_operand.vmem [shape: f32[2,5120], index: 3, kind: output, shape index: {}]  }
   0x1   :  { %s14_s14 = sshll.u32 %s2487_s0, 4  ;;  %s16_s16 = sshll.u32 %s1266_s15, 4  ;;  %s15_s14 = int_to_ptr.hbm [resolvable:$true] %s14_s14  ;;  %s17_s16 = int_to_ptr.vmem [resolvable:$true] %s16_s16 }
   0x2   :  { %19 = dma.hbm_to_vmem [thread:$0]  %s15_s14, 32, %s17_s16, [#allocation3]  }
   0x3   :  { %1264 = dma.done.wait [#allocation3], 32  }
   0x4   :  { %1265 = vsyncadd [#allocation3], 4294967264  ;;  %v1267_v0 = vmov 0   ;;  %v1268_v1 = vmov 2   ;;  %v28_v2 = vld [vmem:[#allocation2] sm:$0x3] }
   0x5   :  { %1149 = vset.pattern.permute.xlu0 %v1267_v0  ;;  %1151 = vset.pattern.permute.xlu1 %v1268_v1  ;;  %v1269_v3 = vmov 1   ;;  %v1270_v4 = vmov 3   ;;  %v1297_v5 = vld [vmem:[%s2488_s1] sm:$0xff]  ;;  %v1302_v6 = vld [vmem:[%s2488_s1 + $0x8] sm:$0xff]  ;;  %v1307_v7 = vld [vmem:[%s2488_s1 + $0x10] sm:$0xff]  ;;  %vm1086_vm0 = vcmask 1041408  }
   0x6   :  { %141 = vperm.xlu0 %1149, %v28_v2   ;;  %569 = vperm.xlu1 %1151, %v28_v2   ;;  %2574 = vst [vmem:[#allocation5_spill] sm:$0xff] %v1297_v5  ;;  %v1312_v8 = vld [vmem:[%s2488_s1 + $0x18] sm:$0xff]  ;;  %v1317_v9 = vld [vmem:[%s2488_s1 + $0x20] sm:$0xff]  ;;  %v1322_v10 = vld [vmem:[%s2488_s1 + $0x28] sm:$0xff]  ;;  %v164_v12 = vperm.slane %v1297_v5, 0  ;;  %v165_v13 = vperm.slane %v1297_v5, 4 }
   0x7   :  { %2575 = vst [vmem:[#allocation6_spill] sm:$0xff] %v1302_v6  ;;  %v1327_v11 = vld [vmem:[%s2488_s1 + $0x30] sm:$0xff]  ;;  %v1334_v14 = vld [vmem:[%s2488_s1 + $0x38] sm:$0xff]  ;;  %v1339_v15 = vld [vmem:[%s2488_s1 + $0x40] sm:$0xff]  ;;  %v166_v16 = vperm.slane %v1302_v6, 0  ;;  %v167_v17 = vperm.slane %v1302_v6, 4 }
   0x8   :  { %2576 = vst [vmem:[#allocation7_spill] sm:$0xff] %v1307_v7  ;;  %v168_v18 = vperm.slane %v1307_v7, 0  ;;  %v169_v19 = vperm.slane %v1307_v7, 4  ;;  %v1348_v20 = vld [vmem:[%s2489_s2] sm:$0xff]  ;;  %v170_v21 = vperm.slane %v1312_v8, 0  ;;  %v171_v22 = vperm.slane %v1312_v8, 4 }
   0x9   :  { %2577 = vst [vmem:[#allocation8_spill] sm:$0xff] %v1312_v8  ;;  %v172_v23 = vperm.slane %v1317_v9, 0  ;;  %v173_v24 = vperm.slane %v1317_v9, 4  ;;  %v1361_v29 = vld [vmem:[%s2489_s2 + $0x8] sm:$0xff]  ;;  %v1374_v38 = vld [vmem:[%s2489_s2 + $0x10] sm:$0xff]  ;;  %v1387_v47 = vld [vmem:[%s2489_s2 + $0x18] sm:$0xff] }
   0xa   :  { %2578 = vst [vmem:[#allocation9_spill] sm:$0xff] %v1317_v9  ;;  %v1400_v56 = vld [vmem:[%s2489_s2 + $0x20] sm:$0xff]  ;;  %v1413_v1 = vld [vmem:[%s2488_s1 + $0x48] sm:$0xff]  ;;  %v1427_v0 = vld [vmem:[%s2488_s1 + $0x58] sm:$0xff]  ;;  %v244_v32 = vperm.slane %v164_v12, 0  ;;  %v245_v31 = vperm.slane %v165_v13, 0 }
   0xb   :  { %2579 = vst [vmem:[#allocation10_spill] sm:$0xff] %v1322_v10  ;;  %v1432_v61 = vld [vmem:[%s2488_s1 + $0x60] sm:$0xff]  ;;  %v1441_v63 = vld [vmem:[%s2488_s1 + $0x68] sm:$0xff]  ;;  %v1446_v59 = vld [vmem:[%s2488_s1 + $0x70] sm:$0xff]  ;;  %v182_v55 = vperm.slane %v1413_v1, 0  ;;  %v183_v58 = vperm.slane %v1413_v1, 4 }
   0xc   :  { %2580 = vst [vmem:[#allocation11_spill] sm:$0xff] %v1327_v11  ;;  %v1455_v62 = vld [vmem:[%s2488_s1 + $0x78] sm:$0xff]  ;;  %v1460_v57 = vld [vmem:[%s2488_s1 + $0x80] sm:$0xff]  ;;  %v1474_v54 = vld [vmem:[%s2488_s1 + $0x90] sm:$0xff]  ;;  %v186_v53 = vperm.slane %v1427_v0, 0  ;;  %v187_v52 = vperm.slane %v1427_v0, 4 }
   0xd   :  { %2581 = vst [vmem:[#allocation12_spill] sm:$0xff] %v1334_v14  ;;  %v188_v51 = vperm.slane %v1432_v61, 0  ;;  %v189_v50 = vperm.slane %v1432_v61, 4  ;;  %v1483_v49 = vld [vmem:[%s2488_s1 + $0x98] sm:$0xff]  ;;  %v190_v48 = vperm.slane %v1441_v63, 0  ;;  %v191_v46 = vperm.slane %v1441_v63, 4 }
   0xe   :  { %1150 = vset.pattern.permute.xlu0 %v1269_v3  ;;  %1152 = vset.pattern.permute.xlu1 %v1270_v4  ;;  %2582 = vst [vmem:[#allocation13_spill] sm:$0xff] %v1339_v15  ;;  %v192_v45 = vperm.slane %v1446_v59, 0  ;;  %v193_v44 = vperm.slane %v1446_v59, 4  ;;  %v194_v43 = vperm.slane %v1455_v62, 0  ;;  %v195_v42 = vperm.slane %v1455_v62, 4 }
   0xf   :  { %365 = vperm.xlu0 %1150, %v28_v2   ;;  %773 = vperm.xlu1 %1152, %v28_v2   ;;  %2583 = vst [vmem:[#allocation14_spill] sm:$0xff] %v1348_v20  ;;  %v1418_v2 = vld [vmem:[%s2488_s1 + $0x50] sm:$0xff]  ;;  %v196_v41 = vperm.slane %v1460_v57, 0  ;;  %v197_v40 = vperm.slane %v1460_v57, 4  ;;  %v200_v36 = vperm.slane %v1474_v54, 0  ;;  %v201_v35 = vperm.slane %v1474_v54, 4 }
  0x10   :  { %2584 = vst [vmem:[#allocation15_spill] sm:$0xff] %v1361_v29  ;;  %v184_v60 = vperm.slane %v1418_v2, 0  ;;  %v185_v3 = vperm.slane %v1418_v2, 4  ;;  %v202_v34 = vperm.slane %v1483_v49, 0  ;;  %v203_v33 = vperm.slane %v1483_v49, 4 }
  0x11   :  { %2585 = vst [vmem:[#allocation16_spill] sm:$0xff] %v1374_v38  ;;  %v246_v30 = vperm.slane %v166_v16, 0  ;;  %v247_v28 = vperm.slane %v167_v17, 0  ;;  %v248_v27 = vperm.slane %v168_v18, 0  ;;  %v249_v26 = vperm.slane %v169_v19, 0 }
  0x12   :  { %2586 = vst [vmem:[#allocation17_spill] sm:$0xff] %v1387_v47  ;;  %v250_v25 = vperm.slane %v170_v21, 0  ;;  %v251_v12 = vperm.slane %v171_v22, 0  ;;  %v252_v13 = vperm.slane %v172_v23, 0  ;;  %v253_v16 = vperm.slane %v173_v24, 0 }
  0x13   :  { %2587 = vst [vmem:[#allocation18_spill] sm:$0xff] %v1400_v56  ;;  %v2599_v17 = vperm.slane %v1322_v10, 0  ;;  %v2600_v18 = vperm.slane %v1322_v10, 4  ;;  %v2601_v19 = vperm.slane %v1327_v11, 0  ;;  %v2602_v21 = vperm.slane %v1327_v11, 4 }
  0x14   :  { %2588 = vst [vmem:[#allocation19_spill] sm:$0xff] %v1413_v1  ;;  %v2603_v22 = vperm.slane %v1334_v14, 0  ;;  %v2604_v23 = vperm.slane %v1334_v14, 4  ;;  %v2605_v24 = vperm.slane %v1339_v15, 0  ;;  %v265_v1 = vperm.slane %v185_v3, 0 }
  0x15   :  { %2589 = vst [vmem:[#allocation20_spill] sm:$0xff] %v1418_v2  ;;  %v264_v2 = vperm.slane %v184_v60, 0  ;;  %v267_v56 = vperm.slane %v187_v52, 0  ;;  %v268_v47 = vperm.slane %v188_v51, 0  ;;  %v270_v38 = vperm.slane %v190_v48, 0 }
  0x16   :  { %2590 = vst [vmem:[#allocation21_spill] sm:$0xff] %v1427_v0  ;;  %v262_v0 = vperm.slane %v182_v55, 0  ;;  %v271_v29 = vperm.slane %v191_v46, 0  ;;  %v273_v20 = vperm.slane %v193_v44, 0  ;;  %v274_v14 = vperm.slane %v194_v43, 0 }
  0x17   :  { %1153 = vset.pattern.permute.xlu0 %v1270_v4  ;;  %2591 = vst [vmem:[#allocation22_spill] sm:$0xff] %v1432_v61  ;;  %v1469_v4 = vld [vmem:[%s2488_s1 + $0x88] sm:$0xff]  ;;  %v276_v11 = vperm.slane %v196_v41, 0  ;;  %v277_v10 = vperm.slane %v197_v40, 0  ;;  %v282_v55 = vperm.slane %v202_v34, 0  ;;  %vm1088_vm1 = vcmask 1045508  }
  0x18   :  { %2592 = vst [vmem:[#allocation23_spill] sm:$0xff] %v1441_v63  ;;  %v198_v39 = vperm.slane %v1469_v4, 0  ;;  %v199_v37 = vperm.slane %v1469_v4, 4  ;;  %v260_v63 = vperm.slane %v2605_v24, 0  ;;  %vm1090_vm2 = vcmask 1043456  }
  0x19   :  { %2593 = vst [vmem:[#allocation24_spill] sm:$0xff] %v1446_v59  ;;  %v259_v59 = vperm.slane %v2604_v23, 0  ;;  %v275_v23 = vperm.slane %v195_v42, 0 }
  0x1a   :  { %2594 = vst [vmem:[#allocation25_spill] sm:$0xff] %v1455_v62  ;;  %v258_v62 = vperm.slane %v2603_v22, 0  ;;  %v272_v22 = vperm.slane %v192_v45, 0  ;;  %v278_v24 = vperm.slane %v198_v39, 0  ;;  %v279_v9 = vperm.slane %v199_v37, 0  ;;  %v2611_v39 = vld [vmem:[#allocation13_spill] sm:$0xff] }
  0x1b   :  { %2595 = vst [vmem:[#allocation26_spill] sm:$0xff] %v1460_v57  ;;  %v257_v57 = vperm.slane %v2602_v21, 0  ;;  %v269_v21 = vperm.slane %v189_v50, 0 }
  0x1c   :  { %2596 = vst [vmem:[#allocation27_spill] sm:$0xff] %v1469_v4  ;;  %v256_v4 = vperm.slane %v2601_v19, 0  ;;  %v266_v19 = vperm.slane %v186_v53, 0 }
  0x1d   :  { %2597 = vst [vmem:[#allocation28_spill] sm:$0xff] %v1474_v54  ;;  %v255_v54 = vperm.slane %v2600_v18, 0  ;;  %v263_v18 = vperm.slane %v183_v58, 0  ;;  %v283_v58 = vperm.slane %v203_v33, 0 }
  0x1e   :  { %2598 = vst [vmem:[#allocation29_spill] sm:$0xff] %v1483_v49  ;;  %v254_v49 = vperm.slane %v2599_v17, 0  ;;  %v2606_v17 = vperm.slane %v1339_v15, 4  ;;  %v280_v15 = vperm.slane %v200_v36, 0 }
  0x20   :  { %v261_v61 = vperm.slane %v2606_v17, 0  ;;  %v281_v17 = vperm.slane %v201_v35, 0 }
  0x78   :  { %v142_v51 = vpop.permute.xlu0 %141 }
  0x79   :  { %v284_v53 = vmul.f32 %v244_v32, %v142_v51  ;;  %v285_v36 = vmul.f32 %v245_v31, %v142_v51  ;;  %v286_v48 = vmul.f32 %v246_v30, %v142_v51  ;;  %v287_v34 = vmul.f32 %v247_v28, %v142_v51 }
  0x7a   :  { %v288_v52 = vmul.f32 %v248_v27, %v142_v51  ;;  %v289_v33 = vmul.f32 %v249_v26, %v142_v51  ;;  %v290_v60 = vmul.f32 %v250_v25, %v142_v51  ;;  %v291_v40 = vmul.f32 %v251_v12, %v142_v51 }
  0x7b   :  { %v292_v35 = vmul.f32 %v252_v13, %v142_v51  ;;  %v293_v42 = vmul.f32 %v253_v16, %v142_v51  ;;  %v294_v37 = vmul.f32 %v254_v49, %v142_v51  ;;  %v295_v46 = vmul.f32 %v255_v54, %v142_v51 }
  0x7c   :  { %v296_v8 = vmul.f32 %v256_v4, %v142_v51  ;;  %v297_v50 = vmul.f32 %v257_v57, %v142_v51  ;;  %v298_v32 = vmul.f32 %v258_v62, %v142_v51  ;;  %v299_v44 = vmul.f32 %v259_v59, %v142_v51 }
  0x7d   :  { %v300_v43 = vmul.f32 %v260_v63, %v142_v51  ;;  %v301_v7 = vmul.f32 %v261_v61, %v142_v51  ;;  %v302_v41 = vmul.f32 %v262_v0, %v142_v51  ;;  %v303_v3 = vmul.f32 %v263_v18, %v142_v51 }
  0x7e   :  { %v304_v45 = vmul.f32 %v264_v2, %v142_v51  ;;  %v305_v31 = vmul.f32 %v265_v1, %v142_v51  ;;  %v306_v30 = vmul.f32 %v266_v19, %v142_v51  ;;  %v307_v28 = vmul.f32 %v267_v56, %v142_v51  ;;  %v2612_v2 = vld [vmem:[#allocation14_spill] sm:$0xff] }
  0x7f   :  { %v308_v27 = vmul.f32 %v268_v47, %v142_v51  ;;  %v309_v26 = vmul.f32 %v269_v21, %v142_v51  ;;  %v310_v25 = vmul.f32 %v270_v38, %v142_v51  ;;  %v311_v12 = vmul.f32 %v271_v29, %v142_v51 }
  0x80   :  { %v312_v13 = vmul.f32 %v272_v22, %v142_v51  ;;  %v313_v16 = vmul.f32 %v273_v20, %v142_v51  ;;  %v314_v49 = vmul.f32 %v274_v14, %v142_v51  ;;  %v315_v54 = vmul.f32 %v275_v23, %v142_v51 }
  0x81   :  { %v316_v4 = vmul.f32 %v276_v11, %v142_v51  ;;  %v317_v57 = vmul.f32 %v277_v10, %v142_v51  ;;  %v318_v62 = vmul.f32 %v278_v24, %v142_v51  ;;  %v319_v59 = vmul.f32 %v279_v9, %v142_v51 }
  0x82   :  { %v320_v63 = vmul.f32 %v280_v15, %v142_v51  ;;  %v321_v61 = vmul.f32 %v281_v17, %v142_v51  ;;  %v322_v0 = vmul.f32 %v282_v55, %v142_v51  ;;  %v323_v18 = vmul.f32 %v283_v58, %v142_v51  ;;  %v2626_v17 = vld [vmem:[#allocation15_spill] sm:$0xff] }
  0x83   :  { %v2613_v1 = vperm.slane %v2612_v2, 0  ;;  %v2614_v47 = vperm.slane %v2612_v2, 1  ;;  %v2615_v20 = vperm.slane %v2612_v2, 2  ;;  %v2616_v10 = vperm.slane %v2612_v2, 3 }
  0x84   :  { %v2618_v9 = vperm.slane %v2612_v2, 4  ;;  %v2620_v29 = vperm.slane %v2612_v2, 5  ;;  %v2622_v21 = vperm.slane %v2612_v2, 6  ;;  %v2624_v23 = vperm.slane %v2612_v2, 7 }
  0x85   :  { %v1554_v19 = vadd.f32 %v284_v53, %v2613_v1  ;;  %v1558_v38 = vadd.f32 %v285_v36, %v2614_v47  ;;  %v1562_v14 = vadd.f32 %v286_v48, %v2615_v20  ;;  %v1566_v11 = vadd.f32 %v287_v34, %v2616_v10  ;;  %v2643_v47 = vld [vmem:[#allocation16_spill] sm:$0xff] }
  0x86   :  { %v1570_v15 = vadd.f32 %v288_v52, %v2618_v9  ;;  %v1574_v56 = vadd.f32 %v289_v33, %v2620_v29  ;;  %v1578_v22 = vadd.f32 %v290_v60, %v2622_v21  ;;  %v1582_v24 = vadd.f32 %v291_v40, %v2624_v23 }
  0x87   :  { %2617 = vst [vmem:[#allocation14_spill] sm:$0xff] %v1566_v11  ;;  %v2627_v55 = vperm.slane %v2626_v17, 0  ;;  %v2629_v51 = vperm.slane %v2626_v17, 1  ;;  %v2631_v48 = vperm.slane %v2626_v17, 2  ;;  %v2633_v34 = vperm.slane %v2626_v17, 3 }
  0x88   :  { %2619 = vst [vmem:[#allocation30_spill] sm:$0xff] %v1570_v15  ;;  %v2635_v33 = vperm.slane %v2626_v17, 4  ;;  %v2637_v53 = vperm.slane %v2626_v17, 5  ;;  %v2639_v2 = vperm.slane %v2626_v17, 6  ;;  %v2641_v1 = vperm.slane %v2626_v17, 7 }
  0x89   :  { %2621 = vst [vmem:[#allocation31_spill] sm:$0xff] %v1574_v56  ;;  %v1586_v58 = vadd.f32 %v292_v35, %v2627_v55  ;;  %v1590_v52 = vadd.f32 %v293_v42, %v2629_v51  ;;  %v1594_v36 = vadd.f32 %v294_v37, %v2631_v48  ;;  %v1598_v60 = vadd.f32 %v295_v46, %v2633_v34  ;;  %v2660_v51 = vld [vmem:[#allocation17_spill] sm:$0xff] }
  0x8a   :  { %2623 = vst [vmem:[#allocation32_spill] sm:$0xff] %v1578_v22  ;;  %v1602_v40 = vadd.f32 %v296_v8, %v2635_v33  ;;  %v1606_v35 = vadd.f32 %v297_v50, %v2637_v53  ;;  %v1610_v42 = vadd.f32 %v298_v32, %v2639_v2  ;;  %v1614_v37 = vadd.f32 %v299_v44, %v2641_v1 }
  0x8b   :  { %2625 = vst [vmem:[#allocation33_spill] sm:$0xff] %v1582_v24  ;;  %v2644_v20 = vperm.slane %v2643_v47, 0  ;;  %v2646_v10 = vperm.slane %v2643_v47, 1  ;;  %v2648_v9 = vperm.slane %v2643_v47, 2  ;;  %v2650_v29 = vperm.slane %v2643_v47, 3 }
  0x8c   :  { %2628 = vst [vmem:[#allocation15_spill] sm:$0xff] %v1586_v58  ;;  %v2652_v21 = vperm.slane %v2643_v47, 4  ;;  %v2654_v23 = vperm.slane %v2643_v47, 5  ;;  %v2656_v17 = vperm.slane %v2643_v47, 6  ;;  %v2658_v55 = vperm.slane %v2643_v47, 7 }
  0x8d   :  { %2630 = vst [vmem:[#allocation34_spill] sm:$0xff] %v1590_v52  ;;  %v1618_v46 = vadd.f32 %v300_v43, %v2644_v20  ;;  %v1622_v8 = vadd.f32 %v301_v7, %v2646_v10  ;;  %v1626_v50 = vadd.f32 %v302_v41, %v2648_v9  ;;  %v1630_v32 = vadd.f32 %v303_v3, %v2650_v29  ;;  %v2677_v10 = vld [vmem:[#allocation18_spill] sm:$0xff] }
  0x8e   :  { %2632 = vst [vmem:[#allocation35_spill] sm:$0xff] %v1594_v36  ;;  %v1634_v44 = vadd.f32 %v304_v45, %v2652_v21  ;;  %v1638_v43 = vadd.f32 %v305_v31, %v2654_v23  ;;  %v1642_v7 = vadd.f32 %v306_v30, %v2656_v17  ;;  %v1646_v41 = vadd.f32 %v307_v28, %v2658_v55 }
  0x8f   :  { %2634 = vst [vmem:[#allocation36_spill] sm:$0xff] %v1598_v60  ;;  %v2661_v48 = vperm.slane %v2660_v51, 0  ;;  %v2663_v34 = vperm.slane %v2660_v51, 1  ;;  %v2665_v33 = vperm.slane %v2660_v51, 2  ;;  %v2667_v53 = vperm.slane %v2660_v51, 3 }
  0x90   :  { %2636 = vst [vmem:[#allocation37_spill] sm:$0xff] %v1602_v40  ;;  %v2669_v2 = vperm.slane %v2660_v51, 4  ;;  %v2671_v1 = vperm.slane %v2660_v51, 5  ;;  %v2673_v47 = vperm.slane %v2660_v51, 6  ;;  %v2675_v20 = vperm.slane %v2660_v51, 7 }
  0x91   :  { %2638 = vst [vmem:[#allocation38_spill] sm:$0xff] %v1606_v35  ;;  %v1650_v3 = vadd.f32 %v308_v27, %v2661_v48  ;;  %v1654_v45 = vadd.f32 %v309_v26, %v2663_v34  ;;  %v1658_v31 = vadd.f32 %v310_v25, %v2665_v33  ;;  %v1662_v30 = vadd.f32 %v311_v12, %v2667_v53 }
  0x92   :  { %2640 = vst [vmem:[#allocation39_spill] sm:$0xff] %v1610_v42  ;;  %v1666_v28 = vadd.f32 %v312_v13, %v2669_v2  ;;  %v1670_v27 = vadd.f32 %v313_v16, %v2671_v1  ;;  %v1674_v26 = vadd.f32 %v314_v49, %v2673_v47  ;;  %v1678_v25 = vadd.f32 %v315_v54, %v2675_v20 }
  0x93   :  { %2642 = vst [vmem:[#allocation40_spill] sm:$0xff] %v1614_v37  ;;  %v2678_v9 = vperm.slane %v2677_v10, 0  ;;  %v2680_v29 = vperm.slane %v2677_v10, 1  ;;  %v2682_v21 = vperm.slane %v2677_v10, 2  ;;  %v2684_v23 = vperm.slane %v2677_v10, 3 }
  0x94   :  { %2645 = vst [vmem:[#allocation16_spill] sm:$0xff] %v1618_v46  ;;  %v2686_v17 = vperm.slane %v2677_v10, 4  ;;  %v2688_v55 = vperm.slane %v2677_v10, 5  ;;  %v2690_v51 = vperm.slane %v2677_v10, 6  ;;  %v2692_v48 = vperm.slane %v2677_v10, 7 }
  0x95   :  { %2647 = vst [vmem:[#allocation41_spill] sm:$0xff] %v1622_v8  ;;  %v1682_v12 = vadd.f32 %v316_v4, %v2678_v9  ;;  %v1686_v13 = vadd.f32 %v317_v57, %v2680_v29  ;;  %v1690_v16 = vadd.f32 %v318_v62, %v2682_v21  ;;  %v1694_v49 = vadd.f32 %v319_v59, %v2684_v23  ;;  %v2694_v59 = vld [vmem:[#allocation19_spill] sm:$0xff]  ;;  %v2699_v23 = vld [vmem:[#allocation24_spill] sm:$0xff] }
  0x96   :  { %2649 = vst [vmem:[#allocation42_spill] sm:$0xff] %v1626_v50  ;;  %v1698_v54 = vadd.f32 %v320_v63, %v2686_v17  ;;  %v1702_v4 = vadd.f32 %v321_v61, %v2688_v55  ;;  %v1706_v57 = vadd.f32 %v322_v0, %v2690_v51  ;;  %v1710_v62 = vadd.f32 %v323_v18, %v2692_v48  ;;  %v2695_v63 = vld [vmem:[#allocation20_spill] sm:$0xff]  ;;  %v2696_v61 = vld [vmem:[#allocation21_spill] sm:$0xff]  ;;  %v2697_v0 = vld [vmem:[#allocation22_spill] sm:$0xff] }
  0x97   :  { %2651 = vst [vmem:[#allocation43_spill] sm:$0xff] %v1630_v32  ;;  %v385_v34 = vperm.slane %v2611_v39, 5  ;;  %v386_v33 = vperm.slane %v2694_v59, 1  ;;  %v387_v53 = vperm.slane %v2694_v59, 5  ;;  %v388_v2 = vperm.slane %v2695_v63, 1  ;;  %v2698_v18 = vld [vmem:[#allocation23_spill] sm:$0xff] }
  0x98   :  { %2653 = vst [vmem:[#allocation44_spill] sm:$0xff] %v1634_v44  ;;  %v389_v1 = vperm.slane %v2695_v63, 5  ;;  %v390_v47 = vperm.slane %v2696_v61, 1  ;;  %v391_v20 = vperm.slane %v2696_v61, 5  ;;  %v392_v9 = vperm.slane %v2697_v0, 1  ;;  %v2700_v51 = vld [vmem:[#allocation25_spill] sm:$0xff] }
  0x99   :  { %2655 = vst [vmem:[#allocation45_spill] sm:$0xff] %v1638_v43  ;;  %v393_v10 = vperm.slane %v2697_v0, 5  ;;  %v394_v29 = vperm.slane %v2698_v18, 1  ;;  %v395_v21 = vperm.slane %v2698_v18, 5  ;;  %v396_v17 = vperm.slane %v2699_v23, 1  ;;  %v2701_v59 = vld [vmem:[#allocation26_spill] sm:$0xff] }
  0x9a   :  { %2657 = vst [vmem:[#allocation46_spill] sm:$0xff] %v1642_v7  ;;  %v397_v55 = vperm.slane %v2699_v23, 5  ;;  %v398_v48 = vperm.slane %v2700_v51, 1  ;;  %v399_v63 = vperm.slane %v2700_v51, 5  ;;  %v401_v61 = vperm.slane %v2701_v59, 5 }
  0x9b   :  { %2659 = vst [vmem:[#allocation47_spill] sm:$0xff] %v1646_v41  ;;  %v2706_v51 = vperm.slane %v1297_v5, 5  ;;  %v2712_v41 = vld [vmem:[#allocation8_spill] sm:$0xff]  ;;  %v465_v40 = vperm.slane %v385_v34, 1  ;;  %v467_v60 = vperm.slane %v387_v53, 1  ;;  %v470_v36 = vperm.slane %v390_v47, 1 }
  0x9c   :  { %2662 = vst [vmem:[#allocation17_spill] sm:$0xff] %v1650_v3  ;;  %v471_v52 = vperm.slane %v391_v20, 1  ;;  %v473_v58 = vperm.slane %v393_v10, 1  ;;  %v476_v24 = vperm.slane %v396_v17, 1  ;;  %v477_v22 = vperm.slane %v397_v55, 1 }
  0x9d   :  { %2664 = vst [vmem:[#allocation48_spill] sm:$0xff] %v1654_v45  ;;  %v478_v56 = vperm.slane %v398_v48, 1  ;;  %v481_v15 = vperm.slane %v401_v61, 1 }
  0x9e   :  { %2666 = vst [vmem:[#allocation49_spill] sm:$0xff] %v1658_v31 }
  0x9f   :  { %2668 = vst [vmem:[#allocation50_spill] sm:$0xff] %v1662_v30  ;;  %v2709_v30 = vld [vmem:[#allocation7_spill] sm:$0xff] }
  0xa0   :  { %2670 = vst [vmem:[#allocation51_spill] sm:$0xff] %v1666_v28  ;;  %v2708_v28 = vperm.slane %v1302_v6, 5  ;;  %v2710_v31 = vperm.slane %v2709_v30, 1 }
  0xa1   :  { %2672 = vst [vmem:[#allocation52_spill] sm:$0xff] %v1670_v27 }
  0xa2   :  { %2674 = vst [vmem:[#allocation53_spill] sm:$0xff] %v1674_v26  ;;  %v449_v26 = vperm.slane %v2706_v51, 1  ;;  %v452_v45 = vperm.slane %v2710_v31, 1 }
  0xa3   :  { %2676 = vst [vmem:[#allocation54_spill] sm:$0xff] %v1678_v25 }
  0xa4   :  { %2679 = vst [vmem:[#allocation18_spill] sm:$0xff] %v1682_v12  ;;  %v2705_v12 = vperm.slane %v1297_v5, 1  ;;  %v2715_v5 = vld [vmem:[#allocation9_spill] sm:$0xff] }
  0xa5   :  { %2681 = vst [vmem:[#allocation55_spill] sm:$0xff] %v1686_v13  ;;  %v2716_v51 = vperm.slane %v2715_v5, 1 }
  0xa6   :  { %2683 = vst [vmem:[#allocation56_spill] sm:$0xff] %v1690_v16  ;;  %v2704_v16 = vld [vmem:[#allocation29_spill] sm:$0xff]  ;;  %v448_v25 = vperm.slane %v2705_v12, 1  ;;  %v2714_v12 = vperm.slane %v2712_v41, 5 }
  0xa7   :  { %2685 = vst [vmem:[#allocation57_spill] sm:$0xff] %v1694_v49  ;;  %v406_v13 = vperm.slane %v2704_v16, 1  ;;  %v407_v23 = vperm.slane %v2704_v16, 5  ;;  %v2713_v16 = vperm.slane %v2712_v41, 1  ;;  %v456_v44 = vperm.slane %v2716_v51, 1  ;;  %v2724_v41 = vld [vmem:[#allocation12_spill] sm:$0xff] }
  0xa8   :  { %2687 = vst [vmem:[#allocation58_spill] sm:$0xff] %v1698_v54  ;;  %v2703_v54 = vld [vmem:[#allocation28_spill] sm:$0xff]  ;;  %v455_v43 = vperm.slane %v2714_v12, 1  ;;  %v2725_v12 = vperm.slane %v2724_v41, 1  ;;  %v2726_v51 = vperm.slane %v2724_v41, 5  ;;  %v479_v41 = vperm.slane %v399_v63, 1 }
  0xa9   :  { %2689 = vst [vmem:[#allocation59_spill] sm:$0xff] %v1702_v4  ;;  %v404_v49 = vperm.slane %v2703_v54, 1  ;;  %v405_v18 = vperm.slane %v2703_v54, 5  ;;  %v2711_v54 = vperm.slane %v2709_v30, 5  ;;  %v454_v7 = vperm.slane %v2713_v16, 1  ;;  %v2721_v30 = vld [vmem:[#allocation11_spill] sm:$0xff] }
  0xaa   :  { %2691 = vst [vmem:[#allocation60_spill] sm:$0xff] %v1706_v57  ;;  %v2702_v57 = vld [vmem:[#allocation27_spill] sm:$0xff]  ;;  %v2723_v16 = vperm.slane %v2721_v30, 5  ;;  %v462_v42 = vperm.slane %v2725_v12, 1  ;;  %v463_v35 = vperm.slane %v2726_v51, 1  ;;  %v366_v12 = vpop.permute.xlu0 %365  ;;  %v486_v53 = vperm.slane %v406_v13, 1 }
  0xab   :  { %2693 = vst [vmem:[#allocation61_spill] sm:$0xff] %v1710_v62  ;;  %v400_v62 = vperm.slane %v2701_v59, 1  ;;  %v402_v4 = vperm.slane %v2702_v57, 1  ;;  %v403_v0 = vperm.slane %v2702_v57, 5  ;;  %v2707_v59 = vperm.slane %v1302_v6, 1  ;;  %v2718_v6 = vld [vmem:[#allocation10_spill] sm:$0xff] }
  0xac   :  { %v451_v57 = vperm.slane %v2708_v28, 1  ;;  %v453_v3 = vperm.slane %v2711_v54, 1  ;;  %v2719_v28 = vperm.slane %v2718_v6, 1  ;;  %v2720_v31 = vperm.slane %v2718_v6, 5 }
  0xad   :  { %v450_v27 = vperm.slane %v2707_v59, 1  ;;  %v2717_v59 = vperm.slane %v2715_v5, 5  ;;  %v2722_v54 = vperm.slane %v2721_v30, 1  ;;  %v461_v37 = vperm.slane %v2723_v16, 1 }
  0xae   :  { %v458_v50 = vperm.slane %v2719_v28, 1  ;;  %v459_v8 = vperm.slane %v2720_v31, 1  ;;  %v466_v28 = vperm.slane %v386_v33, 1  ;;  %v468_v6 = vperm.slane %v388_v2, 1 }
  0xaf   :  { %v457_v32 = vperm.slane %v2717_v59, 1  ;;  %v460_v46 = vperm.slane %v2722_v54, 1  ;;  %v2727_v59 = vperm.slane %v2611_v39, 1  ;;  %v469_v31 = vperm.slane %v389_v1, 1 }
  0xb0   :  { %v472_v54 = vperm.slane %v392_v9, 1  ;;  %v474_v30 = vperm.slane %v394_v29, 1  ;;  %v475_v16 = vperm.slane %v395_v21, 1  ;;  %v480_v51 = vperm.slane %v400_v62, 1 }
  0xb1   :  { %v464_v5 = vperm.slane %v2727_v59, 1  ;;  %v482_v39 = vperm.slane %v402_v4, 1  ;;  %v483_v59 = vperm.slane %v403_v0, 1  ;;  %v484_v34 = vperm.slane %v404_v49, 1 }
  0xb2   :  { %v485_v33 = vperm.slane %v405_v18, 1  ;;  %v487_v2 = vperm.slane %v407_v23, 1  ;;  %v488_v1 = vmul.f32 %v448_v25, %v366_v12  ;;  %v489_v47 = vmul.f32 %v449_v26, %v366_v12 }
  0xb3   :  { %v490_v20 = vmul.f32 %v450_v27, %v366_v12  ;;  %v491_v9 = vmul.f32 %v451_v57, %v366_v12  ;;  %v492_v10 = vmul.f32 %v452_v45, %v366_v12  ;;  %v493_v29 = vmul.f32 %v453_v3, %v366_v12 }
  0xb4   :  { %v494_v21 = vmul.f32 %v454_v7, %v366_v12  ;;  %v495_v17 = vmul.f32 %v455_v43, %v366_v12  ;;  %v496_v55 = vmul.f32 %v456_v44, %v366_v12  ;;  %v497_v11 = vmul.f32 %v457_v32, %v366_v12 }
  0xb5   :  { %v498_v48 = vmul.f32 %v458_v50, %v366_v12  ;;  %v499_v63 = vmul.f32 %v459_v8, %v366_v12  ;;  %v500_v62 = vmul.f32 %v460_v46, %v366_v12  ;;  %v501_v61 = vmul.f32 %v461_v37, %v366_v12 }
  0xb6   :  { %v502_v4 = vmul.f32 %v462_v42, %v366_v12  ;;  %v503_v0 = vmul.f32 %v463_v35, %v366_v12  ;;  %v504_v49 = vmul.f32 %v464_v5, %v366_v12  ;;  %v505_v18 = vmul.f32 %v465_v40, %v366_v12 }
  0xb7   :  { %v506_v13 = vmul.f32 %v466_v28, %v366_v12  ;;  %v507_v23 = vmul.f32 %v467_v60, %v366_v12  ;;  %v508_v25 = vmul.f32 %v468_v6, %v366_v12  ;;  %v509_v26 = vmul.f32 %v469_v31, %v366_v12 }
  0xb8   :  { %v510_v27 = vmul.f32 %v470_v36, %v366_v12  ;;  %v511_v57 = vmul.f32 %v471_v52, %v366_v12  ;;  %v512_v45 = vmul.f32 %v472_v54, %v366_v12  ;;  %v513_v3 = vmul.f32 %v473_v58, %v366_v12 }
  0xb9   :  { %v514_v7 = vmul.f32 %v474_v30, %v366_v12  ;;  %v515_v43 = vmul.f32 %v475_v16, %v366_v12  ;;  %v516_v44 = vmul.f32 %v476_v24, %v366_v12  ;;  %v517_v32 = vmul.f32 %v477_v22, %v366_v12  ;;  %v2731_v22 = vld [vmem:[#allocation14_spill] sm:$0xff] }
  0xba   :  { %v518_v50 = vmul.f32 %v478_v56, %v366_v12  ;;  %v519_v8 = vmul.f32 %v479_v41, %v366_v12  ;;  %v520_v46 = vmul.f32 %v480_v51, %v366_v12  ;;  %v521_v37 = vmul.f32 %v481_v15, %v366_v12  ;;  %v2733_v24 = vld [vmem:[#allocation30_spill] sm:$0xff]  ;;  %v2737_v41 = vld [vmem:[#allocation32_spill] sm:$0xff] }
  0xbb   :  { %v522_v42 = vmul.f32 %v482_v39, %v366_v12  ;;  %v523_v35 = vmul.f32 %v483_v59, %v366_v12  ;;  %v524_v5 = vmul.f32 %v484_v34, %v366_v12  ;;  %v525_v40 = vmul.f32 %v485_v33, %v366_v12  ;;  %v2735_v39 = vld [vmem:[#allocation31_spill] sm:$0xff]  ;;  %v2747_v59 = vld [vmem:[#allocation36_spill] sm:$0xff]  ;;  %v2749_v33 = vld [vmem:[#allocation37_spill] sm:$0xff] }
  0xbc   :  { %v526_v28 = vmul.f32 %v486_v53, %v366_v12  ;;  %v527_v60 = vmul.f32 %v487_v2, %v366_v12  ;;  %v1770_v6 = vadd.f32 %v488_v1, %v1554_v19  ;;  %v1773_v52 = vadd.f32 %v489_v47, %v1558_v38  ;;  %v2739_v19 = vld [vmem:[#allocation33_spill] sm:$0xff]  ;;  %v2741_v38 = vld [vmem:[#allocation15_spill] sm:$0xff]  ;;  %v2751_v2 = vld [vmem:[#allocation38_spill] sm:$0xff] }
  0xbd   :  { %v1776_v58 = vadd.f32 %v490_v20, %v1562_v14  ;;  %v1779_v56 = vadd.f32 %v491_v9, %v2731_v22  ;;  %v1782_v15 = vadd.f32 %v492_v10, %v2733_v24  ;;  %v1785_v36 = vadd.f32 %v493_v29, %v2735_v39  ;;  %v2743_v14 = vld [vmem:[#allocation34_spill] sm:$0xff]  ;;  %v2745_v12 = vld [vmem:[#allocation35_spill] sm:$0xff]  ;;  %v2755_v9 = vld [vmem:[#allocation40_spill] sm:$0xff] }
  0xbe   :  { %2728 = vst [vmem:[#allocation62_spill] sm:$0xff] %v1770_v6  ;;  %v1788_v30 = vadd.f32 %v494_v21, %v2737_v41  ;;  %v1791_v31 = vadd.f32 %v495_v17, %v2739_v19  ;;  %v1794_v54 = vadd.f32 %v496_v55, %v2741_v38  ;;  %v1797_v16 = vadd.f32 %v497_v11, %v2743_v14  ;;  %v2753_v47 = vld [vmem:[#allocation39_spill] sm:$0xff]  ;;  %v2757_v11 = vld [vmem:[#allocation16_spill] sm:$0xff]  ;;  %v2759_v21 = vld [vmem:[#allocation41_spill] sm:$0xff] }
  0xbf   :  { %2729 = vst [vmem:[#allocation63_spill] sm:$0xff] %v1773_v52  ;;  %v1800_v51 = vadd.f32 %v498_v48, %v2745_v12  ;;  %v1803_v34 = vadd.f32 %v499_v63, %v2747_v59  ;;  %v1806_v53 = vadd.f32 %v500_v62, %v2749_v33  ;;  %v1809_v1 = vadd.f32 %v501_v61, %v2751_v2  ;;  %v2761_v55 = vld [vmem:[#allocation42_spill] sm:$0xff]  ;;  %v2763_v63 = vld [vmem:[#allocation43_spill] sm:$0xff]  ;;  %v2765_v61 = vld [vmem:[#allocation44_spill] sm:$0xff] }
  0xc0   :  { %2730 = vst [vmem:[#allocation64_spill] sm:$0xff] %v1776_v58  ;;  %v1812_v20 = vadd.f32 %v502_v4, %v2753_v47  ;;  %v1815_v10 = vadd.f32 %v503_v0, %v2755_v9  ;;  %v1818_v29 = vadd.f32 %v504_v49, %v2757_v11  ;;  %v1821_v17 = vadd.f32 %v505_v18, %v2759_v21  ;;  %v2767_v4 = vld [vmem:[#allocation45_spill] sm:$0xff]  ;;  %v2769_v0 = vld [vmem:[#allocation46_spill] sm:$0xff]  ;;  %v2771_v49 = vld [vmem:[#allocation47_spill] sm:$0xff] }
  0xc1   :  { %2732 = vst [vmem:[#allocation14_spill] sm:$0xff] %v1779_v56  ;;  %v1824_v48 = vadd.f32 %v506_v13, %v2761_v55  ;;  %v1827_v62 = vadd.f32 %v507_v23, %v2763_v63  ;;  %v1830_v22 = vadd.f32 %v508_v25, %v2765_v61  ;;  %v1833_v24 = vadd.f32 %v509_v26, %v2767_v4  ;;  %v2773_v18 = vld [vmem:[#allocation17_spill] sm:$0xff]  ;;  %v2775_v13 = vld [vmem:[#allocation48_spill] sm:$0xff]  ;;  %v2779_v25 = vld [vmem:[#allocation50_spill] sm:$0xff] }
  0xc2   :  { %2734 = vst [vmem:[#allocation30_spill] sm:$0xff] %v1782_v15  ;;  %v1836_v39 = vadd.f32 %v510_v27, %v2769_v0  ;;  %v1839_v41 = vadd.f32 %v511_v57, %v2771_v49  ;;  %v1842_v19 = vadd.f32 %v512_v45, %v2773_v18  ;;  %v1845_v38 = vadd.f32 %v513_v3, %v2775_v13  ;;  %v2777_v23 = vld [vmem:[#allocation49_spill] sm:$0xff]  ;;  %v2781_v26 = vld [vmem:[#allocation51_spill] sm:$0xff]  ;;  %v2783_v27 = vld [vmem:[#allocation52_spill] sm:$0xff] }
  0xc3   :  { %2736 = vst [vmem:[#allocation31_spill] sm:$0xff] %v1785_v36  ;;  %v1848_v14 = vadd.f32 %v514_v7, %v2777_v23  ;;  %v1851_v12 = vadd.f32 %v515_v43, %v2779_v25  ;;  %v1854_v59 = vadd.f32 %v516_v44, %v2781_v26  ;;  %v1857_v33 = vadd.f32 %v517_v32, %v2783_v27  ;;  %v2785_v57 = vld [vmem:[#allocation53_spill] sm:$0xff]  ;;  %v2787_v45 = vld [vmem:[#allocation54_spill] sm:$0xff]  ;;  %v2791_v7 = vld [vmem:[#allocation55_spill] sm:$0xff] }
  0xc4   :  { %2738 = vst [vmem:[#allocation32_spill] sm:$0xff] %v1788_v30  ;;  %v1860_v2 = vadd.f32 %v518_v50, %v2785_v57  ;;  %v1863_v47 = vadd.f32 %v519_v8, %v2787_v45  ;;  %v2789_v3 = vld [vmem:[#allocation18_spill] sm:$0xff]  ;;  %v1869_v11 = vadd.f32 %v521_v37, %v2791_v7  ;;  %v2793_v43 = vld [vmem:[#allocation56_spill] sm:$0xff]  ;;  %v2795_v44 = vld [vmem:[#allocation57_spill] sm:$0xff] }
  0xc5   :  { %2740 = vst [vmem:[#allocation33_spill] sm:$0xff] %v1791_v31  ;;  %v1866_v9 = vadd.f32 %v520_v46, %v2789_v3  ;;  %v1872_v21 = vadd.f32 %v522_v42, %v2793_v43  ;;  %v1875_v55 = vadd.f32 %v523_v35, %v2795_v44  ;;  %v2797_v32 = vld [vmem:[#allocation58_spill] sm:$0xff]  ;;  %v2799_v50 = vld [vmem:[#allocation59_spill] sm:$0xff]  ;;  %v2801_v8 = vld [vmem:[#allocation60_spill] sm:$0xff] }
  0xc6   :  { %2742 = vst [vmem:[#allocation15_spill] sm:$0xff] %v1794_v54  ;;  %v1878_v63 = vadd.f32 %v524_v5, %v2797_v32  ;;  %v1881_v61 = vadd.f32 %v525_v40, %v2799_v50  ;;  %v1884_v4 = vadd.f32 %v526_v28, %v2801_v8  ;;  %v2803_v46 = vld [vmem:[#allocation61_spill] sm:$0xff]  ;;  %v2806_v18 = vld [vmem:[#allocation6_spill] sm:$0xff]  ;;  %v2807_v23 = vld [vmem:[#allocation7_spill] sm:$0xff] }
  0xc7   :  { %2744 = vst [vmem:[#allocation34_spill] sm:$0xff] %v1797_v16  ;;  %v1887_v0 = vadd.f32 %v527_v60, %v2803_v46  ;;  %v2805_v37 = vld [vmem:[#allocation5_spill] sm:$0xff]  ;;  %v574_v13 = vperm.slane %v2806_v18, 2  ;;  %v575_v35 = vperm.slane %v2806_v18, 6  ;;  %v576_v5 = vperm.slane %v2807_v23, 2  ;;  %v2808_v40 = vld [vmem:[#allocation8_spill] sm:$0xff] }
  0xc8   :  { %2746 = vst [vmem:[#allocation35_spill] sm:$0xff] %v1800_v51  ;;  %v572_v49 = vperm.slane %v2805_v37, 2  ;;  %v573_v42 = vperm.slane %v2805_v37, 6  ;;  %v577_v25 = vperm.slane %v2807_v23, 6  ;;  %v578_v26 = vperm.slane %v2808_v40, 2  ;;  %v2809_v27 = vld [vmem:[#allocation9_spill] sm:$0xff] }
  0xc9   :  { %2748 = vst [vmem:[#allocation36_spill] sm:$0xff] %v1803_v34  ;;  %v579_v28 = vperm.slane %v2808_v40, 6  ;;  %v580_v57 = vperm.slane %v2809_v27, 2  ;;  %v581_v60 = vperm.slane %v2809_v27, 6  ;;  %v2810_v45 = vld [vmem:[#allocation10_spill] sm:$0xff]  ;;  %v2811_v43 = vld [vmem:[#allocation11_spill] sm:$0xff] }
  0xca   :  { %2750 = vst [vmem:[#allocation37_spill] sm:$0xff] %v1806_v53  ;;  %v582_v3 = vperm.slane %v2810_v45, 2  ;;  %v583_v7 = vperm.slane %v2810_v45, 6  ;;  %v584_v44 = vperm.slane %v2811_v43, 2  ;;  %v585_v32 = vperm.slane %v2811_v43, 6  ;;  %v2812_v50 = vld [vmem:[#allocation12_spill] sm:$0xff] }
  0xcb   :  { %2752 = vst [vmem:[#allocation38_spill] sm:$0xff] %v1809_v1  ;;  %v586_v8 = vperm.slane %v2812_v50, 2  ;;  %v587_v46 = vperm.slane %v2812_v50, 6  ;;  %v2824_v34 = vld [vmem:[#allocation29_spill] sm:$0xff]  ;;  %v652_v54 = vperm.slane %v572_v49, 2  ;;  %v653_v31 = vperm.slane %v573_v42, 2 }
  0xcc   :  { %2754 = vst [vmem:[#allocation39_spill] sm:$0xff] %v1812_v20  ;;  %v2823_v20 = vld [vmem:[#allocation28_spill] sm:$0xff]  ;;  %v610_v51 = vperm.slane %v2824_v34, 2  ;;  %v611_v16 = vperm.slane %v2824_v34, 6  ;;  %v654_v30 = vperm.slane %v574_v13, 2  ;;  %v655_v36 = vperm.slane %v575_v35, 2 }
  0xcd   :  { %2756 = vst [vmem:[#allocation40_spill] sm:$0xff] %v1815_v10  ;;  %v608_v1 = vperm.slane %v2823_v20, 2  ;;  %v609_v53 = vperm.slane %v2823_v20, 6  ;;  %v656_v15 = vperm.slane %v576_v5, 2  ;;  %v657_v56 = vperm.slane %v577_v25, 2 }
  0xce   :  { %2758 = vst [vmem:[#allocation16_spill] sm:$0xff] %v1818_v29  ;;  %v658_v58 = vperm.slane %v578_v26, 2  ;;  %v659_v52 = vperm.slane %v579_v28, 2  ;;  %v660_v6 = vperm.slane %v580_v57, 2  ;;  %v667_v20 = vperm.slane %v587_v46, 2  ;;  %v570_v26 = vpop.permute.xlu1 %569 }
  0xcf   :  { %2760 = vst [vmem:[#allocation41_spill] sm:$0xff] %v1821_v17  ;;  %v2822_v17 = vld [vmem:[#allocation27_spill] sm:$0xff] }
  0xd0   :  { %2762 = vst [vmem:[#allocation42_spill] sm:$0xff] %v1824_v48  ;;  %v606_v29 = vperm.slane %v2822_v17, 2  ;;  %v607_v10 = vperm.slane %v2822_v17, 6  ;;  %v663_v17 = vperm.slane %v583_v7, 2 }
  0xd1   :  { %2764 = vst [vmem:[#allocation43_spill] sm:$0xff] %v1827_v62 }
  0xd2   :  { %2766 = vst [vmem:[#allocation44_spill] sm:$0xff] %v1830_v22  ;;  %v2821_v22 = vld [vmem:[#allocation26_spill] sm:$0xff]  ;;  %v686_v46 = vperm.slane %v606_v29, 2  ;;  %v1943_v29 = vmul.f32 %v659_v52, %v570_v26 }
  0xd3   :  { %2768 = vst [vmem:[#allocation45_spill] sm:$0xff] %v1833_v24  ;;  %v604_v62 = vperm.slane %v2821_v22, 2  ;;  %v605_v48 = vperm.slane %v2821_v22, 6  ;;  %v661_v22 = vperm.slane %v581_v60, 2 }
  0xd4   :  { %2770 = vst [vmem:[#allocation46_spill] sm:$0xff] %v1836_v39 }
  0xd5   :  { %2772 = vst [vmem:[#allocation47_spill] sm:$0xff] %v1839_v41  ;;  %v2820_v41 = vld [vmem:[#allocation25_spill] sm:$0xff] }
  0xd6   :  { %2774 = vst [vmem:[#allocation17_spill] sm:$0xff] %v1842_v19  ;;  %v602_v39 = vperm.slane %v2820_v41, 2  ;;  %v603_v24 = vperm.slane %v2820_v41, 6  ;;  %v662_v41 = vperm.slane %v582_v3, 2 }
  0xd7   :  { %2776 = vst [vmem:[#allocation48_spill] sm:$0xff] %v1845_v38 }
  0xd8   :  { %2778 = vst [vmem:[#allocation49_spill] sm:$0xff] %v1848_v14  ;;  %v2819_v14 = vld [vmem:[#allocation24_spill] sm:$0xff]  ;;  %v682_v7 = vperm.slane %v602_v39, 2  ;;  %v1939_v39 = vmul.f32 %v657_v56, %v570_v26  ;;  %v1959_v56 = vmul.f32 %v667_v20, %v570_v26 }
  0xd9   :  { %2780 = vst [vmem:[#allocation50_spill] sm:$0xff] %v1851_v12  ;;  %v600_v38 = vperm.slane %v2819_v14, 2  ;;  %v601_v19 = vperm.slane %v2819_v14, 6  ;;  %v664_v14 = vperm.slane %v584_v44, 2  ;;  %v683_v44 = vperm.slane %v603_v24, 2 }
  0xda   :  { %2782 = vst [vmem:[#allocation51_spill] sm:$0xff] %v1854_v59  ;;  %v2818_v59 = vld [vmem:[#allocation23_spill] sm:$0xff] }
  0xdb   :  { %2784 = vst [vmem:[#allocation52_spill] sm:$0xff] %v1857_v33  ;;  %v598_v12 = vperm.slane %v2818_v59, 2  ;;  %v680_v60 = vperm.slane %v600_v38, 2  ;;  %v681_v3 = vperm.slane %v601_v19, 2  ;;  %v1937_v38 = vmul.f32 %v656_v15, %v570_v26 }
  0xdc   :  { %2786 = vst [vmem:[#allocation53_spill] sm:$0xff] %v1860_v2  ;;  %v2817_v2 = vld [vmem:[#allocation22_spill] sm:$0xff] }
  0xdd   :  { %2788 = vst [vmem:[#allocation54_spill] sm:$0xff] %v1863_v47  ;;  %v596_v33 = vperm.slane %v2817_v2, 2  ;;  %v597_v50 = vperm.slane %v2817_v2, 6  ;;  %v666_v2 = vperm.slane %v586_v8, 2  ;;  %v678_v28 = vperm.slane %v598_v12, 2 }
  0xde   :  { %2790 = vst [vmem:[#allocation18_spill] sm:$0xff] %v1866_v9  ;;  %v2816_v9 = vld [vmem:[#allocation21_spill] sm:$0xff]  ;;  %v685_v8 = vperm.slane %v605_v48, 2  ;;  %v1935_v12 = vmul.f32 %v655_v36, %v570_v26  ;;  %v1985_v19 = vmul.f32 %v680_v60, %v570_v26  ;;  %v1234_v60 = vld [vmem:[%s2488_s1 + $0x18] sm:$0xff] }
  0xdf   :  { %2792 = vst [vmem:[#allocation55_spill] sm:$0xff] %v1869_v11  ;;  %v594_v47 = vperm.slane %v2816_v9, 2  ;;  %v595_v43 = vperm.slane %v2816_v9, 6  ;;  %v676_v5 = vperm.slane %v596_v33, 2  ;;  %v677_v25 = vperm.slane %v597_v50, 2 }
  0xe0   :  { %2794 = vst [vmem:[#allocation56_spill] sm:$0xff] %v1872_v21  ;;  %v2815_v21 = vld [vmem:[#allocation20_spill] sm:$0xff]  ;;  %v1933_v33 = vmul.f32 %v654_v30, %v570_v26  ;;  %v1953_v30 = vmul.f32 %v664_v14, %v570_v26  ;;  %v1957_v15 = vmul.f32 %v666_v2, %v570_v26  ;;  %v1981_v24 = vmul.f32 %v678_v28, %v570_v26 }
  0xe1   :  { %2796 = vst [vmem:[#allocation57_spill] sm:$0xff] %v1875_v55  ;;  %v592_v11 = vperm.slane %v2815_v21, 2  ;;  %v593_v45 = vperm.slane %v2815_v21, 6  ;;  %v674_v13 = vperm.slane %v594_v47, 2  ;;  %v675_v35 = vperm.slane %v595_v43, 2 }
  0xe2   :  { %2798 = vst [vmem:[#allocation58_spill] sm:$0xff] %v1878_v63  ;;  %v2814_v63 = vld [vmem:[#allocation19_spill] sm:$0xff]  ;;  %v1931_v47 = vmul.f32 %v653_v31, %v570_v26  ;;  %v1951_v31 = vmul.f32 %v663_v17, %v570_v26  ;;  %v1979_v20 = vmul.f32 %v677_v25, %v570_v26  ;;  %v1989_v14 = vmul.f32 %v682_v7, %v570_v26 }
  0xe3   :  { %2800 = vst [vmem:[#allocation59_spill] sm:$0xff] %v1881_v61  ;;  %v590_v55 = vperm.slane %v2814_v63, 2  ;;  %v591_v27 = vperm.slane %v2814_v63, 6  ;;  %v672_v49 = vperm.slane %v592_v11, 2  ;;  %v673_v42 = vperm.slane %v593_v45, 2 }
  0xe4   :  { %2802 = vst [vmem:[#allocation60_spill] sm:$0xff] %v1884_v4  ;;  %v691_v11 = vperm.slane %v611_v16, 2  ;;  %v1929_v45 = vmul.f32 %v652_v54, %v570_v26  ;;  %v1949_v54 = vmul.f32 %v662_v41, %v570_v26  ;;  %v1973_v17 = vmul.f32 %v674_v13, %v570_v26 }
  0xe5   :  { %2804 = vst [vmem:[#allocation61_spill] sm:$0xff] %v1887_v0  ;;  %v2813_v0 = vld [vmem:[#allocation13_spill] sm:$0xff]  ;;  %v670_v63 = vperm.slane %v590_v55, 2  ;;  %v671_v34 = vperm.slane %v591_v27, 2  ;;  %v689_v55 = vperm.slane %v609_v53, 2  ;;  %v690_v27 = vperm.slane %v610_v51, 2 }
  0xe6   :  { %v588_v4 = vperm.slane %v2813_v0, 2  ;;  %v589_v61 = vperm.slane %v2813_v0, 6  ;;  %v599_v0 = vperm.slane %v2818_v59, 6  ;;  %v665_v59 = vperm.slane %v585_v32, 2  ;;  %2826 = vst [vmem:[#allocation6_spill] sm:$0xff] %v1957_v15 }
  0xe7   :  { %v684_v32 = vperm.slane %v604_v62, 2  ;;  %v1941_v62 = vmul.f32 %v658_v58, %v570_v26  ;;  %v1947_v51 = vmul.f32 %v661_v22, %v570_v26  ;;  %2827 = vst [vmem:[#allocation7_spill] sm:$0xff] %v1959_v56  ;;  %v1967_v16 = vmul.f32 %v671_v34, %v570_v26 }
  0xe8   :  { %v668_v9 = vperm.slane %v588_v4, 2  ;;  %v669_v21 = vperm.slane %v589_v61, 2  ;;  %v679_v57 = vperm.slane %v599_v0, 2  ;;  %v687_v4 = vperm.slane %v607_v10, 2  ;;  %2834 = vst [vmem:[#allocation65_spill] sm:$0xff] %v1973_v17  ;;  %v2861_v17 = vld [vmem:[#allocation28_spill] sm:$0xff] }
  0xe9   :  { %v688_v61 = vperm.slane %v608_v1, 2  ;;  %v1945_v1 = vmul.f32 %v660_v6, %v570_v26  ;;  %v1955_v36 = vmul.f32 %v665_v59, %v570_v26  ;;  %v1965_v6 = vmul.f32 %v670_v63, %v570_v26  ;;  %2831 = vst [vmem:[#allocation11_spill] sm:$0xff] %v1967_v16 }
  0xea   :  { %v1961_v58 = vmul.f32 %v668_v9, %v570_v26  ;;  %v1963_v52 = vmul.f32 %v669_v21, %v570_v26  ;;  %v1969_v53 = vmul.f32 %v672_v49, %v570_v26  ;;  %v1971_v10 = vmul.f32 %v673_v42, %v570_v26  ;;  %2837 = vst [vmem:[#allocation68_spill] sm:$0xff] %v1979_v20 }
  0xeb   :  { %2825 = vst [vmem:[#allocation5_spill] sm:$0xff] %v1955_v36  ;;  %v1975_v48 = vmul.f32 %v675_v35, %v570_v26  ;;  %v1977_v22 = vmul.f32 %v676_v5, %v570_v26  ;;  %v1983_v41 = vmul.f32 %v679_v57, %v570_v26  ;;  %v1987_v34 = vmul.f32 %v681_v3, %v570_v26  ;;  %v1235_v3 = vld [vmem:[%s2488_s1 + $0x20] sm:$0xff] }
  0xec   :  { %2828 = vst [vmem:[#allocation8_spill] sm:$0xff] %v1961_v58  ;;  %v1991_v59 = vmul.f32 %v683_v44, %v570_v26  ;;  %v1993_v2 = vmul.f32 %v684_v32, %v570_v26  ;;  %v1995_v9 = vmul.f32 %v685_v8, %v570_v26  ;;  %v1997_v21 = vmul.f32 %v686_v46, %v570_v26  ;;  %v1238_v46 = vld [vmem:[%s2488_s1 + $0x38] sm:$0xff] }
  0xed   :  { %2829 = vst [vmem:[#allocation9_spill] sm:$0xff] %v1963_v52  ;;  %v1999_v63 = vmul.f32 %v687_v4, %v570_v26  ;;  %v2001_v43 = vmul.f32 %v688_v61, %v570_v26  ;;  %v2003_v50 = vmul.f32 %v689_v55, %v570_v26  ;;  %v2005_v0 = vmul.f32 %v690_v27, %v570_v26  ;;  %v1239_v55 = vld [vmem:[%s2488_s1 + $0x40] sm:$0xff] }
  0xee   :  { %2830 = vst [vmem:[#allocation10_spill] sm:$0xff] %v1965_v6  ;;  %v2007_v49 = vmul.f32 %v691_v11, %v570_v26  ;;  %v776_v42 = vperm.slane %v2805_v37, 3  ;;  %v777_v13 = vperm.slane %v2805_v37, 7  ;;  %v778_v35 = vperm.slane %v2806_v18, 3 }
  0xef   :  { %2832 = vst [vmem:[#allocation12_spill] sm:$0xff] %v1969_v53  ;;  %v779_v5 = vperm.slane %v2806_v18, 7  ;;  %v780_v25 = vperm.slane %v2807_v23, 3  ;;  %v781_v28 = vperm.slane %v2807_v23, 7  ;;  %v782_v57 = vperm.slane %v2808_v40, 3  ;;  %v1236_v18 = vld [vmem:[%s2488_s1 + $0x28] sm:$0xff] }
  0xf0   :  { %2833 = vst [vmem:[#allocation13_spill] sm:$0xff] %v1971_v10  ;;  %v783_v26 = vperm.slane %v1234_v60, 7  ;;  %v784_v37 = vperm.slane %v1235_v3, 3  ;;  %v785_v7 = vperm.slane %v1235_v3, 7  ;;  %v786_v44 = vperm.slane %v1236_v18, 3  ;;  %v1237_v23 = vld [vmem:[%s2488_s1 + $0x30] sm:$0xff] }
  0xf1   :  { %2835 = vst [vmem:[#allocation66_spill] sm:$0xff] %v1975_v48  ;;  %v787_v32 = vperm.slane %v1236_v18, 7  ;;  %v788_v40 = vperm.slane %v1237_v23, 3  ;;  %v789_v8 = vperm.slane %v1237_v23, 7  ;;  %v790_v4 = vperm.slane %v1238_v46, 3  ;;  %v2852_v60 = vld [vmem:[#allocation19_spill] sm:$0xff] }
  0xf2   :  { %2836 = vst [vmem:[#allocation67_spill] sm:$0xff] %v1977_v22  ;;  %v791_v61 = vperm.slane %v1238_v46, 7  ;;  %v792_v27 = vperm.slane %v1239_v55, 3  ;;  %v793_v11 = vperm.slane %v1239_v55, 7  ;;  %v794_v3 = vperm.slane %v2852_v60, 3  ;;  %v2860_v22 = vld [vmem:[#allocation27_spill] sm:$0xff] }
  0xf3   :  { %2838 = vst [vmem:[#allocation69_spill] sm:$0xff] %v1981_v24  ;;  %v795_v18 = vperm.slane %v2852_v60, 7  ;;  %v2859_v24 = vld [vmem:[#allocation26_spill] sm:$0xff]  ;;  %v810_v48 = vperm.slane %v2860_v22, 3  ;;  %v812_v10 = vperm.slane %v2861_v17, 3  ;;  %v2862_v53 = vld [vmem:[#allocation29_spill] sm:$0xff] }
  0xf4   :  { %2839 = vst [vmem:[#allocation70_spill] sm:$0xff] %v1983_v41  ;;  %v808_v20 = vperm.slane %v2859_v24, 3  ;;  %v814_v16 = vperm.slane %v2862_v53, 3  ;;  %v2056_v6 = vperm.slane %v776_v42, 3  ;;  %v2058_v52 = vperm.slane %v777_v13, 3 }
  0xf5   :  { %2840 = vst [vmem:[#allocation71_spill] sm:$0xff] %v1985_v19  ;;  %v2858_v19 = vld [vmem:[#allocation25_spill] sm:$0xff]  ;;  %v2062_v58 = vperm.slane %v779_v5, 3  ;;  %v2066_v56 = vperm.slane %v781_v28, 3  ;;  %v2070_v15 = vperm.slane %v783_v26, 3  ;;  %v2074_v36 = vperm.slane %v785_v7, 3 }
  0xf6   :  { %2841 = vst [vmem:[#allocation72_spill] sm:$0xff] %v1987_v34  ;;  %v806_v41 = vperm.slane %v2858_v19, 3  ;;  %v2078_v42 = vperm.slane %v787_v32, 3  ;;  %v2080_v13 = vperm.slane %v788_v40, 3  ;;  %v2084_v5 = vperm.slane %v790_v4, 3 }
  0xf7   :  { %2842 = vst [vmem:[#allocation73_spill] sm:$0xff] %v1989_v14  ;;  %v2857_v14 = vld [vmem:[#allocation24_spill] sm:$0xff]  ;;  %v2088_v28 = vperm.slane %v792_v27, 3  ;;  %v2092_v26 = vperm.slane %v794_v3, 3 }
  0xf8   :  { %2843 = vst [vmem:[#allocation74_spill] sm:$0xff] %v1991_v59  ;;  %v804_v34 = vperm.slane %v2857_v14, 3  ;;  %v805_v60 = vperm.slane %v2857_v14, 7  ;;  %v815_v14 = vperm.slane %v2862_v53, 7  ;;  %v2076_v53 = vperm.slane %v786_v44, 3 }
  0xf9   :  { %2844 = vst [vmem:[#allocation75_spill] sm:$0xff] %v1993_v2  ;;  %v2856_v2 = vld [vmem:[#allocation23_spill] sm:$0xff] }
  0xfa   :  { %2845 = vst [vmem:[#allocation76_spill] sm:$0xff] %v1995_v9  ;;  %v802_v59 = vperm.slane %v2856_v2, 3  ;;  %v803_v55 = vperm.slane %v2856_v2, 7  ;;  %v813_v2 = vperm.slane %v2861_v17, 7  ;;  %v2072_v17 = vperm.slane %v784_v37, 3 }
  0xfb   :  { %2846 = vst [vmem:[#allocation77_spill] sm:$0xff] %v1997_v21  ;;  %v2855_v21 = vld [vmem:[#allocation22_spill] sm:$0xff]  ;;  %v2094_v37 = vperm.slane %v795_v18, 3  ;;  %v2114_v3 = vperm.slane %v805_v60, 3 }
  0xfc   :  { %2847 = vst [vmem:[#allocation78_spill] sm:$0xff] %v1999_v63  ;;  %v800_v46 = vperm.slane %v2855_v21, 3  ;;  %v801_v9 = vperm.slane %v2855_v21, 7  ;;  %v811_v21 = vperm.slane %v2860_v22, 7  ;;  %v2068_v22 = vperm.slane %v782_v57, 3 }
  0xfd   :  { %2848 = vst [vmem:[#allocation79_spill] sm:$0xff] %v2001_v43  ;;  %v2090_v57 = vperm.slane %v793_v11, 3  ;;  %v2110_v27 = vperm.slane %v803_v55, 3  ;;  %v2112_v11 = vperm.slane %v804_v34, 3  ;;  %v2132_v34 = vperm.slane %v814_v16, 3 }
  0xfe   :  { %2849 = vst [vmem:[#allocation80_spill] sm:$0xff] %v2003_v50  ;;  %v2854_v50 = vld [vmem:[#allocation21_spill] sm:$0xff]  ;;  %v2106_v4 = vperm.slane %v801_v9, 3  ;;  %v2126_v9 = vperm.slane %v811_v21, 3  ;;  %v2134_v55 = vperm.slane %v815_v14, 3  ;;  %v2878_v14 = vld [vmem:[#allocation32_spill] sm:$0xff] }
  0xff   :  { %2850 = vst [vmem:[#allocation81_spill] sm:$0xff] %v2005_v0  ;;  %v798_v43 = vperm.slane %v2854_v50, 3  ;;  %v799_v63 = vperm.slane %v2854_v50, 7  ;;  %v809_v50 = vperm.slane %v2859_v24, 7  ;;  %v2064_v24 = vperm.slane %v780_v25, 3 }
 0x100   :  { %2851 = vst [vmem:[#allocation82_spill] sm:$0xff] %v2007_v49  ;;  %v2853_v49 = vld [vmem:[#allocation20_spill] sm:$0xff]  ;;  %v2086_v25 = vperm.slane %v791_v61, 3  ;;  %v2108_v61 = vperm.slane %v802_v59, 3  ;;  %v2128_v59 = vperm.slane %v812_v10, 3  ;;  %v2876_v10 = vld [vmem:[#allocation30_spill] sm:$0xff] }
 0x101   :  { %v796_v0 = vperm.slane %v2853_v49, 3  ;;  %v797_v23 = vperm.slane %v2853_v49, 7  ;;  %v807_v49 = vperm.slane %v2858_v19, 7  ;;  %v2060_v19 = vperm.slane %v778_v35, 3  ;;  %2867 = vst [vmem:[#allocation23_spill] sm:$0xff] %v2126_v9  ;;  %v2896_v9 = vld [vmem:[#allocation9_spill] sm:$0xff] }
 0x102   :  { %v2082_v35 = vperm.slane %v789_v8, 3  ;;  %v2100_v32 = vperm.slane %v798_v43, 3  ;;  %v2102_v40 = vperm.slane %v799_v63, 3  ;;  %v2104_v8 = vperm.slane %v800_v46, 3  ;;  %2868 = vst [vmem:[#allocation24_spill] sm:$0xff] %v2128_v59  ;;  %v2893_v59 = vld [vmem:[#allocation8_spill] sm:$0xff] }
 0x103   :  { %v2096_v7 = vperm.slane %v796_v0, 3  ;;  %v2098_v44 = vperm.slane %v797_v23, 3  ;;  %v2116_v0 = vperm.slane %v806_v41, 3  ;;  %v2118_v18 = vperm.slane %v807_v49, 3  ;;  %2870 = vst [vmem:[#allocation26_spill] sm:$0xff] %v2132_v34  ;;  %v2872_v41 = vld [vmem:[#allocation62_spill] sm:$0xff] }
 0x104   :  { %v2120_v43 = vperm.slane %v808_v20, 3  ;;  %v2122_v63 = vperm.slane %v809_v50, 3  ;;  %v2124_v23 = vperm.slane %v810_v48, 3  ;;  %v2130_v46 = vperm.slane %v813_v2, 3  ;;  %2871 = vst [vmem:[#allocation27_spill] sm:$0xff] %v2134_v55  ;;  %v2873_v49 = vld [vmem:[#allocation63_spill] sm:$0xff] }
 0x105   :  { %2863 = vst [vmem:[#allocation19_spill] sm:$0xff] %v2118_v18  ;;  %v732_v60 = vadd.f32 %v1929_v45, %v2872_v41  ;;  %v733_v20 = vadd.f32 %v1931_v47, %v2873_v49  ;;  %v2874_v50 = vld [vmem:[#allocation64_spill] sm:$0xff]  ;;  %v736_v2 = vadd.f32 %v1937_v38, %v2876_v10  ;;  %v738_v55 = vadd.f32 %v1941_v62, %v2878_v14  ;;  %v2879_v34 = vld [vmem:[#allocation33_spill] sm:$0xff]  ;;  %v2880_v47 = vld [vmem:[#allocation15_spill] sm:$0xff] }
 0x106   :  { %2864 = vst [vmem:[#allocation20_spill] sm:$0xff] %v2120_v43  ;;  %v734_v48 = vadd.f32 %v1933_v33, %v2874_v50  ;;  %v2152_v45 = vadd.f32 %v1943_v29, %v2879_v34  ;;  %v2156_v41 = vadd.f32 %v1945_v1, %v2880_v47  ;;  %v2881_v33 = vld [vmem:[#allocation34_spill] sm:$0xff]  ;;  %v2882_v38 = vld [vmem:[#allocation35_spill] sm:$0xff]  ;;  %v2884_v29 = vld [vmem:[#allocation37_spill] sm:$0xff] }
 0x107   :  { %2865 = vst [vmem:[#allocation21_spill] sm:$0xff] %v2122_v63  ;;  %v2174_v34 = vadd.f32 %v1953_v30, %v2884_v29  ;;  %v2885_v1 = vld [vmem:[#allocation38_spill] sm:$0xff]  ;;  %v2886_v49 = vld [vmem:[#allocation5_spill] sm:$0xff]  ;;  %v2889_v47 = vld [vmem:[#allocation40_spill] sm:$0xff] }
 0x108   :  { %2866 = vst [vmem:[#allocation22_spill] sm:$0xff] %v2124_v23  ;;  %v2875_v23 = vld [vmem:[#allocation14_spill] sm:$0xff]  ;;  %v2178_v50 = vadd.f32 %v2886_v49, %v2885_v1  ;;  %v2901_v49 = vld [vmem:[#allocation43_spill] sm:$0xff]  ;;  %v2904_v18 = vld [vmem:[#allocation12_spill] sm:$0xff] }
 0x109   :  { %2869 = vst [vmem:[#allocation25_spill] sm:$0xff] %v2130_v46  ;;  %v735_v21 = vadd.f32 %v1935_v12, %v2875_v23  ;;  %v2877_v46 = vld [vmem:[#allocation31_spill] sm:$0xff]  ;;  %v2160_v12 = vadd.f32 %v1947_v51, %v2881_v33  ;;  %v2162_v23 = vpop.permute.xlu1 %773  ;;  %v2888_v10 = vld [vmem:[#allocation6_spill] sm:$0xff] }
 0x10a   :  { %v737_v16 = vadd.f32 %v1939_v39, %v2877_v46  ;;  %v2166_v39 = vadd.f32 %v1949_v54, %v2882_v38  ;;  %v2883_v46 = vld [vmem:[#allocation36_spill] sm:$0xff]  ;;  %v2887_v51 = vld [vmem:[#allocation39_spill] sm:$0xff]  ;;  %v2898_v29 = vld [vmem:[#allocation42_spill] sm:$0xff] }
 0x10b   :  { %v2170_v62 = vadd.f32 %v1951_v31, %v2883_v46  ;;  %v2182_v14 = vadd.f32 %v2888_v10, %v2887_v51  ;;  %v2890_v33 = vld [vmem:[#allocation7_spill] sm:$0xff]  ;;  %v2892_v38 = vld [vmem:[#allocation16_spill] sm:$0xff]  ;;  %v2895_v46 = vld [vmem:[#allocation41_spill] sm:$0xff] }
 0x10c   :  { %v2186_v54 = vadd.f32 %v2890_v33, %v2889_v47  ;;  %v2190_v31 = vadd.f32 %v2893_v59, %v2892_v38  ;;  %v2194_v30 = vadd.f32 %v2896_v9, %v2895_v46  ;;  %v2899_v63 = vld [vmem:[#allocation10_spill] sm:$0xff]  ;;  %v2902_v43 = vld [vmem:[#allocation11_spill] sm:$0xff]  ;;  %v2903_v10 = vld [vmem:[#allocation44_spill] sm:$0xff] }
 0x10d   :  { %v2198_v1 = vadd.f32 %v2899_v63, %v2898_v29  ;;  %v2202_v51 = vadd.f32 %v2902_v43, %v2901_v49  ;;  %v2206_v47 = vadd.f32 %v2904_v18, %v2903_v10  ;;  %v2906_v33 = vld [vmem:[#allocation45_spill] sm:$0xff]  ;;  %v2909_v38 = vld [vmem:[#allocation46_spill] sm:$0xff]  ;;  %v2912_v46 = vld [vmem:[#allocation47_spill] sm:$0xff]  ;;  %v896_v18 = vmul.f32 %v2056_v6, %v2162_v23 }
 0x10e   :  { %2891 = vst [vmem:[#allocation28_spill] sm:$0xff] %v2186_v54  ;;  %v2907_v54 = vld [vmem:[#allocation13_spill] sm:$0xff]  ;;  %v2918_v49 = vld [vmem:[#allocation48_spill] sm:$0xff] }
 0x10f   :  { %2894 = vst [vmem:[#allocation29_spill] sm:$0xff] %v2190_v31  ;;  %v2210_v59 = vadd.f32 %v2907_v54, %v2906_v33  ;;  %v2910_v31 = vld [vmem:[#allocation65_spill] sm:$0xff]  ;;  %v2919_v10 = vld [vmem:[#allocation68_spill] sm:$0xff] }
 0x110   :  { %2897 = vst [vmem:[#allocation62_spill] sm:$0xff] %v2194_v30  ;;  %v2214_v9 = vadd.f32 %v2910_v31, %v2909_v38  ;;  %v2913_v30 = vld [vmem:[#allocation66_spill] sm:$0xff]  ;;  %v2915_v29 = vld [vmem:[#allocation17_spill] sm:$0xff]  ;;  %v2930_v6 = vld [vmem:[#allocation52_spill] sm:$0xff] }
 0x111   :  { %2900 = vst [vmem:[#allocation63_spill] sm:$0xff] %v2198_v1  ;;  %v2218_v63 = vadd.f32 %v2913_v30, %v2912_v46  ;;  %v2916_v1 = vld [vmem:[#allocation67_spill] sm:$0xff]  ;;  %v2921_v54 = vld [vmem:[#allocation49_spill] sm:$0xff]  ;;  %v2924_v31 = vld [vmem:[#allocation50_spill] sm:$0xff]  ;;  %v897_v30 = vmul.f32 %v2058_v52, %v2162_v23 }
 0x112   :  { %2905 = vst [vmem:[#allocation64_spill] sm:$0xff] %v2206_v47  ;;  %v2222_v43 = vadd.f32 %v2916_v1, %v2915_v29  ;;  %v2228_v47 = vadd.f32 %v2919_v10, %v2918_v49  ;;  %v2922_v33 = vld [vmem:[#allocation69_spill] sm:$0xff]  ;;  %v2925_v38 = vld [vmem:[#allocation70_spill] sm:$0xff]  ;;  %v2927_v1 = vld [vmem:[#allocation51_spill] sm:$0xff] }
 0x113   :  { %2908 = vst [vmem:[#allocation14_spill] sm:$0xff] %v2210_v59  ;;  %v2232_v59 = vadd.f32 %v2922_v33, %v2921_v54  ;;  %v2928_v46 = vld [vmem:[#allocation71_spill] sm:$0xff]  ;;  %v2933_v49 = vld [vmem:[#allocation53_spill] sm:$0xff]  ;;  %v898_v54 = vmul.f32 %v2060_v19, %v2162_v23  ;;  %v2936_v33 = vld [vmem:[#allocation54_spill] sm:$0xff] }
 0x114   :  { %2911 = vst [vmem:[#allocation30_spill] sm:$0xff] %v2214_v9  ;;  %v2236_v9 = vadd.f32 %v2925_v38, %v2924_v31  ;;  %v2242_v29 = vadd.f32 %v2928_v46, %v2927_v1  ;;  %v2934_v10 = vld [vmem:[#allocation73_spill] sm:$0xff]  ;;  %v2937_v31 = vld [vmem:[#allocation74_spill] sm:$0xff]  ;;  %v2941_v1 = vld [vmem:[#allocation55_spill] sm:$0xff] }
 0x115   :  { %2914 = vst [vmem:[#allocation31_spill] sm:$0xff] %v2218_v63  ;;  %v2256_v38 = vadd.f32 %v2937_v31, %v2936_v33  ;;  %v2938_v52 = vld [vmem:[#allocation18_spill] sm:$0xff]  ;;  %v2942_v46 = vld [vmem:[#allocation76_spill] sm:$0xff]  ;;  %v2947_v19 = vld [vmem:[#allocation57_spill] sm:$0xff]  ;;  %v900_v33 = vmul.f32 %v2064_v24, %v2162_v23  ;;  %v902_v24 = vmul.f32 %v2068_v22, %v2162_v23  ;;  %v908_v22 = vmul.f32 %v2080_v13, %v2162_v23 }
 0x116   :  { %2917 = vst [vmem:[#allocation32_spill] sm:$0xff] %v2222_v43  ;;  %v2931_v43 = vld [vmem:[#allocation72_spill] sm:$0xff]  ;;  %v2949_v31 = vld [vmem:[#allocation58_spill] sm:$0xff]  ;;  %v913_v13 = vmul.f32 %v2090_v57, %v2162_v23  ;;  %v2328_v57 = vmul.f32 %v2100_v32, %v2162_v23  ;;  %v2342_v32 = vmul.f32 %v2106_v4, %v2162_v23 }
 0x117   :  { %2920 = vst [vmem:[#allocation33_spill] sm:$0xff] %v2228_v47  ;;  %v2246_v63 = vadd.f32 %v2931_v43, %v2930_v6  ;;  %v2250_v47 = vadd.f32 %v2934_v10, %v2933_v49  ;;  %v899_v43 = vmul.f32 %v2062_v58, %v2162_v23  ;;  %v2944_v6 = vld [vmem:[#allocation56_spill] sm:$0xff]  ;;  %v2945_v49 = vld [vmem:[#allocation77_spill] sm:$0xff]  ;;  %v901_v58 = vmul.f32 %v2066_v56, %v2162_v23 }
 0x118   :  { %2923 = vst [vmem:[#allocation15_spill] sm:$0xff] %v2232_v59  ;;  %v2270_v10 = vadd.f32 %v2945_v49, %v2944_v6  ;;  %v937_v6 = vadd.f32 %v897_v30, %v733_v20  ;;  %v2953_v49 = vld [vmem:[#allocation60_spill] sm:$0xff]  ;;  %v906_v56 = vmul.f32 %v2076_v53, %v2162_v23  ;;  %v907_v30 = vmul.f32 %v2078_v42, %v2162_v23 }
 0x119   :  { %2926 = vst [vmem:[#allocation34_spill] sm:$0xff] %v2236_v9  ;;  %v2939_v9 = vld [vmem:[#allocation75_spill] sm:$0xff]  ;;  %v939_v20 = vadd.f32 %v899_v43, %v735_v21  ;;  %v912_v53 = vmul.f32 %v2088_v28, %v2162_v23  ;;  %v942_v42 = vadd.f32 %v902_v24, %v738_v55  ;;  %v916_v28 = vmul.f32 %v2096_v7, %v2162_v23 }
 0x11a   :  { %2929 = vst [vmem:[#allocation35_spill] sm:$0xff] %v2242_v29  ;;  %v2260_v59 = vadd.f32 %v2939_v9, %v2938_v52  ;;  %v2264_v29 = vadd.f32 %v2942_v46, %v2941_v1  ;;  %v936_v9 = vadd.f32 %v896_v18, %v732_v60  ;;  %v2950_v52 = vld [vmem:[#allocation79_spill] sm:$0xff]  ;;  %v2952_v46 = vld [vmem:[#allocation80_spill] sm:$0xff]  ;;  %v903_v60 = vmul.f32 %v2070_v15, %v2162_v23 }
 0x11b   :  { %2932 = vst [vmem:[#allocation36_spill] sm:$0xff] %v2246_v63  ;;  %v2951_v1 = vld [vmem:[#allocation59_spill] sm:$0xff]  ;;  %v938_v18 = vadd.f32 %v898_v54, %v734_v48  ;;  %v909_v15 = vmul.f32 %v2082_v35, %v2162_v23  ;;  %v941_v48 = vadd.f32 %v901_v58, %v737_v16  ;;  %v914_v35 = vmul.f32 %v2092_v26, %v2162_v23 }
 0x11c   :  { %2935 = vst [vmem:[#allocation37_spill] sm:$0xff] %v2250_v47  ;;  %v2948_v47 = vld [vmem:[#allocation78_spill] sm:$0xff]  ;;  %1154 = vtanh.f32 %v936_v9  ;;  %v917_v21 = vmul.f32 %v2098_v44, %v2162_v23  ;;  %v2337_v7 = vmul.f32 %v2104_v8, %v2162_v23  ;;  %v946_v16 = vadd.f32 %v906_v56, %v2166_v39 }
 0x11d   :  { %2940 = vst [vmem:[#allocation38_spill] sm:$0xff] %v2260_v59  ;;  %v2274_v63 = vadd.f32 %v2948_v47, %v2947_v19  ;;  %v2280_v59 = vadd.f32 %v2950_v52, %v2949_v31  ;;  %v904_v19 = vmul.f32 %v2072_v17, %v2162_v23  ;;  %v905_v31 = vmul.f32 %v2074_v36, %v2162_v23  ;;  %v2955_v52 = vld [vmem:[#allocation19_spill] sm:$0xff] }
 0x11e   :  { %2943 = vst [vmem:[#allocation5_spill] sm:$0xff] %v2264_v29  ;;  %v2284_v29 = vadd.f32 %v2952_v46, %v2951_v1  ;;  %v910_v17 = vmul.f32 %v2084_v5, %v2162_v23  ;;  %1156 = vtanh.f32 %v937_v6  ;;  %v911_v36 = vmul.f32 %v2086_v25, %v2162_v23  ;;  %v2958_v6 = vld [vmem:[#allocation29_spill] sm:$0xff] }
 0x11f   :  { %2946 = vst [vmem:[#allocation39_spill] sm:$0xff] %v2270_v10  ;;  %v2954_v10 = vld [vmem:[#allocation81_spill] sm:$0xff]  ;;  %1158 = vtanh.f32 %v938_v18  ;;  %v943_v5 = vadd.f32 %v903_v60, %v2152_v45  ;;  %v915_v25 = vmul.f32 %v2094_v37, %v2162_v23  ;;  %v944_v55 = vadd.f32 %v904_v19, %v2156_v41  ;;  %v2959_v18 = vld [vmem:[#allocation62_spill] sm:$0xff]  ;;  %v2960_v19 = vld [vmem:[#allocation63_spill] sm:$0xff] }
 0x120   :  { %v2290_v47 = vadd.f32 %v2954_v10, %v2953_v49  ;;  %v940_v10 = vadd.f32 %v900_v33, %v736_v2  ;;  %1160 = vtanh.f32 %v939_v20  ;;  %v945_v26 = vadd.f32 %v905_v31, %v2160_v12 }
 0x121   :  { %v2333_v37 = vmul.f32 %v2102_v40, %v2162_v23  ;;  %v2346_v45 = vmul.f32 %v2108_v61, %v2162_v23  ;;  %v947_v41 = vadd.f32 %v907_v30, %v2170_v62  ;;  %v2351_v8 = vmul.f32 %v2110_v27, %v2162_v23 }
 0x122   :  { %1162 = vtanh.f32 %v940_v10  ;;  %v1155_v2 = vpop.eup %1154  ;;  %v2355_v12 = vmul.f32 %v2112_v11, %v2162_v23  ;;  %v948_v39 = vadd.f32 %v908_v22, %v2174_v34  ;;  %v2360_v61 = vmul.f32 %v2114_v3, %v2162_v23  ;;  %v2956_v3 = vld [vmem:[#allocation28_spill] sm:$0xff] }
 0x123   :  { %1164 = vtanh.f32 %v941_v48  ;;  %v949_v62 = vadd.f32 %v909_v15, %v2178_v50  ;;  %v950_v54 = vadd.f32 %v910_v17, %v2182_v14  ;;  %v2366_v34 = vmul.f32 %v2116_v0, %v2162_v23  ;;  %v2957_v14 = vld [vmem:[#allocation20_spill] sm:$0xff] }
 0x124   :  { %1166 = vtanh.f32 %v942_v42  ;;  %v1157_v44 = vpop.eup %1156  ;;  %v2370_v1 = vmul.f32 %v2955_v52, %v2162_v23  ;;  %v951_v46 = vadd.f32 %v911_v36, %v2956_v3  ;;  %v2375_v58 = vmul.f32 %v2957_v14, %v2162_v23  ;;  %v2961_v42 = vld [vmem:[#allocation64_spill] sm:$0xff] }
 0x125   :  { %1168 = vtanh.f32 %v943_v5  ;;  %v1159_v40 = vpop.eup %1158  ;;  %v1056_v27 = vrot.slane %v1157_v44, 6  ;;  %v952_v49 = vadd.f32 %v912_v53, %v2958_v6  ;;  %v953_v0 = vadd.f32 %v913_v13, %v2959_v18  ;;  %v2963_v44 = vld [vmem:[#allocation30_spill] sm:$0xff] }
 0x126   :  { %1170 = vtanh.f32 %v944_v55  ;;  %v1161_v4 = vpop.eup %1160  ;;  %v1057_v33 = vrot.slane %v1159_v40, 4  ;;  %v954_v31 = vadd.f32 %v914_v35, %v2960_v19  ;;  %v955_v17 = vadd.f32 %v915_v25, %v2202_v51  ;;  %v2971_v19 = vld [vmem:[#allocation24_spill] sm:$0xff] }
 0x127   :  { %1172 = vtanh.f32 %v945_v26  ;;  %v1058_v9 = vrot.slane %v1161_v4, 2  ;;  %v1087_v22 = vsel %vm1086_vm0, %v1155_v2, %v1056_v27  ;;  %v956_v13 = vadd.f32 %v916_v28, %v2961_v42  ;;  %v2962_v26 = vld [vmem:[#allocation14_spill] sm:$0xff]  ;;  %v2964_v4 = vld [vmem:[#allocation21_spill] sm:$0xff] }
 0x128   :  { %v1163_v43 = vpop.eup %1162  ;;  %1174 = vtanh.f32 %v946_v16  ;;  %v957_v2 = vadd.f32 %v917_v21, %v2962_v26  ;;  %v929_v21 = vmul.f32 %v2964_v4, %v2162_v23  ;;  %v2976_v26 = vld [vmem:[#allocation25_spill] sm:$0xff] }
 0x129   :  { %v1165_v11 = vpop.eup %1164  ;;  %1176 = vtanh.f32 %v947_v41  ;;  %v1089_v10 = vsel %vm1088_vm1, %v1057_v33, %v1058_v9  ;;  %v958_v41 = vadd.f32 %v2328_v57, %v2963_v44  ;;  %v2967_v33 = vld [vmem:[#allocation32_spill] sm:$0xff] }
 0x12a   :  { %v1167_v50 = vpop.eup %1166  ;;  %1178 = vtanh.f32 %v948_v39  ;;  %v1059_v24 = vrot.slane %v1165_v11, 6  ;;  %v1091_v48 = vsel %vm1090_vm2, %v1087_v22, %v1089_v10  ;;  %v960_v9 = vadd.f32 %v2337_v7, %v2967_v33 }
 0x12b   :  { %v1169_v60 = vpop.eup %1168  ;;  %1180 = vtanh.f32 %v949_v62  ;;  %v1060_v56 = vrot.slane %v1167_v50, 4  ;;  %1129 = vst [vmem:[%s2490_s3] sm:$0xff] %v1091_v48  ;;  %v2965_v62 = vld [vmem:[#allocation22_spill] sm:$0xff]  ;;  %v2974_v48 = vld [vmem:[#allocation36_spill] sm:$0xff] }
 0x12c   :  { %v1171_v20 = vpop.eup %1170  ;;  %1182 = vtanh.f32 %v950_v54  ;;  %v1061_v30 = vrot.slane %v1169_v60, 2  ;;  %v1092_v36 = vsel %vm1086_vm0, %v1163_v43, %v1059_v24  ;;  %v930_v54 = vmul.f32 %v2965_v62, %v2162_v23  ;;  %v2966_v43 = vld [vmem:[#allocation31_spill] sm:$0xff] }
 0x12d   :  { %v1173_v15 = vpop.eup %1172  ;;  %1184 = vtanh.f32 %v951_v46  ;;  %v959_v27 = vadd.f32 %v2333_v37, %v2966_v43  ;;  %v2968_v46 = vld [vmem:[#allocation33_spill] sm:$0xff]  ;;  %v2969_v24 = vld [vmem:[#allocation15_spill] sm:$0xff] }
 0x12e   :  { %v1175_v53 = vpop.eup %1174  ;;  %1186 = vtanh.f32 %v952_v49  ;;  %v1062_v35 = vrot.slane %v1173_v15, 6  ;;  %v1093_v5 = vsel %vm1088_vm1, %v1060_v56, %v1061_v30  ;;  %v961_v50 = vadd.f32 %v2342_v32, %v2968_v46  ;;  %v2972_v56 = vld [vmem:[#allocation34_spill] sm:$0xff]  ;;  %v2973_v30 = vld [vmem:[#allocation35_spill] sm:$0xff] }
 0x12f   :  { %v1177_v55 = vpop.eup %1176  ;;  %1188 = vtanh.f32 %v953_v0  ;;  %v1063_v51 = vrot.slane %v1175_v53, 4  ;;  %v1094_v25 = vsel %vm1090_vm2, %v1092_v36, %v1093_v5  ;;  %v962_v37 = vadd.f32 %v2346_v45, %v2969_v24  ;;  %v2970_v0 = vld [vmem:[#allocation23_spill] sm:$0xff] }
 0x130   :  { %v1179_v16 = vpop.eup %1178  ;;  %1190 = vtanh.f32 %v954_v31  ;;  %v1064_v28 = vrot.slane %v1177_v55, 2  ;;  %v1095_v40 = vsel %vm1086_vm0, %v1171_v20, %v1062_v35  ;;  %1130 = vst [vmem:[%s2490_s3 + $0x8] sm:$0xff] %v1094_v25  ;;  %v931_v32 = vmul.f32 %v2970_v0, %v2162_v23  ;;  %v2975_v35 = vld [vmem:[#allocation37_spill] sm:$0xff] }
 0x131   :  { %v1181_v39 = vpop.eup %1180  ;;  %1192 = vtanh.f32 %v955_v17  ;;  %v932_v31 = vmul.f32 %v2971_v19, %v2162_v23  ;;  %v963_v20 = vadd.f32 %v2351_v8, %v2972_v56  ;;  %v964_v22 = vadd.f32 %v2355_v12, %v2973_v30 }
 0x132   :  { %v1183_v57 = vpop.eup %1182  ;;  %1194 = vtanh.f32 %v956_v13  ;;  %v1065_v11 = vrot.slane %v1181_v39, 6  ;;  %v1096_v52 = vsel %vm1088_vm1, %v1063_v51, %v1064_v28  ;;  %v965_v36 = vadd.f32 %v2360_v61, %v2974_v48  ;;  %v2979_v39 = vld [vmem:[#allocation5_spill] sm:$0xff] }
 0x133   :  { %v1185_v3 = vpop.eup %1184  ;;  %1196 = vtanh.f32 %v957_v2  ;;  %v1066_v14 = vrot.slane %v1183_v57, 4  ;;  %v1097_v6 = vsel %vm1090_vm2, %v1095_v40, %v1096_v52  ;;  %v966_v8 = vadd.f32 %v2366_v34, %v2975_v35  ;;  %v2977_v2 = vld [vmem:[#allocation26_spill] sm:$0xff]  ;;  %v2980_v57 = vld [vmem:[#allocation39_spill] sm:$0xff] }
 0x134   :  { %v1187_v49 = vpop.eup %1186  ;;  %1198 = vtanh.f32 %v958_v41  ;;  %v1067_v60 = vrot.slane %v1185_v3, 2  ;;  %v1098_v7 = vsel %vm1086_vm0, %v1179_v16, %v1065_v11  ;;  %1131 = vst [vmem:[%s2490_s3 + $0x10] sm:$0xff] %v1097_v6  ;;  %v933_v61 = vmul.f32 %v2976_v26, %v2162_v23  ;;  %v2978_v16 = vld [vmem:[#allocation38_spill] sm:$0xff] }
 0x135   :  { %v1189_v18 = vpop.eup %1188  ;;  %1200 = vtanh.f32 %v959_v27  ;;  %v934_v51 = vmul.f32 %v2977_v2, %v2162_v23  ;;  %v967_v25 = vadd.f32 %v2370_v1, %v2256_v38  ;;  %v968_v44 = vadd.f32 %v2375_v58, %v2978_v16  ;;  %v2982_v11 = vld [vmem:[#allocation82_spill] sm:$0xff] }
 0x136   :  { %v1191_v45 = vpop.eup %1190  ;;  %1202 = vtanh.f32 %v960_v9  ;;  %v1068_v10 = vrot.slane %v1189_v18, 6  ;;  %v1099_v15 = vsel %vm1088_vm1, %v1066_v14, %v1067_v60  ;;  %v969_v4 = vadd.f32 %v929_v21, %v2979_v39  ;;  %v2981_v9 = vld [vmem:[#allocation61_spill] sm:$0xff]  ;;  %v2983_v21 = vld [vmem:[#allocation27_spill] sm:$0xff] }
 0x137   :  { %v1193_v17 = vpop.eup %1192  ;;  %1204 = vtanh.f32 %v961_v50  ;;  %v1069_v53 = vrot.slane %v1191_v45, 4  ;;  %v1100_v42 = vsel %vm1090_vm2, %v1098_v7, %v1099_v15  ;;  %v970_v33 = vadd.f32 %v930_v54, %v2980_v57 }
 0x138   :  { %v1195_v13 = vpop.eup %1194  ;;  %1206 = vtanh.f32 %v962_v37  ;;  %v1070_v5 = vrot.slane %v1193_v17, 2  ;;  %v1101_v12 = vsel %vm1086_vm0, %v1187_v49, %v1068_v10  ;;  %1132 = vst [vmem:[%s2490_s3 + $0x18] sm:$0xff] %v1100_v42  ;;  %v771_v52 = vadd.f32 %v2982_v11, %v2981_v9 }
 0x139   :  { %v1197_v55 = vpop.eup %1196  ;;  %1208 = vtanh.f32 %v963_v20  ;;  %v935_v3 = vmul.f32 %v2983_v21, %v2162_v23  ;;  %v971_v46 = vadd.f32 %v931_v32, %v2274_v63  ;;  %v972_v54 = vadd.f32 %v932_v31, %v2280_v59 }
 0x13a   :  { %v1199_v34 = vpop.eup %1198  ;;  %1210 = vtanh.f32 %v964_v22  ;;  %v1071_v41 = vrot.slane %v1197_v55, 6  ;;  %v1102_v28 = vsel %vm1088_vm1, %v1069_v53, %v1070_v5  ;;  %v973_v24 = vadd.f32 %v933_v61, %v2284_v29 }
 0x13b   :  { %v1201_v40 = vpop.eup %1200  ;;  %1212 = vtanh.f32 %v965_v36  ;;  %v1072_v62 = vrot.slane %v1199_v34, 4  ;;  %v1103_v43 = vsel %vm1090_vm2, %v1101_v12, %v1102_v28  ;;  %v974_v23 = vadd.f32 %v934_v51, %v2290_v47 }
 0x13c   :  { %v1203_v27 = vpop.eup %1202  ;;  %1214 = vtanh.f32 %v966_v8  ;;  %v1073_v38 = vrot.slane %v1201_v40, 2  ;;  %v1104_v1 = vsel %vm1086_vm0, %v1195_v13, %v1071_v41  ;;  %1133 = vst [vmem:[%s2490_s3 + $0x20] sm:$0xff] %v1103_v43  ;;  %v975_v0 = vadd.f32 %v935_v3, %v771_v52 }
 0x13d   :  { %v1205_v58 = vpop.eup %1204  ;;  %1216 = vtanh.f32 %v967_v25 }
 0x13e   :  { %v1207_v50 = vpop.eup %1206  ;;  %1218 = vtanh.f32 %v968_v44  ;;  %v1074_v14 = vrot.slane %v1205_v58, 6  ;;  %v1105_v6 = vsel %vm1088_vm1, %v1072_v62, %v1073_v38 }
 0x13f   :  { %v1209_v49 = vpop.eup %1208  ;;  %1220 = vtanh.f32 %v969_v4  ;;  %v1075_v37 = vrot.slane %v1207_v50, 4  ;;  %v1106_v60 = vsel %vm1090_vm2, %v1104_v1, %v1105_v6 }
 0x140   :  { %v1211_v7 = vpop.eup %1210  ;;  %1222 = vtanh.f32 %v970_v33  ;;  %v1076_v63 = vrot.slane %v1209_v49, 2  ;;  %v1107_v18 = vsel %vm1086_vm0, %v1203_v27, %v1074_v14  ;;  %1134 = vst [vmem:[%s2490_s3 + $0x28] sm:$0xff] %v1106_v60 }
 0x141   :  { %v1213_v59 = vpop.eup %1212  ;;  %1224 = vtanh.f32 %v971_v46 }
 0x142   :  { %v1215_v32 = vpop.eup %1214  ;;  %1226 = vtanh.f32 %v972_v54  ;;  %v1077_v29 = vrot.slane %v1213_v59, 6  ;;  %v1108_v19 = vsel %vm1088_vm1, %v1075_v37, %v1076_v63 }
 0x143   :  { %v1217_v31 = vpop.eup %1216  ;;  %1228 = vtanh.f32 %v973_v24  ;;  %v1078_v56 = vrot.slane %v1215_v32, 4  ;;  %v1109_v47 = vsel %vm1090_vm2, %v1107_v18, %v1108_v19 }
 0x144   :  { %v1219_v20 = vpop.eup %1218  ;;  %1230 = vtanh.f32 %v974_v23  ;;  %v1079_v45 = vrot.slane %v1217_v31, 2  ;;  %v1110_v30 = vsel %vm1086_vm0, %v1211_v7, %v1077_v29  ;;  %1135 = vst [vmem:[%s2490_s3 + $0x30] sm:$0xff] %v1109_v47 }
 0x145   :  { %v1221_v22 = vpop.eup %1220  ;;  %1232 = vtanh.f32 %v975_v0 }
 0x146   :  { %v1223_v10 = vpop.eup %1222  ;;  %v1080_v15 = vrot.slane %v1221_v22, 6  ;;  %v1111_v17 = vsel %vm1088_vm1, %v1078_v56, %v1079_v45 }
 0x147   :  { %v1225_v48 = vpop.eup %1224  ;;  %v1081_v36 = vrot.slane %v1223_v10, 4  ;;  %v1112_v53 = vsel %vm1090_vm2, %v1110_v30, %v1111_v17 }
 0x148   :  { %v1227_v42 = vpop.eup %1226  ;;  %v1082_v13 = vrot.slane %v1225_v48, 2  ;;  %v1113_v35 = vsel %vm1086_vm0, %v1219_v20, %v1080_v15  ;;  %1136 = vst [vmem:[%s2490_s3 + $0x38] sm:$0xff] %v1112_v53 }
 0x149   :  { %v1229_v8 = vpop.eup %1228 }
 0x14a   :  { %v1231_v5 = vpop.eup %1230  ;;  %v1083_v12 = vrot.slane %v1229_v8, 6  ;;  %v1114_v55 = vsel %vm1088_vm1, %v1081_v36, %v1082_v13 }
 0x14b   :  { %v1233_v26 = vpop.eup %1232  ;;  %v1084_v61 = vrot.slane %v1231_v5, 4  ;;  %v1115_v2 = vsel %vm1090_vm2, %v1113_v35, %v1114_v55 }
 0x14c   :  { %v1085_v51 = vrot.slane %v1233_v26, 2  ;;  %v1116_v25 = vsel %vm1086_vm0, %v1227_v42, %v1083_v12  ;;  %1137 = vst [vmem:[%s2490_s3 + $0x40] sm:$0xff] %v1115_v2 }
 0x14e   :  { %v1117_v34 = vsel %vm1088_vm1, %v1084_v61, %v1085_v51 }
 0x14f   :  { %v1118_v16 = vsel %vm1090_vm2, %v1116_v25, %v1117_v34 }
 0x150   :  { %1138 = vst [vmem:[%s2490_s3 + $0x48] sm:$0xff] %v1118_v16 }
 0x151   :  { %1143 = vsyncpa [#allocation3], 1 }

// kernel: critic_forward.8
= control target key start
LH: loop header
LB: loop body
LE: loop exit
PB: predicated region body
PF: predicated region fallthrough
CT: control target
= control target key end

     0   :  { %s1104_s12 = smov 0   ;;  %s1106_s13 = smov 0   ;;  %s1386_s0 = inlined_call_operand.vmem [shape: bf16[8,192], index: 0, kind: input, shape index: {}]   ;;  %s1387_s1 = inlined_call_operand.vmem [shape: bf16[192,1024], index: 1, kind: input, shape index: {}]   ;;  %s1388_s2 = inlined_call_operand.vmem [shape: f32[8,1], index: 2, kind: input, shape index: {}]   ;;  %s1389_s3 = inlined_call_operand.vmem [shape: f32[8,1024], index: 3, kind: output, shape index: {}]  }
   0x1   :  { %s1108_s14 = smov 0  }
   0x2 LB: > { %s775_s15 = sadd.s32 4294967295, %s1081_s14   ;;  %s1121_s16 = sadd.s32 1, %s1081_s14   ;;  %s1081_s14 = sphi %s1108_s14, %s1392_s14   ;;  %s1077_s13 = sphi %s1106_s13, %s1391_s13   ;;  %s1073_s12 = sphi %s1104_s12, %s1390_s12  }
   0x3   : > { %s38_s17 = ssub.s32 %s1081_s14, %s1121_s16  ;;  %s41_s18 = sadd.s32 1, %s1077_s13 }
   0x4   : > { %p39_p0 = scmp.eq.s32.totalorder %s38_s17, 0  ;;  %p48_p1 = scmp.ne.s32.totalorder %s1077_s13, %s1073_s12 }
   0x5   : > { %p49_p2 = scmp.eq.s32.totalorder %s1081_s14, 0  ;;  %p778_p4 = scmp.ge.s32.totalorder %s1081_s14, 2 }
   0x6   : > { %s1130_s19 = scalar_select %p39_p0, %s1077_s13, %s41_s18  }
   0x7   : > { %p50_p3 = por %p49_p2, %p48_p1  ;;  %127 = sbr.rel (%p778_p4) target bundleno = 64 (0x40), region = 24 }
   0xc   : > { %130 = sbr.rel (!%p50_p3) target bundleno = 64 (0x40), region = 28  ;;  %s132_s20 = sand.u32 (%p50_p3), 1, %s1077_s13  }
   0xd   : > { %s982_s21 = sshll.u32 (%p50_p3), %s1081_s14, 4  ;;  %s1031_s22 = smul.u32 (%p50_p3), 384, %s132_s20 }
   0xe   : > { %s1138_s25 = scalar_lea.vmem (%p50_p3), %s1387_s1, %s982_s21 }
   0xf   : > { %v150_v0 = vld [vmem:[%s1138_s25] sm:$0xff] (%p50_p3)  ;;  %v152_v1 = vld [vmem:[%s1138_s25 + $0x8] sm:$0xff] (%p50_p3)  ;;  %s1143_s26 = scalar_lea.vmem (%p50_p3), [#allocation2], %s1031_s22 }
  0x10   : > { %v154_v2 = vld [vmem:[%s1138_s25 + $0x20] sm:$0xff] (%p50_p3)  ;;  %151 = vst [vmem:[%s1143_s26] sm:$0xff] (%p50_p3), %v150_v0  ;;  %v156_v3 = vld [vmem:[%s1138_s25 + $0x28] sm:$0xff] (%p50_p3) }
  0x11   : > { %153 = vst [vmem:[%s1143_s26 + $0x8] sm:$0xff] %v152_v1  ;;  %v158_v4 = vld [vmem:[%s1138_s25 + $0x40] sm:$0xff]  ;;  %v160_v5 = vld [vmem:[%s1138_s25 + $0x48] sm:$0xff] }
  0x12   : > { %155 = vst [vmem:[%s1143_s26 + $0x10] sm:$0xff] %v154_v2  ;;  %v162_v6 = vld [vmem:[%s1138_s25 + $0x60] sm:$0xff]  ;;  %v164_v7 = vld [vmem:[%s1138_s25 + $0x68] sm:$0xff] }
  0x13   : > { %157 = vst [vmem:[%s1143_s26 + $0x18] sm:$0xff] %v156_v3  ;;  %v166_v8 = vld [vmem:[%s1138_s25 + $0x80] sm:$0xff]  ;;  %v168_v9 = vld [vmem:[%s1138_s25 + $0x88] sm:$0xff] }
  0x14   : > { %159 = vst [vmem:[%s1143_s26 + $0x20] sm:$0xff] %v158_v4  ;;  %v170_v10 = vld [vmem:[%s1138_s25 + $0xa0] sm:$0xff]  ;;  %v172_v11 = vld [vmem:[%s1138_s25 + $0xa8] sm:$0xff] }
  0x15   : > { %161 = vst [vmem:[%s1143_s26 + $0x28] sm:$0xff] %v160_v5  ;;  %v174_v12 = vld [vmem:[%s1138_s25 + $0xc0] sm:$0xff]  ;;  %v176_v13 = vld [vmem:[%s1138_s25 + $0xc8] sm:$0xff] }
  0x16   : > { %163 = vst [vmem:[%s1143_s26 + $0x30] sm:$0xff] %v162_v6  ;;  %v178_v14 = vld [vmem:[%s1138_s25 + $0xe0] sm:$0xff]  ;;  %v180_v15 = vld [vmem:[%s1138_s25 + $0xe8] sm:$0xff] }
  0x17   : > { %165 = vst [vmem:[%s1143_s26 + $0x38] sm:$0xff] %v164_v7  ;;  %v182_v16 = vld [vmem:[%s1138_s25 + $0x100] sm:$0xff]  ;;  %v184_v17 = vld [vmem:[%s1138_s25 + $0x108] sm:$0xff] }
  0x18   : > { %167 = vst [vmem:[%s1143_s26 + $0x40] sm:$0xff] %v166_v8  ;;  %v186_v18 = vld [vmem:[%s1138_s25 + $0x120] sm:$0xff]  ;;  %v188_v19 = vld [vmem:[%s1138_s25 + $0x128] sm:$0xff] }
  0x19   : > { %169 = vst [vmem:[%s1143_s26 + $0x48] sm:$0xff] %v168_v9  ;;  %v190_v20 = vld [vmem:[%s1138_s25 + $0x140] sm:$0xff]  ;;  %v192_v21 = vld [vmem:[%s1138_s25 + $0x148] sm:$0xff] }
  0x1a   : > { %171 = vst [vmem:[%s1143_s26 + $0x50] sm:$0xff] %v170_v10  ;;  %v194_v22 = vld [vmem:[%s1138_s25 + $0x160] sm:$0xff]  ;;  %v196_v23 = vld [vmem:[%s1138_s25 + $0x168] sm:$0xff] }
  0x1b   : > { %173 = vst [vmem:[%s1143_s26 + $0x58] sm:$0xff] %v172_v11  ;;  %v198_v24 = vld [vmem:[%s1138_s25 + $0x180] sm:$0xff]  ;;  %v200_v25 = vld [vmem:[%s1138_s25 + $0x188] sm:$0xff] }
  0x1c   : > { %175 = vst [vmem:[%s1143_s26 + $0x60] sm:$0xff] %v174_v12  ;;  %v202_v26 = vld [vmem:[%s1138_s25 + $0x1a0] sm:$0xff]  ;;  %v204_v27 = vld [vmem:[%s1138_s25 + $0x1a8] sm:$0xff] }
  0x1d   : > { %177 = vst [vmem:[%s1143_s26 + $0x68] sm:$0xff] %v176_v13  ;;  %v206_v28 = vld [vmem:[%s1138_s25 + $0x1c0] sm:$0xff]  ;;  %v208_v29 = vld [vmem:[%s1138_s25 + $0x1c8] sm:$0xff] }
  0x1e   : > { %179 = vst [vmem:[%s1143_s26 + $0x70] sm:$0xff] %v178_v14  ;;  %v210_v30 = vld [vmem:[%s1138_s25 + $0x1e0] sm:$0xff]  ;;  %v212_v31 = vld [vmem:[%s1138_s25 + $0x1e8] sm:$0xff] }
  0x1f   : > { %181 = vst [vmem:[%s1143_s26 + $0x78] sm:$0xff] %v180_v15  ;;  %v214_v32 = vld [vmem:[%s1138_s25 + $0x200] sm:$0xff]  ;;  %v216_v33 = vld [vmem:[%s1138_s25 + $0x208] sm:$0xff] }
  0x20   : > { %183 = vst [vmem:[%s1143_s26 + $0x80] sm:$0xff] %v182_v16  ;;  %v218_v34 = vld [vmem:[%s1138_s25 + $0x220] sm:$0xff]  ;;  %v220_v35 = vld [vmem:[%s1138_s25 + $0x228] sm:$0xff] }
  0x21   : > { %185 = vst [vmem:[%s1143_s26 + $0x88] sm:$0xff] %v184_v17  ;;  %v222_v36 = vld [vmem:[%s1138_s25 + $0x240] sm:$0xff]  ;;  %v224_v37 = vld [vmem:[%s1138_s25 + $0x248] sm:$0xff] }
  0x22   : > { %187 = vst [vmem:[%s1143_s26 + $0x90] sm:$0xff] %v186_v18  ;;  %v226_v38 = vld [vmem:[%s1138_s25 + $0x260] sm:$0xff]  ;;  %v228_v39 = vld [vmem:[%s1138_s25 + $0x268] sm:$0xff] }
  0x23   : > { %189 = vst [vmem:[%s1143_s26 + $0x98] sm:$0xff] %v188_v19  ;;  %v230_v40 = vld [vmem:[%s1138_s25 + $0x280] sm:$0xff]  ;;  %v232_v41 = vld [vmem:[%s1138_s25 + $0x288] sm:$0xff] }
  0x24   : > { %191 = vst [vmem:[%s1143_s26 + $0xa0] sm:$0xff] %v190_v20  ;;  %v234_v42 = vld [vmem:[%s1138_s25 + $0x2a0] sm:$0xff]  ;;  %v236_v43 = vld [vmem:[%s1138_s25 + $0x2a8] sm:$0xff] }
  0x25   : > { %193 = vst [vmem:[%s1143_s26 + $0xa8] sm:$0xff] %v192_v21  ;;  %v238_v44 = vld [vmem:[%s1138_s25 + $0x2c0] sm:$0xff]  ;;  %v240_v45 = vld [vmem:[%s1138_s25 + $0x2c8] sm:$0xff] }
  0x26   : > { %195 = vst [vmem:[%s1143_s26 + $0xb0] sm:$0xff] %v194_v22  ;;  %v242_v46 = vld [vmem:[%s1138_s25 + $0x2e0] sm:$0xff]  ;;  %v244_v47 = vld [vmem:[%s1138_s25 + $0x2e8] sm:$0xff] }
  0x27   : > { %197 = vst [vmem:[%s1143_s26 + $0xb8] sm:$0xff] %v196_v23 }
  0x28   : > { %199 = vst [vmem:[%s1143_s26 + $0xc0] sm:$0xff] %v198_v24 }
  0x29   : > { %201 = vst [vmem:[%s1143_s26 + $0xc8] sm:$0xff] %v200_v25 }
  0x2a   : > { %203 = vst [vmem:[%s1143_s26 + $0xd0] sm:$0xff] %v202_v26 }
  0x2b   : > { %205 = vst [vmem:[%s1143_s26 + $0xd8] sm:$0xff] %v204_v27 }
  0x2c   : > { %207 = vst [vmem:[%s1143_s26 + $0xe0] sm:$0xff] %v206_v28 }
  0x2d   : > { %209 = vst [vmem:[%s1143_s26 + $0xe8] sm:$0xff] %v208_v29 }
  0x2e   : > { %211 = vst [vmem:[%s1143_s26 + $0xf0] sm:$0xff] %v210_v30 }
  0x2f   : > { %213 = vst [vmem:[%s1143_s26 + $0xf8] sm:$0xff] %v212_v31 }
  0x30   : > { %215 = vst [vmem:[%s1143_s26 + $0x100] sm:$0xff] %v214_v32 }
  0x31   : > { %217 = vst [vmem:[%s1143_s26 + $0x108] sm:$0xff] %v216_v33 }
  0x32   : > { %219 = vst [vmem:[%s1143_s26 + $0x110] sm:$0xff] %v218_v34 }
  0x33   : > { %221 = vst [vmem:[%s1143_s26 + $0x118] sm:$0xff] %v220_v35 }
  0x34   : > { %223 = vst [vmem:[%s1143_s26 + $0x120] sm:$0xff] %v222_v36 }
  0x35   : > { %225 = vst [vmem:[%s1143_s26 + $0x128] sm:$0xff] %v224_v37 }
  0x36   : > { %227 = vst [vmem:[%s1143_s26 + $0x130] sm:$0xff] %v226_v38 }
  0x37   : > { %229 = vst [vmem:[%s1143_s26 + $0x138] sm:$0xff] %v228_v39 }
  0x38   : > { %231 = vst [vmem:[%s1143_s26 + $0x140] sm:$0xff] %v230_v40 }
  0x39   : > { %233 = vst [vmem:[%s1143_s26 + $0x148] sm:$0xff] %v232_v41 }
  0x3a   : > { %235 = vst [vmem:[%s1143_s26 + $0x150] sm:$0xff] %v234_v42 }
  0x3b   : > { %237 = vst [vmem:[%s1143_s26 + $0x158] sm:$0xff] %v236_v43 }
  0x3c   : > { %239 = vst [vmem:[%s1143_s26 + $0x160] sm:$0xff] %v238_v44 }
  0x3d   : > { %241 = vst [vmem:[%s1143_s26 + $0x168] sm:$0xff] %v240_v45 }
  0x3e   : > { %243 = vst [vmem:[%s1143_s26 + $0x170] sm:$0xff] %v242_v46 }
  0x3f   : > { %245 = vst [vmem:[%s1143_s26 + $0x178] sm:$0xff] %v244_v47 }
  0x40 PF: > { %p781_p5 = scmp.ge.s32.totalorder %s1081_s14, 1  ;;  %p250_p6 = scmp.lt.s32.totalorder %s1081_s14, 3 }
  0x42   : > { %p251_p7 = pnand %p781_p5, %p250_p6 }
  0x43   : > { %s257_s27 = sand.u32 (!%p251_p7), 1, %s1073_s12   ;;  %s782_s7 = sshll.u32 (!%p251_p7), %s775_s15, 2 }
  0x44   : > { %254 = sbr.rel (%p251_p7) target bundleno = 273 (0x111), region = 51  ;;  %p282_p8 = scmp.lt.s32.totalorder (!%p251_p7), %s782_s7, 7 }
  0x45   : > { %s1032_s28 = smul.u32 (!%p251_p7), 384, %s257_s27 }
  0x47   : > { %s1241_s29 = scalar_lea.vmem (!%p251_p7), [#allocation2], %s1032_s28 }
  0x49   : > { %v898_v48 = vld [vmem:[%s1241_s29 + $0xe0] sm:$0xf]  ;;  %v1013_v49 = vld [vmem:[%s1241_s29 + $0xec] sm:$0xf0]  ;;  %v1011_v50 = vld [vmem:[%s1241_s29 + $0xe4] sm:$0xf] }
  0x4a   : > { %v899_v51 = vor.u32 %v1013_v49, %v898_v48  ;;  %v900_v52 = vld [vmem:[%s1241_s29 + $0xf0] sm:$0xf0]  ;;  %v882_v53 = vld [vmem:[%s1241_s29 + $0xc0] sm:$0xf]  ;;  %v1009_v54 = vld [vmem:[%s1241_s29 + $0xcc] sm:$0xf0] }
  0x4b   : > { %v903_v55 = vor.u32 %v1011_v50, %v900_v52  ;;  %v1007_v56 = vld [vmem:[%s1241_s29 + $0xc4] sm:$0xf]  ;;  %v884_v57 = vld [vmem:[%s1241_s29 + $0xd0] sm:$0xf0]  ;;  %v962_v58 = vld [vmem:[%s1241_s29 + $0x160] sm:$0xf]  ;;  %v883_v59 = vor.u32 %v1009_v54, %v882_v53 }
  0x4c   : > { %593 = vmatpush.bf16.msra.mxu0 %v899_v51  ;;  %v1029_v60 = vld [vmem:[%s1241_s29 + $0x16c] sm:$0xf0]  ;;  %v887_v61 = vor.u32 %v1007_v56, %v884_v57  ;;  %v866_v63 = vld [vmem:[%s1241_s29 + $0xa0] sm:$0xf]  ;;  %v1003_v2 = vld [vmem:[%s1241_s29 + $0xa4] sm:$0xf] }
  0x4d   : > { %619 = vmatpush.bf16.msra.mxu2 %v903_v55  ;;  %v963_v62 = vor.u32 %v1029_v60, %v962_v58  ;;  %v1005_v0 = vld [vmem:[%s1241_s29 + $0xac] sm:$0xf0]  ;;  %v946_v1 = vld [vmem:[%s1241_s29 + $0x140] sm:$0xf]  ;;  %v868_v3 = vld [vmem:[%s1241_s29 + $0xb0] sm:$0xf0] }
  0x4e   : > { %v1025_v4 = vld [vmem:[%s1241_s29 + $0x14c] sm:$0xf0]  ;;  %v930_v6 = vld [vmem:[%s1241_s29 + $0x120] sm:$0xf]  ;;  %v867_v7 = vor.u32 %v1005_v0, %v866_v63  ;;  %v1027_v9 = vld [vmem:[%s1241_s29 + $0x164] sm:$0xf]  ;;  %v871_v11 = vor.u32 %v1003_v2, %v868_v3 }
  0x4f   : > { %610 = vmatpush.bf16.msra.mxu1 %v963_v62  ;;  %v947_v5 = vor.u32 %v1025_v4, %v946_v1  ;;  %v1021_v8 = vld [vmem:[%s1241_s29 + $0x12c] sm:$0xf0]  ;;  %v964_v10 = vld [vmem:[%s1241_s29 + $0x170] sm:$0xf0]  ;;  %v850_v12 = vld [vmem:[%s1241_s29 + $0x80] sm:$0xf] }
  0x50   : > { %594 = vmatpush.bf16.msra.mxu0 %v883_v59  ;;  %v1001_v13 = vld [vmem:[%s1241_s29 + $0x8c] sm:$0xf0]  ;;  %v967_v14 = vor.u32 %v1027_v9, %v964_v10  ;;  %v999_v15 = vld [vmem:[%s1241_s29 + $0x84] sm:$0xf]  ;;  %v852_v16 = vld [vmem:[%s1241_s29 + $0x90] sm:$0xf0]  ;;  %v931_v17 = vor.u32 %v1021_v8, %v930_v6 }
  0x51   : > { %620 = vmatpush.bf16.msra.mxu2 %v887_v61  ;;  %v834_v18 = vld [vmem:[%s1241_s29 + $0x60] sm:$0xf]  ;;  %v1023_v19 = vld [vmem:[%s1241_s29 + $0x144] sm:$0xf]  ;;  %v948_v20 = vld [vmem:[%s1241_s29 + $0x150] sm:$0xf0]  ;;  %v851_v22 = vor.u32 %v1001_v13, %v850_v12  ;;  %v855_v27 = vor.u32 %v999_v15, %v852_v16 }
  0x52   : > { %636 = vmatpush.bf16.msra.mxu3 %v967_v14  ;;  %v1273_v21 = vld [vmem:[%s1386_s0] sm:$0xff]  ;;  %v997_v23 = vld [vmem:[%s1241_s29 + $0x6c] sm:$0xf0]  ;;  %v951_v26 = vor.u32 %v1023_v19, %v948_v20  ;;  %v906_v28 = vld [vmem:[%s1241_s29 + $0xe8] sm:$0xf]  ;;  %vm589_vm0 = vcmask 523264  }
  0x53   : > { %611 = vmatpush.bf16.msra.mxu1 %v947_v5  ;;  %v914_v24 = vld [vmem:[%s1241_s29 + $0x100] sm:$0xf]  ;;  %v1017_v25 = vld [vmem:[%s1241_s29 + $0x10c] sm:$0xf0]  ;;  %v1014_v29 = vld [vmem:[%s1241_s29 + $0xf4] sm:$0xf0]  ;;  %v835_v36 = vor.u32 %v997_v23, %v834_v18  ;;  %v345_v41 = vunpack.c.h.b16 %v1273_v21 }
  0x54   : > { %595 = vmatpush.bf16.msra.mxu0 %v867_v7  ;;  %v1019_v30 = vld [vmem:[%s1241_s29 + $0x124] sm:$0xf]  ;;  %v836_v32 = vld [vmem:[%s1241_s29 + $0x70] sm:$0xf0]  ;;  %v915_v34 = vor.u32 %v1017_v25, %v914_v24  ;;  %v818_v37 = vld [vmem:[%s1241_s29 + $0x40] sm:$0xf]  ;;  %v907_v38 = vor.u32 %v1014_v29, %v906_v28 }
  0x55   : > { %621 = vmatpush.bf16.msra.mxu2 %v871_v11  ;;  %v995_v31 = vld [vmem:[%s1241_s29 + $0x64] sm:$0xf]  ;;  %v932_v33 = vld [vmem:[%s1241_s29 + $0x130] sm:$0xf0]  ;;  %v993_v43 = vld [vmem:[%s1241_s29 + $0x4c] sm:$0xf0]  ;;  %v1295_v53 = vpack.c.b16 %v345_v41, %v345_v41 }
  0x56   : > { %637 = vmatpush.bf16.msra.mxu3 %v951_v26  ;;  %v935_v35 = vor.u32 %v1019_v30, %v932_v33  ;;  %v1015_v39 = vld [vmem:[%s1241_s29 + $0x104] sm:$0xf]  ;;  %v916_v40 = vld [vmem:[%s1241_s29 + $0x110] sm:$0xf0]  ;;  %v839_v42 = vor.u32 %v995_v31, %v836_v32  ;;  %v890_v44 = vld [vmem:[%s1241_s29 + $0xc8] sm:$0xf]  ;;  %v819_v50 = vor.u32 %v993_v43, %v818_v37 }
  0x57   : > { %612 = vmatpush.bf16.msra.mxu1 %v931_v17  ;;  %v1010_v45 = vld [vmem:[%s1241_s29 + $0xd4] sm:$0xf0]  ;;  %v991_v46 = vld [vmem:[%s1241_s29 + $0x44] sm:$0xf]  ;;  %v820_v47 = vld [vmem:[%s1241_s29 + $0x50] sm:$0xf0]  ;;  %v919_v49 = vor.u32 %v1015_v39, %v916_v40  ;;  %v344_v17 = vunpack.c.l.b16 %v1273_v21 }
  0x58   : > { %596 = vmatpush.bf16.msra.mxu0 %v851_v22  ;;  %v802_v48 = vld [vmem:[%s1241_s29 + $0x20] sm:$0xf]  ;;  %v989_v51 = vld [vmem:[%s1241_s29 + $0x2c] sm:$0xf0]  ;;  %v891_v52 = vor.u32 %v1010_v45, %v890_v44  ;;  %v970_v54 = vld [vmem:[%s1241_s29 + $0x168] sm:$0xf]  ;;  %v823_v56 = vor.u32 %v991_v46, %v820_v47 }
  0x59   : > { %622 = vmatpush.bf16.msra.mxu2 %v855_v27  ;;  %v1030_v55 = vld [vmem:[%s1241_s29 + $0x174] sm:$0xf0]  ;;  %v874_v57 = vld [vmem:[%s1241_s29 + $0xa8] sm:$0xf]  ;;  %v987_v60 = vld [vmem:[%s1241_s29 + $0x24] sm:$0xf]  ;;  %v803_v0 = vor.u32 %v989_v51, %v802_v48  ;;  %v1330_v21 = vpack.c.b16 %v344_v17, %v344_v17 }
  0x5a   : > { %638 = vmatpush.bf16.msra.mxu3 %v935_v35  ;;  %v1006_v58 = vld [vmem:[%s1241_s29 + $0xb4] sm:$0xf0]  ;;  %v971_v59 = vor.u32 %v1030_v55, %v970_v54  ;;  %v804_v61 = vld [vmem:[%s1241_s29 + $0x30] sm:$0xf0]  ;;  %v954_v62 = vld [vmem:[%s1241_s29 + $0x148] sm:$0xf] }
  0x5b   : > { %613 = vmatpush.bf16.msra.mxu1 %v915_v34  ;;  %v1026_v63 = vld [vmem:[%s1241_s29 + $0x154] sm:$0xf0]  ;;  %v786_v1 = vld [vmem:[%s1241_s29] sm:$0xf]  ;;  %v985_v2 = vld [vmem:[%s1241_s29 + $0xc] sm:$0xf0]  ;;  %v875_v4 = vor.u32 %v1006_v58, %v874_v57  ;;  %v807_v5 = vor.u32 %v987_v60, %v804_v61 }
  0x5c   : > { %597 = vmatpush.bf16.msra.mxu0 %v835_v36  ;;  %v983_v3 = vld [vmem:[%s1241_s29 + $0x4] sm:$0xf]  ;;  %v788_v6 = vld [vmem:[%s1241_s29 + $0x10] sm:$0xf0]  ;;  %v858_v7 = vld [vmem:[%s1241_s29 + $0x88] sm:$0xf]  ;;  %v955_v9 = vor.u32 %v1026_v63, %v954_v62  ;;  %v787_v16 = vor.u32 %v985_v2, %v786_v1 }
  0x5d   : > { %623 = vmatpush.bf16.msra.mxu2 %v839_v42  ;;  %v1002_v8 = vld [vmem:[%s1241_s29 + $0x94] sm:$0xf0]  ;;  %v1012_v10 = vld [vmem:[%s1241_s29 + $0xec] sm:$0xf]  ;;  %v908_v11 = vld [vmem:[%s1241_s29 + $0xf8] sm:$0xf0]  ;;  %v791_v19 = vor.u32 %v983_v3, %v788_v6 }
  0x5e   : > { %976 = vmatmul.msk.bf16.vlgmr.msra.gmra.mxu1 %vm589_vm0, %v1295_v53  ;;  %639 = vmatpush.bf16.msra.mxu3 %v919_v49  ;;  %v1028_v12 = vld [vmem:[%s1241_s29 + $0x16c] sm:$0xf]  ;;  %v972_v13 = vld [vmem:[%s1241_s29 + $0x178] sm:$0xf0]  ;;  %v938_v14 = vld [vmem:[%s1241_s29 + $0x128] sm:$0xf]  ;;  %v859_v18 = vor.u32 %v1002_v8, %v858_v7  ;;  %v911_v20 = vor.u32 %v1012_v10, %v908_v11 }
  0x5f   : > { %645 = vmatpush.bf16.msrb.mxu1 %v907_v38  ;;  %v1022_v15 = vld [vmem:[%s1241_s29 + $0x134] sm:$0xf0]  ;;  %v842_v22 = vld [vmem:[%s1241_s29 + $0x68] sm:$0xf]  ;;  %v975_v24 = vor.u32 %v1028_v12, %v972_v13  ;;  %v1008_v25 = vld [vmem:[%s1241_s29 + $0xcc] sm:$0xf] }
  0x60   : > { %598 = vmatpush.bf16.msra.mxu0 %v819_v50  ;;  %v998_v23 = vld [vmem:[%s1241_s29 + $0x74] sm:$0xf0]  ;;  %v892_v26 = vld [vmem:[%s1241_s29 + $0xd8] sm:$0xf0]  ;;  %v1024_v27 = vld [vmem:[%s1241_s29 + $0x14c] sm:$0xf]  ;;  %v939_v28 = vor.u32 %v1022_v15, %v938_v14 }
  0x61   : > { %624 = vmatpush.bf16.msra.mxu2 %v823_v56  ;;  %977 = vmatmul.msk.bf16.vlgmr.msra.gmra.mxu3 %vm589_vm0, %v1295_v53  ;;  %v956_v29 = vld [vmem:[%s1241_s29 + $0x158] sm:$0xf0]  ;;  %v922_v30 = vld [vmem:[%s1241_s29 + $0x108] sm:$0xf]  ;;  %v1018_v31 = vld [vmem:[%s1241_s29 + $0x114] sm:$0xf0]  ;;  %v843_v32 = vor.u32 %v998_v23, %v842_v22  ;;  %v895_v33 = vor.u32 %v1008_v25, %v892_v26 }
  0x62   : > { %662 = vmatpush.bf16.msrb.mxu3 %v971_v59  ;;  %v826_v34 = vld [vmem:[%s1241_s29 + $0x48] sm:$0xf]  ;;  %v994_v35 = vld [vmem:[%s1241_s29 + $0x54] sm:$0xf0]  ;;  %v959_v36 = vor.u32 %v1024_v27, %v956_v29  ;;  %v1004_v37 = vld [vmem:[%s1241_s29 + $0xac] sm:$0xf]  ;;  %v923_v39 = vor.u32 %v1018_v31, %v922_v30 }
  0x63   : > { %646 = vmatpush.bf16.msrb.mxu1 %v891_v52  ;;  %v876_v38 = vld [vmem:[%s1241_s29 + $0xb8] sm:$0xf0]  ;;  %v337_v40 = vld [vmem:[%s1388_s2] sm:$0xff]  ;;  %v1020_v41 = vld [vmem:[%s1241_s29 + $0x12c] sm:$0xf]  ;;  %v1083_v43 = vmov 0   ;;  %v827_v44 = vor.u32 %v994_v35, %v826_v34 }
  0x64   : > { %599 = vmatpush.bf16.msra.mxu0 %v803_v0  ;;  %v940_v42 = vld [vmem:[%s1241_s29 + $0x138] sm:$0xf0]  ;;  %1058 = vset.pattern.permute.xlu0 %v1083_v43  ;;  %v879_v45 = vor.u32 %v1004_v37, %v876_v38  ;;  %v810_v46 = vld [vmem:[%s1241_s29 + $0x28] sm:$0xf]  ;;  %v990_v47 = vld [vmem:[%s1241_s29 + $0x34] sm:$0xf0] }
  0x65   : > { %625 = vmatpush.bf16.msra.mxu2 %v807_v5  ;;  %340 = vperm.xlu0 %1058, %v337_v40   ;;  %v943_v48 = vor.u32 %v1020_v41, %v940_v42  ;;  %v1000_v49 = vld [vmem:[%s1241_s29 + $0x8c] sm:$0xf]  ;;  %v860_v50 = vld [vmem:[%s1241_s29 + $0x98] sm:$0xf0]  ;;  %v811_v54 = vor.u32 %v990_v47, %v810_v46  ;;  %v794_v56 = vld [vmem:[%s1241_s29 + $0x8] sm:$0xf] }
  0x66   : > { %663 = vmatpush.bf16.msrb.mxu3 %v955_v9  ;;  %v1016_v51 = vld [vmem:[%s1241_s29 + $0x10c] sm:$0xf]  ;;  %v924_v52 = vld [vmem:[%s1241_s29 + $0x118] sm:$0xf0]  ;;  %v863_v55 = vor.u32 %v1000_v49, %v860_v50  ;;  %v986_v57 = vld [vmem:[%s1241_s29 + $0x14] sm:$0xf0] }
  0x67   : > { %647 = vmatpush.bf16.msrb.mxu1 %v875_v4  ;;  %v927_v58 = vor.u32 %v1016_v51, %v924_v52  ;;  %v996_v59 = vld [vmem:[%s1241_s29 + $0x6c] sm:$0xf]  ;;  %v844_v60 = vld [vmem:[%s1241_s29 + $0x78] sm:$0xf0]  ;;  %v795_v61 = vor.u32 %v986_v57, %v794_v56  ;;  %s1394_s7 = smov (!%p282_p8, %s782_s7), 7 }
  0x68   : > { %600 = vmatpush.bf16.msra.mxu0 %v787_v16  ;;  %v847_v62 = vor.u32 %v996_v59, %v844_v60  ;;  %v992_v63 = vld [vmem:[%s1241_s29 + $0x4c] sm:$0xf]  ;;  %v828_v0 = vld [vmem:[%s1241_s29 + $0x58] sm:$0xf0]  ;;  %s783_s8 = sshll.u32 %s1394_s7, 3 }
  0x69   : > { %626 = vmatpush.bf16.msra.mxu2 %v791_v19  ;;  %v831_v1 = vor.u32 %v992_v63, %v828_v0  ;;  %v988_v2 = vld [vmem:[%s1241_s29 + $0x2c] sm:$0xf]  ;;  %v812_v3 = vld [vmem:[%s1241_s29 + $0x38] sm:$0xf0]  ;;  %s1370_s11 = scalar_lea.vmem %s1389_s3, %s783_s8 }
  0x6a   : > { %664 = vmatpush.bf16.msrb.mxu3 %v939_v28  ;;  %v815_v4 = vor.u32 %v988_v2, %v812_v3  ;;  %v984_v5 = vld [vmem:[%s1241_s29 + $0xc] sm:$0xf]  ;;  %v796_v6 = vld [vmem:[%s1241_s29 + $0x18] sm:$0xf0] }
  0x6b   : > { %648 = vmatpush.bf16.msrb.mxu1 %v859_v18  ;;  %601 = vmatmul.bf16.vlgmr.msra.gmra.mxu0 %v1330_v21  ;;  %v799_v7 = vor.u32 %v984_v5, %v796_v6 }
  0x6c   : > { %671 = vmatpush.bf16.msrb.mxu0 %v911_v20  ;;  %627 = vmatmul.bf16.vlgmr.msra.gmra.mxu2 %v1330_v21 }
  0x6d   : > { %688 = vmatpush.bf16.msrb.mxu2 %v975_v24 }
  0x6e   : > { %665 = vmatpush.bf16.msrb.mxu3 %v923_v39 }
  0x6f   : > { %649 = vmatpush.bf16.msrb.mxu1 %v843_v32 }
  0x70   : > { %672 = vmatpush.bf16.msrb.mxu0 %v895_v33 }
  0x71   : > { %689 = vmatpush.bf16.msrb.mxu2 %v959_v36  ;;  %978 = vmatmul.msk.bf16.vlgmr.msrb.gmra.mxu3 %vm589_vm0, %v1295_v53 }
  0x73   : > { %650 = vmatpush.bf16.msrb.mxu1 %v827_v44 }
  0x74   : > { %673 = vmatpush.bf16.msrb.mxu0 %v879_v45 }
  0x75   : > { %690 = vmatpush.bf16.msrb.mxu2 %v943_v48 }
  0x77   : > { %651 = vmatpush.bf16.msrb.mxu1 %v811_v54 }
  0x78   : > { %674 = vmatpush.bf16.msrb.mxu0 %v863_v55 }
  0x79   : > { %691 = vmatpush.bf16.msrb.mxu2 %v927_v58 }
  0x7b   : > { %652 = vmatpush.bf16.msrb.mxu1 %v795_v61 }
  0x7c   : > { %675 = vmatpush.bf16.msrb.mxu0 %v847_v62  ;;  %979 = vmatmul.msk.bf16.vlgmr.msrb.gmra.mxu2 %vm589_vm0, %v1295_v53 }
  0x7e   : > { %653 = vmatmul.bf16.vlgmr.msrb.gmra.mxu1 %v1330_v21 }
  0x80   : > { %676 = vmatpush.bf16.msrb.mxu0 %v831_v1 }
  0x84   : > { %677 = vmatpush.bf16.msrb.mxu0 %v815_v4 }
  0x88   : > { %678 = vmatpush.bf16.msrb.mxu0 %v799_v7 }
  0x8b   : > { %679 = vmatmul.bf16.vlgmr.msrb.gmra.mxu0 %v1330_v21 }
  0xd7   : > { %v341_v11 = vpop.permute.xlu0 %340 }
  0xdb   : > { %v615_v8 = vpop.f32.mrf.mxu1 }
  0xe3   : > { %v617_v9 = vpop.f32.mrf.mxu1 }
  0xe4   : > { %v641_v10 = vpop.f32.mrf.mxu3 }
  0xe8   : > { %v602_v12 = vpop.f32.mrf.mxu0 }
  0xe9   : > { %v603_v13 = vadd.f32 %v602_v12, %v341_v11 }
  0xeb   : > { %v616_v53 = vadd.f32 %v615_v8, %v603_v13 }
  0xec   : > { %v643_v15 = vpop.f32.mrf.mxu3 }
  0xed   : > { %vm697_vm1 = vcmp.gt.f32.partialorder %v616_v53, 0.0  ;;  %v701_v14 = vmul.f32 0.01, %v616_v53 }
  0xef   : > { %v628_v16 = vpop.f32.mrf.mxu2  ;;  %v705_v17 = vsel %vm697_vm1, %v616_v53, %v701_v14 }
  0xf0   : > { %v629_v18 = vadd.f32 %v628_v16, %v341_v11  ;;  %709 = vst [vmem:[%s1370_s11] sm:$0xff] %v705_v17  ;;  %v604_v19 = vpop.f32.mrf.mxu0 }
  0xf2   : > { %v642_v20 = vadd.f32 %v641_v10, %v629_v18 }
  0xf4   : > { %vm698_vm2 = vcmp.gt.f32.partialorder %v642_v20, 0.0  ;;  %v702_v22 = vmul.f32 0.01, %v642_v20  ;;  %v667_v23 = vpop.f32.mrf.mxu3 }
  0xf6   : > { %v706_v24 = vsel %vm698_vm2, %v642_v20, %v702_v22 }
  0xf7   : > { %710 = vst [vmem:[%s1370_s11 + $0x8] sm:$0xff] %v706_v24  ;;  %v630_v25 = vpop.f32.mrf.mxu2 }
  0xfb   : > { %v654_v26 = vpop.f32.mrf.mxu1 }
  0xfc   : > { %v655_v27 = vadd.f32 %v654_v26, %v341_v11  ;;  %v669_v30 = vpop.f32.mrf.mxu3 }
  0xfe   : > { %v668_v28 = vadd.f32 %v667_v23, %v655_v27 }
  0xff   : > { %v693_v21 = vpop.f32.mrf.mxu2 }
 0x100   : > { %vm699_vm3 = vcmp.gt.f32.partialorder %v668_v28, 0.0  ;;  %v703_v29 = vmul.f32 0.01, %v668_v28 }
 0x102   : > { %v707_v31 = vsel %vm699_vm3, %v668_v28, %v703_v29 }
 0x103   : > { %711 = vst [vmem:[%s1370_s11 + $0x10] sm:$0xff] %v707_v31  ;;  %v656_v32 = vpop.f32.mrf.mxu1 }
 0x107   : > { %v695_v35 = vpop.f32.mrf.mxu2 }
 0x108   : > { %v680_v33 = vpop.f32.mrf.mxu0 }
 0x109   : > { %v681_v34 = vadd.f32 %v680_v33, %v341_v11 }
 0x10b   : > { %v694_v36 = vadd.f32 %v693_v21, %v681_v34 }
 0x10d   : > { %vm700_vm4 = vcmp.gt.f32.partialorder %v694_v36, 0.0  ;;  %v704_v37 = vmul.f32 0.01, %v694_v36 }
 0x10f   : > { %v708_v38 = vsel %vm700_vm4, %v694_v36, %v704_v37 }
 0x110   : > { %712 = vst [vmem:[%s1370_s11 + $0x18] sm:$0xff] %v708_v38  ;;  %v682_v39 = vpop.f32.mrf.mxu0 }
 0x111 PF: > { %p10_p9 = scmp.ge.s32.totalorder %s1121_s16, 4   ;;  %s1390_s12 = smov %s1077_s13 }
 0x112   : > { %s1391_s13 = smov %s1130_s19  ;;  %s1392_s14 = smov %s1121_s16 }
 0x113   :  { %12 = sbr.rel (!%p10_p9) target bundleno = 2 (0x2), region = 90 }

// kernel: critic_forward.10
= control target key start
LH: loop header
LB: loop body
LE: loop exit
PB: predicated region body
PF: predicated region fallthrough
CT: control target
= control target key end

     0   :  { %v94_v0 = vmov 0   ;;  %s161_s2 = inlined_call_operand.vmem [shape: f32[16,1], index: 2, kind: input, shape index: {}]   ;;  %s162_s1 = inlined_call_operand.vmem [shape: f32[16,1], index: 1, kind: input, shape index: {}]   ;;  %s163_s3 = inlined_call_operand.vmem [shape: f32[16,1], index: 3, kind: input, shape index: {}]   ;;  %s164_s4 = inlined_call_operand.vmem [shape: f32[16,1], index: 4, kind: input, shape index: {}]   ;;  %s165_s0 = inlined_call_operand.vmem [shape: f32[16,128], index: 0, kind: input, shape index: {}]   ;;  %s166_s5 = inlined_call_operand.vmem [shape: f32[16,128], index: 5, kind: output, shape index: {}]  }
   0x1   :  { %92 = vset.pattern.permute.xlu1 %v94_v0  ;;  %91 = vset.pattern.permute.xlu0 %v94_v0  ;;  %v36_v1 = vld [vmem:[%s161_s2] sm:$0xff]  ;;  %v37_v4 = vld [vmem:[%s161_s2 + $0x8] sm:$0xff] }
   0x2   :  { %v22_v2 = vld [vmem:[%s162_s1] sm:$0xff]  ;;  %40 = vperm.xlu1 %92, %v36_v1   ;;  %93 = vset.pattern.permute.xlu2 %v94_v0  ;;  %v23_v5 = vld [vmem:[%s162_s1 + $0x8] sm:$0xff] }
   0x3   :  { %26 = vperm.xlu0 %91, %v22_v2   ;;  %v50_v3 = vld [vmem:[%s163_s3] sm:$0xff]  ;;  %v51_v6 = vld [vmem:[%s163_s3 + $0x8] sm:$0xff] }
   0x4   :  { %54 = vperm.xlu2 %93, %v50_v3   ;;  %v65_v7 = vld [vmem:[%s164_s4 + $0x8] sm:$0xff]  ;;  %v64_v8 = vld [vmem:[%s164_s4] sm:$0xff] }
   0x5   :  { %v20_v12 = vld [vmem:[%s165_s0] sm:$0xff]  ;;  %v21_v13 = vld [vmem:[%s165_s0 + $0x8] sm:$0xff] }
   0xa   :  { %45 = vperm.xlu1 %92, %v37_v4  }
   0xb   :  { %31 = vperm.xlu0 %91, %v23_v5  }
   0xc   :  { %59 = vperm.xlu2 %93, %v51_v6  }
  0x12   :  { %73 = vperm.xlu1 %92, %v65_v7  }
  0x13   :  { %68 = vperm.xlu0 %91, %v64_v8  }
  0x5e   :  { %v55_v11 = vpop.permute.xlu2 %54 }
  0x66   :  { %v60_v20 = vpop.permute.xlu2 %59 }
  0x74   :  { %v41_v9 = vpop.permute.xlu1 %40 }
  0x75   :  { %v27_v10 = vpop.permute.xlu0 %26 }
  0x76   :  { %v34_v14 = vsub.f32 %v20_v12, %v27_v10 }
  0x78   :  { %v48_v18 = vmul.f32 %v41_v9, %v34_v14 }
  0x7a   :  { %v62_v22 = vmul.f32 %v55_v11, %v48_v18 }
  0x7c   :  { %v46_v15 = vpop.permute.xlu1 %45 }
  0x7d   :  { %v32_v16 = vpop.permute.xlu0 %31 }
  0x7e   :  { %v35_v17 = vsub.f32 %v21_v13, %v32_v16 }
  0x80   :  { %v49_v19 = vmul.f32 %v46_v15, %v35_v17 }
  0x82   :  { %v63_v21 = vmul.f32 %v60_v20, %v49_v19 }
  0x84   :  { %v74_v23 = vpop.permute.xlu1 %73 }
  0x85   :  { %v69_v24 = vpop.permute.xlu0 %68  ;;  %v77_v25 = vadd.f32 %v74_v23, %v63_v21 }
  0x86   :  { %v76_v26 = vadd.f32 %v69_v24, %v62_v22 }
  0x87   :  { %vm79_vm0 = vcmp.gt.f32.partialorder %v77_v25, 0.0  ;;  %v81_v27 = vmul.f32 0.01, %v77_v25 }
  0x88   :  { %vm78_vm1 = vcmp.gt.f32.partialorder %v76_v26, 0.0  ;;  %v80_v28 = vmul.f32 0.01, %v76_v26 }
  0x89   :  { %v83_v29 = vsel %vm79_vm0, %v77_v25, %v81_v27 }
  0x8a   :  { %v82_v30 = vsel %vm78_vm1, %v76_v26, %v80_v28  ;;  %85 = vst [vmem:[%s166_s5 + $0x8] sm:$0xff] %v83_v29 }
  0x8b   :  { %84 = vst [vmem:[%s166_s5] sm:$0xff] %v82_v30 }

// kernel: critic_forward.9
= control target key start
LH: loop header
LB: loop body
LE: loop exit
PB: predicated region body
PF: predicated region fallthrough
CT: control target
= control target key end

     0   :  { %v781_v21 = vmov 0   ;;  %vm21_vm0 = vcmask 7168   ;;  %v782_v60 = vmov 0.0   ;;  %v462_v63 = vlaneseq  ;;  %s999_s1 = inlined_call_operand.vmem [shape: bf16[640,128], index: 1, kind: input, shape index: {}]   ;;  %s1000_s2 = inlined_call_operand.vmem [shape: f32[16,1], index: 2, kind: input, shape index: {}]   ;;  %s1001_s0 = inlined_call_operand.vmem [shape: bf16[16,640], index: 0, kind: input, shape index: {}]   ;;  %s1002_s3 = inlined_call_operand.vmem [shape: f32[16,128], index: 3, kind: output, shape index: {0}]   ;;  %s1003_s4 = inlined_call_operand.vmem [shape: f32[16,1], index: 4, kind: output, shape index: {1}]   ;;  %s1004_s5 = inlined_call_operand.vmem [shape: f32[16,1], index: 5, kind: output, shape index: {2}]  }
   0x1   :  { %v741_v0 = vld [vmem:[%s999_s1 + $0x38] sm:$0xff]  ;;  %v740_v4 = vld [vmem:[%s999_s1 + $0x30] sm:$0xff]  ;;  %v739_v8 = vld [vmem:[%s999_s1 + $0x28] sm:$0xff]  ;;  %776 = vset.pattern.permute.xlu0 %v781_v21  ;;  %22 = vst.msk [vmem:[#allocation2] sm:$0xff] %vm21_vm0, %v782_v60 }
   0x2   :  { %v757_v1 = vld [vmem:[%s999_s1 + $0xb8] sm:$0xff]  ;;  %390 = vmatpush.bf16.msra.mxu0 %v741_v0  ;;  %v756_v5 = vld [vmem:[%s999_s1 + $0xb0] sm:$0xff]  ;;  %v755_v9 = vld [vmem:[%s999_s1 + $0xa8] sm:$0xff]  ;;  %23 = vst.msk [vmem:[#allocation2 + $0x8] sm:$0xff] %vm21_vm0, %v782_v60 }
   0x3   :  { %v765_v2 = vld [vmem:[%s999_s1 + $0xf8] sm:$0xff]  ;;  %418 = vmatpush.bf16.msra.mxu2 %v757_v1  ;;  %v764_v6 = vld [vmem:[%s999_s1 + $0xf0] sm:$0xff]  ;;  %v763_v10 = vld [vmem:[%s999_s1 + $0xe8] sm:$0xff]  ;;  %24 = vst.msk [vmem:[#allocation3] sm:$0xff] %vm21_vm0, %v782_v60 }
   0x4   :  { %v749_v3 = vld [vmem:[%s999_s1 + $0x78] sm:$0xff]  ;;  %432 = vmatpush.bf16.msra.mxu3 %v765_v2  ;;  %v748_v7 = vld [vmem:[%s999_s1 + $0x70] sm:$0xff]  ;;  %v747_v11 = vld [vmem:[%s999_s1 + $0x68] sm:$0xff]  ;;  %25 = vst.msk [vmem:[#allocation3 + $0x8] sm:$0xff] %vm21_vm0, %v782_v60 }
   0x5   :  { %404 = vmatpush.bf16.msra.mxu1 %v749_v3  ;;  %v738_v12 = vld [vmem:[%s999_s1 + $0x20] sm:$0xff]  ;;  %v737_v16 = vld [vmem:[%s999_s1 + $0x18] sm:$0xff]  ;;  %v736_v22 = vld [vmem:[%s999_s1 + $0x10] sm:$0xff] }
   0x6   :  { %391 = vmatpush.bf16.msra.mxu0 %v740_v4  ;;  %v754_v13 = vld [vmem:[%s999_s1 + $0xa0] sm:$0xff]  ;;  %v753_v17 = vld [vmem:[%s999_s1 + $0x98] sm:$0xff]  ;;  %v752_v23 = vld [vmem:[%s999_s1 + $0x90] sm:$0xff]  ;;  %v463_v4 = vand.u32 127, %v462_v63 }
   0x7   :  { %419 = vmatpush.bf16.msra.mxu2 %v756_v5  ;;  %v762_v14 = vld [vmem:[%s999_s1 + $0xe0] sm:$0xff]  ;;  %v761_v18 = vld [vmem:[%s999_s1 + $0xd8] sm:$0xff]  ;;  %v760_v24 = vld [vmem:[%s999_s1 + $0xd0] sm:$0xff] }
   0x8   :  { %433 = vmatpush.bf16.msra.mxu3 %v764_v6  ;;  %v746_v15 = vld [vmem:[%s999_s1 + $0x60] sm:$0xff]  ;;  %v745_v19 = vld [vmem:[%s999_s1 + $0x58] sm:$0xff]  ;;  %v744_v25 = vld [vmem:[%s999_s1 + $0x50] sm:$0xff]  ;;  %vm467_vm1 = vcmp.lt.s32.totalorder %v463_v4, 72 }
   0x9   :  { %405 = vmatpush.bf16.msra.mxu1 %v748_v7  ;;  %v112_v20 = vld [vmem:[%s1000_s2] sm:$0xff]  ;;  %v735_v26 = vld [vmem:[%s999_s1 + $0x8] sm:$0xff]  ;;  %v773_v32 = vld [vmem:[%s999_s1 + $0x138] sm:$0xff] }
   0xa   :  { %392 = vmatpush.bf16.msra.mxu0 %v739_v8  ;;  %116 = vperm.xlu0 %776, %v112_v20   ;;  %v751_v27 = vld [vmem:[%s999_s1 + $0x88] sm:$0xff]  ;;  %v734_v31 = vld [vmem:[%s999_s1] sm:$0xff]  ;;  %v732_v35 = vld [vmem:[%s1001_s0 + $0x18] sm:$0xf0] }
   0xb   :  { %420 = vmatpush.bf16.msra.mxu2 %v755_v9  ;;  %v759_v28 = vld [vmem:[%s999_s1 + $0xc8] sm:$0xff]  ;;  %v750_v33 = vld [vmem:[%s999_s1 + $0x80] sm:$0xff]  ;;  %v731_v37 = vld [vmem:[%s1001_s0 + $0x10] sm:$0xf0] }
   0xc   :  { %434 = vmatpush.bf16.msra.mxu3 %v763_v10  ;;  %v743_v29 = vld [vmem:[%s999_s1 + $0x48] sm:$0xff]  ;;  %v550_v36 = vld [vmem:[%s1001_s0] sm:$0xf]  ;;  %v729_v42 = vld [vmem:[%s1001_s0 + $0x4] sm:$0xf] }
   0xd   :  { %406 = vmatpush.bf16.msra.mxu1 %v747_v11  ;;  %v113_v30 = vld [vmem:[%s1000_s2 + $0x8] sm:$0xff]  ;;  %v758_v38 = vld [vmem:[%s999_s1 + $0xc0] sm:$0xff]  ;;  %v552_v43 = vld [vmem:[%s1001_s0 + $0x14] sm:$0xf0]  ;;  %v551_v45 = vor.u32 %v731_v37, %v550_v36 }
   0xe   :  { %393 = vmatpush.bf16.msra.mxu0 %v738_v12  ;;  %v558_v34 = vld [vmem:[%s1001_s0 + $0x8] sm:$0xf]  ;;  %v730_v39 = vld [vmem:[%s1001_s0 + $0xc] sm:$0xf]  ;;  %v560_v40 = vld [vmem:[%s1001_s0 + $0x1c] sm:$0xf0]  ;;  %v555_v48 = vor.u32 %v729_v42, %v552_v43 }
   0xf   :  { %421 = vmatpush.bf16.msra.mxu2 %v754_v13  ;;  %v742_v41 = vld [vmem:[%s999_s1 + $0x40] sm:$0xff]  ;;  %v559_v44 = vor.u32 %v732_v35, %v558_v34  ;;  %v563_v46 = vor.u32 %v730_v39, %v560_v40  ;;  %v772_v47 = vld [vmem:[%s999_s1 + $0x130] sm:$0xff]  ;;  %v771_v49 = vld [vmem:[%s999_s1 + $0x128] sm:$0xff]  ;;  %v728_v13 = vsel %vm467_vm1, 1.0, %v782_v60 }
  0x10   :  { %435 = vmatpush.bf16.msra.mxu3 %v762_v14  ;;  %v770_v50 = vld [vmem:[%s999_s1 + $0x120] sm:$0xff]  ;;  %v769_v51 = vld [vmem:[%s999_s1 + $0x118] sm:$0xff]  ;;  %v768_v52 = vld [vmem:[%s999_s1 + $0x110] sm:$0xff] }
  0x11   :  { %407 = vmatpush.bf16.msra.mxu1 %v746_v15  ;;  %v767_v53 = vld [vmem:[%s999_s1 + $0x108] sm:$0xff]  ;;  %v766_v54 = vld [vmem:[%s999_s1 + $0x100] sm:$0xff]  ;;  %v566_v55 = vld [vmem:[%s1001_s0 + $0x10] sm:$0xf] }
  0x12   :  { %394 = vmatpush.bf16.msra.mxu0 %v737_v16  ;;  %121 = vperm.xlu0 %776, %v113_v30   ;;  %v733_v56 = vld [vmem:[%s1001_s0 + $0x20] sm:$0xf0]  ;;  %v473_v30 = vld [vmem:[#allocation2 + $0x8] sm:$0xff] }
  0x13   :  { %422 = vmatpush.bf16.msra.mxu2 %v753_v17  ;;  %v567_v57 = vor.u32 %v733_v56, %v566_v55 }
  0x14   :  { %436 = vmatpush.bf16.msra.mxu3 %v761_v18 }
  0x15   :  { %408 = vmatpush.bf16.msra.mxu1 %v745_v19 }
  0x16   :  { %395 = vmatpush.bf16.msra.mxu0 %v736_v22 }
  0x17   :  { %423 = vmatpush.bf16.msra.mxu2 %v752_v23 }
  0x18   :  { %437 = vmatpush.bf16.msra.mxu3 %v760_v24  ;;  %v472_v24 = vld [vmem:[#allocation2] sm:$0xff] }
  0x19   :  { %409 = vmatpush.bf16.msra.mxu1 %v744_v25 }
  0x1a   :  { %396 = vmatpush.bf16.msra.mxu0 %v735_v26  ;;  %v483_v26 = vld [vmem:[#allocation3] sm:$0xff] }
  0x1b   :  { %424 = vmatpush.bf16.msra.mxu2 %v751_v27 }
  0x1c   :  { %438 = vmatpush.bf16.msra.mxu3 %v759_v28 }
  0x1d   :  { %410 = vmatpush.bf16.msra.mxu1 %v743_v29 }
  0x1e   :  { %397 = vmatpush.bf16.msra.mxu0 %v734_v31 }
  0x1f   :  { %425 = vmatpush.bf16.msra.mxu2 %v750_v33 }
  0x20   :  { %439 = vmatpush.bf16.msra.mxu3 %v758_v38 }
  0x21   :  { %411 = vmatpush.bf16.msra.mxu1 %v742_v41  ;;  %398 = vmatmul.bf16.vlgmr.msra.gmra.mxu0 %v551_v45 }
  0x22   :  { %446 = vmatpush.bf16.msrb.mxu0 %v773_v32  ;;  %426 = vmatmul.bf16.vlgmr.msra.gmra.mxu2 %v559_v44  ;;  %v484_v32 = vld [vmem:[#allocation3 + $0x8] sm:$0xff] }
  0x23   :  { %440 = vmatmul.bf16.vlgmr.msra.gmra.mxu3 %v563_v46 }
  0x24   :  { %412 = vmatmul.bf16.vlgmr.msra.gmra.mxu1 %v555_v48 }
  0x26   :  { %447 = vmatpush.bf16.msrb.mxu0 %v772_v47 }
  0x2a   :  { %448 = vmatpush.bf16.msrb.mxu0 %v771_v49 }
  0x2e   :  { %449 = vmatpush.bf16.msrb.mxu0 %v770_v50 }
  0x32   :  { %450 = vmatpush.bf16.msrb.mxu0 %v769_v51 }
  0x36   :  { %451 = vmatpush.bf16.msrb.mxu0 %v768_v52 }
  0x3a   :  { %452 = vmatpush.bf16.msrb.mxu0 %v767_v53 }
  0x3e   :  { %453 = vmatpush.bf16.msrb.mxu0 %v766_v54 }
  0x41   :  { %454 = vmatmul.bf16.vlgmr.msrb.gmra.mxu0 %v567_v57 }
  0x7c   :  { %v117_v58 = vpop.permute.xlu0 %116 }
  0x84   :  { %v122_v2 = vpop.permute.xlu0 %121 }
  0x9e   :  { %v399_v59 = vpop.f32.mrf.mxu0 }
  0x9f   :  { %v400_v62 = vadd.f32 %v399_v59, %v117_v58 }
  0xa1   :  { %v413_v61 = vpop.f32.mrf.mxu1 }
  0xa2   :  { %v414_v1 = vadd.f32 %v413_v61, %v400_v62 }
  0xa5   :  { %v427_v0 = vpop.f32.mrf.mxu2 }
  0xa6   :  { %v401_v3 = vpop.f32.mrf.mxu0  ;;  %v441_v5 = vpop.f32.mrf.mxu3  ;;  %v428_v6 = vadd.f32 %v427_v0, %v414_v1 }
  0xa7   :  { %v402_v7 = vadd.f32 %v401_v3, %v122_v2 }
  0xa8   :  { %v442_v9 = vadd.f32 %v441_v5, %v428_v6 }
  0xa9   :  { %v415_v8 = vpop.f32.mrf.mxu1 }
  0xaa   :  { %v416_v10 = vadd.f32 %v415_v8, %v402_v7 }
  0xad   :  { %v429_v11 = vpop.f32.mrf.mxu2 }
  0xae   :  { %v430_v15 = vadd.f32 %v429_v11, %v416_v10  ;;  %v443_v17 = vpop.f32.mrf.mxu3 }
  0xb0   :  { %v444_v19 = vadd.f32 %v443_v17, %v430_v15 }
  0xbe   :  { %v455_v12 = vpop.f32.mrf.mxu0 }
  0xbf   :  { %v456_v14 = vadd.f32 %v455_v12, %v442_v9 }
  0xc1   :  { %460 = vst [vmem:[%s1002_s3] sm:$0xff] %v456_v14  ;;  %v470_v16 = vmul.f32 %v728_v13, %v456_v14 }
  0xc3   :  { %474 = vadd.xlane.f32.xlu1 %v470_v16  ;;  %v485_v18 = vmul.f32 %v470_v16, %v470_v16 }
  0xc5   :  { %487 = vadd.xlane.f32.xlu2 %v485_v18 }
  0xc6   :  { %v457_v20 = vpop.f32.mrf.mxu0 }
  0xc7   :  { %v458_v21 = vadd.f32 %v457_v20, %v444_v19 }
  0xc9   :  { %461 = vst [vmem:[%s1002_s3 + $0x8] sm:$0xff] %v458_v21  ;;  %v471_v22 = vmul.f32 %v728_v13, %v458_v21 }
  0xcb   :  { %476 = vadd.xlane.f32.xlu1 %v471_v22  ;;  %v486_v23 = vmul.f32 %v471_v22, %v471_v22 }
  0xcd   :  { %489 = vadd.xlane.f32.xlu2 %v486_v23 }
 0x136   :  { %v475_v25 = vpop.xlane.xlu1 %474 }
 0x137   :  { %v478_v27 = vadd.f32 %v475_v25, %v472_v24 }
 0x138   :  { %v488_v28 = vpop.xlane.xlu2 %487 }
 0x139   :  { %481 = vst.msk [vmem:[#allocation2] sm:$0xff] %vm21_vm0, %v478_v27  ;;  %v491_v29 = vadd.f32 %v488_v28, %v483_v26 }
 0x13b   :  { %493 = vst.msk [vmem:[#allocation3] sm:$0xff] %vm21_vm0, %v491_v29 }
 0x13e   :  { %v477_v31 = vpop.xlane.xlu1 %476 }
 0x13f   :  { %v479_v33 = vadd.f32 %v477_v31, %v473_v30 }
 0x140   :  { %v498_v34 = vld [vmem:[#allocation2] sm:$0xff]  ;;  %v490_v35 = vpop.xlane.xlu2 %489 }
 0x141   :  { %v500_v36 = vmul.f32 0.013888889, %v498_v34  ;;  %482 = vst.msk [vmem:[#allocation2 + $0x8] sm:$0xff] %vm21_vm0, %v479_v33  ;;  %v492_v37 = vadd.f32 %v490_v35, %v484_v32 }
 0x142   :  { %v502_v38 = vld [vmem:[#allocation3] sm:$0xff] }
 0x143   :  { %v506_v39 = vmul.f32 %v500_v36, %v500_v36  ;;  %510 = vst.msk [vmem:[%s1003_s4] sm:$0xff] %vm21_vm0, %v500_v36  ;;  %v504_v40 = vmul.f32 0.013888889, %v502_v38 }
 0x144   :  { %494 = vst.msk [vmem:[#allocation3 + $0x8] sm:$0xff] %vm21_vm0, %v492_v37 }
 0x145   :  { %v508_v41 = vsub.f32 %v504_v40, %v506_v39 }
 0x147   :  { %v512_v42 = vadd.f32 1e-05, %v508_v41 }
 0x148   :  { %v499_v43 = vld [vmem:[#allocation2 + $0x8] sm:$0xff] }
 0x149   :  { %777 = vrsqrt.f32 %v512_v42  ;;  %v501_v44 = vmul.f32 0.013888889, %v499_v43  ;;  %vm520_vm3 = vweird.f32 %v512_v42 }
 0x14b   :  { %v507_v45 = vmul.f32 %v501_v44, %v501_v44  ;;  %511 = vst.msk [vmem:[%s1003_s4 + $0x8] sm:$0xff] %vm21_vm0, %v501_v44  ;;  %v503_v46 = vld [vmem:[#allocation3 + $0x8] sm:$0xff] }
 0x14c   :  { %v505_v47 = vmul.f32 0.013888889, %v503_v46 }
 0x14e   :  { %v509_v48 = vsub.f32 %v505_v47, %v507_v45 }
 0x14f   :  { %v778_v49 = vpop.eup %777 }
 0x150   :  { %v515_v50 = vmul.f32 %v778_v49, %v512_v42  ;;  %v513_v51 = vadd.f32 1e-05, %v509_v48  ;;  %vm521_vm2 = vweird.f32 %v778_v49 }
 0x151   :  { %vm522_vm4 = vmor %vm520_vm3, %vm521_vm2 }
 0x152   :  { %v516_v52 = vmul.f32 %v778_v49, %v515_v50  ;;  %779 = vrsqrt.f32 %v513_v51  ;;  %vm530_vm6 = vweird.f32 %v513_v51 }
 0x154   :  { %v517_v53 = vmul.f32 0.5, %v516_v52 }
 0x156   :  { %v518_v54 = vsub.f32 1.5, %v517_v53 }
 0x158   :  { %v780_v55 = vpop.eup %779  ;;  %v519_v56 = vmul.f32 %v778_v49, %v518_v54 }
 0x159   :  { %v525_v57 = vmul.f32 %v780_v55, %v513_v51  ;;  %vm531_vm5 = vweird.f32 %v780_v55 }
 0x15a   :  { %v523_v58 = vsel %vm522_vm4, %v778_v49, %v519_v56  ;;  %vm532_vm7 = vmor %vm530_vm6, %vm531_vm5 }
 0x15b   :  { %534 = vst.msk [vmem:[%s1004_s5] sm:$0xff] %vm21_vm0, %v523_v58  ;;  %v526_v59 = vmul.f32 %v780_v55, %v525_v57 }
 0x15d   :  { %v527_v60 = vmul.f32 0.5, %v526_v59 }
 0x15f   :  { %v528_v61 = vsub.f32 1.5, %v527_v60 }
 0x161   :  { %v529_v62 = vmul.f32 %v780_v55, %v528_v61 }
 0x163   :  { %v533_v63 = vsel %vm532_vm7, %v780_v55, %v529_v62 }
 0x164   :  { %535 = vst.msk [vmem:[%s1004_s5 + $0x8] sm:$0xff] %vm21_vm0, %v533_v63 }

// kernel: critic_forward.12
= control target key start
LH: loop header
LB: loop body
LE: loop exit
PB: predicated region body
PF: predicated region fallthrough
CT: control target
= control target key end

     0   :  { %v160_v0 = vmov 0   ;;  %s263_s2 = inlined_call_operand.vmem [shape: f32[32,1], index: 2, kind: input, shape index: {}]   ;;  %s264_s1 = inlined_call_operand.vmem [shape: f32[32,1], index: 1, kind: input, shape index: {}]   ;;  %s265_s3 = inlined_call_operand.vmem [shape: f32[32,1], index: 3, kind: input, shape index: {}]   ;;  %s266_s4 = inlined_call_operand.vmem [shape: f32[32,1], index: 4, kind: input, shape index: {}]   ;;  %s267_s0 = inlined_call_operand.vmem [shape: f32[32,128], index: 0, kind: input, shape index: {}]   ;;  %s268_s5 = inlined_call_operand.vmem [shape: f32[32,128], index: 5, kind: output, shape index: {}]  }
   0x1   :  { %159 = vset.pattern.permute.xlu2 %v160_v0  ;;  %158 = vset.pattern.permute.xlu1 %v160_v0  ;;  %v52_v1 = vld [vmem:[%s263_s2] sm:$0xff]  ;;  %v26_v2 = vld [vmem:[%s264_s1 + $0x10] sm:$0xff]  ;;  %v53_v4 = vld [vmem:[%s263_s2 + $0x8] sm:$0xff] }
   0x2   :  { %v24_v3 = vld [vmem:[%s264_s1] sm:$0xff]  ;;  %157 = vset.pattern.permute.xlu0 %v160_v0  ;;  %58 = vperm.xlu2 %159, %v52_v1   ;;  %v27_v5 = vld [vmem:[%s264_s1 + $0x18] sm:$0xff]  ;;  %v25_v6 = vld [vmem:[%s264_s1 + $0x8] sm:$0xff] }
   0x3   :  { %40 = vperm.xlu1 %158, %v26_v2   ;;  %30 = vperm.xlu0 %157, %v24_v3   ;;  %v80_v7 = vld [vmem:[%s265_s3] sm:$0xff]  ;;  %v55_v8 = vld [vmem:[%s263_s2 + $0x18] sm:$0xff]  ;;  %v54_v9 = vld [vmem:[%s263_s2 + $0x10] sm:$0xff] }
   0x4   :  { %v83_v10 = vld [vmem:[%s265_s3 + $0x18] sm:$0xff]  ;;  %v82_v11 = vld [vmem:[%s265_s3 + $0x10] sm:$0xff]  ;;  %v81_v12 = vld [vmem:[%s265_s3 + $0x8] sm:$0xff] }
   0x5   :  { %v110_v13 = vld [vmem:[%s266_s4 + $0x10] sm:$0xff]  ;;  %v109_v14 = vld [vmem:[%s266_s4 + $0x8] sm:$0xff]  ;;  %v108_v15 = vld [vmem:[%s266_s4] sm:$0xff] }
   0x6   :  { %v111_v16 = vld [vmem:[%s266_s4 + $0x18] sm:$0xff]  ;;  %v22_v27 = vld [vmem:[%s267_s0 + $0x10] sm:$0xff]  ;;  %v20_v28 = vld [vmem:[%s267_s0] sm:$0xff] }
   0x7   :  { %v21_v30 = vld [vmem:[%s267_s0 + $0x8] sm:$0xff]  ;;  %v23_v40 = vld [vmem:[%s267_s0 + $0x18] sm:$0xff] }
   0xa   :  { %63 = vperm.xlu2 %159, %v53_v4  }
   0xb   :  { %45 = vperm.xlu1 %158, %v27_v5   ;;  %35 = vperm.xlu0 %157, %v25_v6  }
  0x12   :  { %86 = vperm.xlu2 %159, %v80_v7  }
  0x13   :  { %73 = vperm.xlu1 %158, %v55_v8   ;;  %68 = vperm.xlu0 %157, %v54_v9  }
  0x1a   :  { %101 = vperm.xlu2 %159, %v83_v10  }
  0x1b   :  { %96 = vperm.xlu1 %158, %v82_v11   ;;  %91 = vperm.xlu0 %157, %v81_v12  }
  0x22   :  { %124 = vperm.xlu2 %159, %v110_v13  }
  0x23   :  { %119 = vperm.xlu1 %158, %v109_v14   ;;  %114 = vperm.xlu0 %157, %v108_v15  }
  0x2b   :  { %129 = vperm.xlu0 %157, %v111_v16  }
  0x5c   :  { %v59_v17 = vpop.permute.xlu2 %58 }
  0x64   :  { %v64_v18 = vpop.permute.xlu2 %63 }
  0x6c   :  { %v87_v21 = vpop.permute.xlu2 %86 }
  0x74   :  { %v102_v24 = vpop.permute.xlu2 %101 }
  0x75   :  { %v41_v19 = vpop.permute.xlu1 %40  ;;  %v31_v20 = vpop.permute.xlu0 %30 }
  0x76   :  { %v50_v29 = vsub.f32 %v22_v27, %v41_v19  ;;  %v48_v31 = vsub.f32 %v20_v28, %v31_v20 }
  0x78   :  { %v76_v38 = vmul.f32 %v59_v17, %v48_v31 }
  0x7a   :  { %v104_v45 = vmul.f32 %v87_v21, %v76_v38 }
  0x7c   :  { %v125_v37 = vpop.permute.xlu2 %124 }
  0x7d   :  { %v46_v22 = vpop.permute.xlu1 %45  ;;  %v36_v23 = vpop.permute.xlu0 %35 }
  0x7e   :  { %v49_v35 = vsub.f32 %v21_v30, %v36_v23  ;;  %v51_v46 = vsub.f32 %v23_v40, %v46_v22 }
  0x80   :  { %v77_v42 = vmul.f32 %v64_v18, %v49_v35 }
  0x85   :  { %v74_v25 = vpop.permute.xlu1 %73  ;;  %v69_v26 = vpop.permute.xlu0 %68 }
  0x86   :  { %v78_v32 = vmul.f32 %v69_v26, %v50_v29  ;;  %v79_v51 = vmul.f32 %v74_v25, %v51_v46 }
  0x88   :  { %v107_v56 = vmul.f32 %v102_v24, %v79_v51 }
  0x8d   :  { %v97_v33 = vpop.permute.xlu1 %96  ;;  %v92_v34 = vpop.permute.xlu0 %91 }
  0x8e   :  { %v106_v36 = vmul.f32 %v97_v33, %v78_v32  ;;  %v105_v44 = vmul.f32 %v92_v34, %v77_v42 }
  0x90   :  { %v134_v39 = vadd.f32 %v125_v37, %v106_v36 }
  0x92   :  { %vm138_vm0 = vcmp.gt.f32.partialorder %v134_v39, 0.0  ;;  %v142_v41 = vmul.f32 0.01, %v134_v39 }
  0x94   :  { %v146_v43 = vsel %vm138_vm0, %v134_v39, %v142_v41 }
  0x95   :  { %150 = vst [vmem:[%s268_s5 + $0x10] sm:$0xff] %v146_v43  ;;  %v120_v47 = vpop.permute.xlu1 %119  ;;  %v115_v48 = vpop.permute.xlu0 %114 }
  0x96   :  { %v133_v49 = vadd.f32 %v120_v47, %v105_v44  ;;  %v132_v50 = vadd.f32 %v115_v48, %v104_v45 }
  0x98   :  { %vm137_vm1 = vcmp.gt.f32.partialorder %v133_v49, 0.0  ;;  %v141_v52 = vmul.f32 0.01, %v133_v49  ;;  %vm136_vm2 = vcmp.gt.f32.partialorder %v132_v50, 0.0  ;;  %v140_v53 = vmul.f32 0.01, %v132_v50 }
  0x9a   :  { %v145_v54 = vsel %vm137_vm1, %v133_v49, %v141_v52  ;;  %v144_v55 = vsel %vm136_vm2, %v132_v50, %v140_v53 }
  0x9b   :  { %149 = vst [vmem:[%s268_s5 + $0x8] sm:$0xff] %v145_v54 }
  0x9c   :  { %148 = vst [vmem:[%s268_s5] sm:$0xff] %v144_v55 }
  0x9d   :  { %v130_v57 = vpop.permute.xlu0 %129 }
  0x9e   :  { %v135_v58 = vadd.f32 %v130_v57, %v107_v56 }
  0xa0   :  { %vm139_vm3 = vcmp.gt.f32.partialorder %v135_v58, 0.0  ;;  %v143_v59 = vmul.f32 0.01, %v135_v58 }
  0xa2   :  { %v147_v60 = vsel %vm139_vm3, %v135_v58, %v143_v59 }
  0xa3   :  { %151 = vst [vmem:[%s268_s5 + $0x18] sm:$0xff] %v147_v60 }

// kernel: critic_forward.11
= control target key start
LH: loop header
LB: loop body
LE: loop exit
PB: predicated region body
PF: predicated region fallthrough
CT: control target
= control target key end

     0   :  { %v1536_v16 = vmov 0   ;;  %vm21_vm1 = vcmask 7168   ;;  %s1964_s1 = inlined_call_operand.vmem [shape: bf16[1152,128], index: 1, kind: input, shape index: {}]   ;;  %s1965_s2 = inlined_call_operand.vmem [shape: f32[32,1], index: 2, kind: input, shape index: {}]   ;;  %s1966_s0 = inlined_call_operand.vmem [shape: bf16[32,1152], index: 0, kind: input, shape index: {}]   ;;  %s1967_s3 = inlined_call_operand.vmem [shape: f32[32,128], index: 3, kind: output, shape index: {0}]   ;;  %s1968_s4 = inlined_call_operand.vmem [shape: f32[32,1], index: 4, kind: output, shape index: {1}]   ;;  %s1969_s5 = inlined_call_operand.vmem [shape: f32[32,1], index: 5, kind: output, shape index: {2}]  }
   0x1   :  { %v1451_v0 = vld [vmem:[%s1964_s1 + $0x38] sm:$0xff]  ;;  %v1450_v4 = vld [vmem:[%s1964_s1 + $0x30] sm:$0xff]  ;;  %v1449_v8 = vld [vmem:[%s1964_s1 + $0x28] sm:$0xff]  ;;  %1526 = vset.pattern.permute.xlu0 %v1536_v16  ;;  %1527 = vset.pattern.permute.xlu1 %v1536_v16 }
   0x2   :  { %v1459_v1 = vld [vmem:[%s1964_s1 + $0x78] sm:$0xff]  ;;  %742 = vmatpush.bf16.msra.mxu0 %v1451_v0  ;;  %v1458_v5 = vld [vmem:[%s1964_s1 + $0x70] sm:$0xff]  ;;  %v1457_v9 = vld [vmem:[%s1964_s1 + $0x68] sm:$0xff] }
   0x3   :  { %v1467_v2 = vld [vmem:[%s1964_s1 + $0xb8] sm:$0xff]  ;;  %761 = vmatpush.bf16.msra.mxu1 %v1459_v1  ;;  %v1466_v6 = vld [vmem:[%s1964_s1 + $0xb0] sm:$0xff]  ;;  %v1465_v10 = vld [vmem:[%s1964_s1 + $0xa8] sm:$0xff] }
   0x4   :  { %v1475_v3 = vld [vmem:[%s1964_s1 + $0xf8] sm:$0xff]  ;;  %780 = vmatpush.bf16.msra.mxu2 %v1467_v2  ;;  %v1474_v7 = vld [vmem:[%s1964_s1 + $0xf0] sm:$0xff]  ;;  %v1473_v11 = vld [vmem:[%s1964_s1 + $0xe8] sm:$0xff] }
   0x5   :  { %799 = vmatpush.bf16.msra.mxu3 %v1475_v3  ;;  %v1448_v12 = vld [vmem:[%s1964_s1 + $0x20] sm:$0xff]  ;;  %v1447_v17 = vld [vmem:[%s1964_s1 + $0x18] sm:$0xff]  ;;  %v1446_v22 = vld [vmem:[%s1964_s1 + $0x10] sm:$0xff] }
   0x6   :  { %743 = vmatpush.bf16.msra.mxu0 %v1450_v4  ;;  %v1456_v13 = vld [vmem:[%s1964_s1 + $0x60] sm:$0xff]  ;;  %v1455_v18 = vld [vmem:[%s1964_s1 + $0x58] sm:$0xff]  ;;  %v1454_v23 = vld [vmem:[%s1964_s1 + $0x50] sm:$0xff] }
   0x7   :  { %762 = vmatpush.bf16.msra.mxu1 %v1458_v5  ;;  %v1464_v14 = vld [vmem:[%s1964_s1 + $0xa0] sm:$0xff]  ;;  %v1463_v19 = vld [vmem:[%s1964_s1 + $0x98] sm:$0xff]  ;;  %v1462_v24 = vld [vmem:[%s1964_s1 + $0x90] sm:$0xff] }
   0x8   :  { %781 = vmatpush.bf16.msra.mxu2 %v1466_v6  ;;  %v1472_v15 = vld [vmem:[%s1964_s1 + $0xe0] sm:$0xff]  ;;  %v1471_v20 = vld [vmem:[%s1964_s1 + $0xd8] sm:$0xff]  ;;  %v1470_v25 = vld [vmem:[%s1964_s1 + $0xd0] sm:$0xff] }
   0x9   :  { %800 = vmatpush.bf16.msra.mxu3 %v1474_v7  ;;  %v194_v21 = vld [vmem:[%s1965_s2] sm:$0xff]  ;;  %v1445_v26 = vld [vmem:[%s1964_s1 + $0x8] sm:$0xff]  ;;  %v1077_v42 = vld [vmem:[%s1966_s0 + $0x2c] sm:$0xf0] }
   0xa   :  { %744 = vmatpush.bf16.msra.mxu0 %v1449_v8  ;;  %200 = vperm.xlu0 %1526, %v194_v21   ;;  %v1453_v27 = vld [vmem:[%s1964_s1 + $0x48] sm:$0xff]  ;;  %v1444_v30 = vld [vmem:[%s1964_s1] sm:$0xff]  ;;  %v196_v43 = vld [vmem:[%s1965_s2 + $0x10] sm:$0xff] }
   0xb   :  { %763 = vmatpush.bf16.msra.mxu1 %v1457_v9  ;;  %v1461_v28 = vld [vmem:[%s1964_s1 + $0x88] sm:$0xff]  ;;  %v1452_v31 = vld [vmem:[%s1964_s1 + $0x40] sm:$0xff]  ;;  %v1483_v44 = vld [vmem:[%s1964_s1 + $0x138] sm:$0xff]  ;;  %210 = vperm.xlu1 %1527, %v196_v43  }
   0xc   :  { %782 = vmatpush.bf16.msra.mxu2 %v1465_v10  ;;  %v1469_v29 = vld [vmem:[%s1964_s1 + $0xc8] sm:$0xff]  ;;  %v1067_v32 = vld [vmem:[%s1966_s0] sm:$0xf]  ;;  %v1430_v35 = vld [vmem:[%s1966_s0 + $0x20] sm:$0xf0] }
   0xd   :  { %801 = vmatpush.bf16.msra.mxu3 %v1473_v11  ;;  %v1460_v33 = vld [vmem:[%s1964_s1 + $0x80] sm:$0xff]  ;;  %v195_v37 = vld [vmem:[%s1965_s2 + $0x8] sm:$0xff]  ;;  %v1491_v45 = vld [vmem:[%s1964_s1 + $0x178] sm:$0xff]  ;;  %v1068_v46 = vor.u32 %v1430_v35, %v1067_v32 }
   0xe   :  { %745 = vmatpush.bf16.msra.mxu0 %v1448_v12  ;;  %v1468_v34 = vld [vmem:[%s1964_s1 + $0xc0] sm:$0xff]  ;;  %v1069_v38 = vld [vmem:[%s1966_s0 + $0x24] sm:$0xf0]  ;;  %v1431_v40 = vld [vmem:[%s1966_s0 + $0x28] sm:$0xf0] }
   0xf   :  { %764 = vmatpush.bf16.msra.mxu1 %v1456_v13  ;;  %v1426_v36 = vld [vmem:[%s1966_s0 + $0x4] sm:$0xf]  ;;  %v1075_v39 = vld [vmem:[%s1966_s0 + $0x8] sm:$0xf]  ;;  %v1427_v41 = vld [vmem:[%s1966_s0 + $0xc] sm:$0xf] }
  0x10   :  { %783 = vmatpush.bf16.msra.mxu2 %v1464_v14  ;;  %v1072_v47 = vor.u32 %v1426_v36, %v1069_v38  ;;  %v1076_v48 = vor.u32 %v1431_v40, %v1075_v39  ;;  %v1080_v49 = vor.u32 %v1427_v41, %v1077_v42  ;;  %v1499_v50 = vld [vmem:[%s1964_s1 + $0x1b8] sm:$0xff]  ;;  %v1482_v52 = vld [vmem:[%s1964_s1 + $0x130] sm:$0xff]  ;;  %v1481_v57 = vld [vmem:[%s1964_s1 + $0x128] sm:$0xff] }
  0x11   :  { %802 = vmatpush.bf16.msra.mxu3 %v1472_v15  ;;  %v1507_v51 = vld [vmem:[%s1964_s1 + $0x1f8] sm:$0xff]  ;;  %v1490_v53 = vld [vmem:[%s1964_s1 + $0x170] sm:$0xff]  ;;  %v1489_v58 = vld [vmem:[%s1964_s1 + $0x168] sm:$0xff] }
  0x12   :  { %746 = vmatpush.bf16.msra.mxu0 %v1447_v17  ;;  %205 = vperm.xlu0 %1526, %v195_v37   ;;  %v197_v54 = vld [vmem:[%s1965_s2 + $0x18] sm:$0xff]  ;;  %v1498_v55 = vld [vmem:[%s1964_s1 + $0x1b0] sm:$0xff]  ;;  %v1497_v59 = vld [vmem:[%s1964_s1 + $0x1a8] sm:$0xff] }
  0x13   :  { %765 = vmatpush.bf16.msra.mxu1 %v1455_v18  ;;  %v1506_v56 = vld [vmem:[%s1964_s1 + $0x1f0] sm:$0xff]  ;;  %215 = vperm.xlu1 %1527, %v197_v54   ;;  %v1505_v60 = vld [vmem:[%s1964_s1 + $0x1e8] sm:$0xff]  ;;  %v1480_v61 = vld [vmem:[%s1964_s1 + $0x120] sm:$0xff] }
  0x14   :  { %784 = vmatpush.bf16.msra.mxu2 %v1463_v19  ;;  %v1488_v62 = vld [vmem:[%s1964_s1 + $0x160] sm:$0xff]  ;;  %v1103_v1 = vld [vmem:[%s1966_s0 + $0x48] sm:$0xf]  ;;  %v1439_v2 = vld [vmem:[%s1966_s0 + $0x68] sm:$0xf0] }
  0x15   :  { %803 = vmatpush.bf16.msra.mxu3 %v1471_v20  ;;  %v1496_v63 = vld [vmem:[%s1964_s1 + $0x1a0] sm:$0xff]  ;;  %v1435_v3 = vld [vmem:[%s1966_s0 + $0x4c] sm:$0xf]  ;;  %v1105_v4 = vld [vmem:[%s1966_s0 + $0x6c] sm:$0xf0]  ;;  %v1104_v11 = vor.u32 %v1439_v2, %v1103_v1 }
  0x16   :  { %747 = vmatpush.bf16.msra.mxu0 %v1446_v22  ;;  %v1504_v0 = vld [vmem:[%s1964_s1 + $0x1e0] sm:$0xff]  ;;  %v1111_v5 = vld [vmem:[%s1966_s0 + $0x50] sm:$0xf]  ;;  %v1440_v6 = vld [vmem:[%s1966_s0 + $0x70] sm:$0xf0]  ;;  %v1108_v12 = vor.u32 %v1435_v3, %v1105_v4 }
  0x17   :  { %766 = vmatpush.bf16.msra.mxu1 %v1454_v23  ;;  %v1436_v7 = vld [vmem:[%s1966_s0 + $0x54] sm:$0xf]  ;;  %v1113_v8 = vld [vmem:[%s1966_s0 + $0x74] sm:$0xf0]  ;;  %v1112_v13 = vor.u32 %v1440_v6, %v1111_v5  ;;  %v1477_v21 = vld [vmem:[%s1964_s1 + $0x108] sm:$0xff] }
  0x18   :  { %785 = vmatpush.bf16.msra.mxu2 %v1462_v24  ;;  %v1479_v9 = vld [vmem:[%s1964_s1 + $0x118] sm:$0xff]  ;;  %v1116_v14 = vor.u32 %v1436_v7, %v1113_v8  ;;  %v1478_v17 = vld [vmem:[%s1964_s1 + $0x110] sm:$0xff]  ;;  %v1485_v22 = vld [vmem:[%s1964_s1 + $0x148] sm:$0xff] }
  0x19   :  { %804 = vmatpush.bf16.msra.mxu3 %v1470_v25  ;;  %v1487_v10 = vld [vmem:[%s1964_s1 + $0x158] sm:$0xff]  ;;  %v1486_v18 = vld [vmem:[%s1964_s1 + $0x150] sm:$0xff]  ;;  %v1493_v23 = vld [vmem:[%s1964_s1 + $0x188] sm:$0xff] }
  0x1a   :  { %748 = vmatpush.bf16.msra.mxu0 %v1445_v26  ;;  %v1495_v15 = vld [vmem:[%s1964_s1 + $0x198] sm:$0xff]  ;;  %v1494_v19 = vld [vmem:[%s1964_s1 + $0x190] sm:$0xff]  ;;  %v1501_v24 = vld [vmem:[%s1964_s1 + $0x1c8] sm:$0xff] }
  0x1b   :  { %767 = vmatpush.bf16.msra.mxu1 %v1453_v27  ;;  %v1503_v16 = vld [vmem:[%s1964_s1 + $0x1d8] sm:$0xff]  ;;  %v1502_v20 = vld [vmem:[%s1964_s1 + $0x1d0] sm:$0xff]  ;;  %v1476_v25 = vld [vmem:[%s1964_s1 + $0x100] sm:$0xff] }
  0x1c   :  { %786 = vmatpush.bf16.msra.mxu2 %v1461_v28  ;;  %v1484_v26 = vld [vmem:[%s1964_s1 + $0x140] sm:$0xff]  ;;  %v1428_v32 = vld [vmem:[%s1966_s0 + $0x14] sm:$0xf]  ;;  %v1433_v35 = vld [vmem:[%s1966_s0 + $0x38] sm:$0xf0] }
  0x1d   :  { %805 = vmatpush.bf16.msra.mxu3 %v1469_v29  ;;  %v1492_v27 = vld [vmem:[%s1964_s1 + $0x180] sm:$0xff]  ;;  %v1083_v29 = vld [vmem:[%s1966_s0 + $0x10] sm:$0xf]  ;;  %v1429_v36 = vld [vmem:[%s1966_s0 + $0x1c] sm:$0xf] }
  0x1e   :  { %749 = vmatpush.bf16.msra.mxu0 %v1444_v30  ;;  %v1500_v28 = vld [vmem:[%s1964_s1 + $0x1c0] sm:$0xff]  ;;  %v1432_v30 = vld [vmem:[%s1966_s0 + $0x30] sm:$0xf0]  ;;  %v1513_v43 = vld [vmem:[%s1964_s1 + $0x228] sm:$0xff] }
  0x1f   :  { %768 = vmatpush.bf16.msra.mxu1 %v1452_v31  ;;  %v1515_v31 = vld [vmem:[%s1964_s1 + $0x238] sm:$0xff]  ;;  %v1093_v37 = vld [vmem:[%s1966_s0 + $0x3c] sm:$0xf0]  ;;  %v1084_v38 = vor.u32 %v1432_v30, %v1083_v29  ;;  %v1514_v42 = vld [vmem:[%s1964_s1 + $0x230] sm:$0xff] }
  0x20   :  { %787 = vmatpush.bf16.msra.mxu2 %v1460_v33  ;;  %v1085_v33 = vld [vmem:[%s1966_s0 + $0x34] sm:$0xf0]  ;;  %v1096_v41 = vor.u32 %v1429_v36, %v1093_v37 }
  0x21   :  { %806 = vmatpush.bf16.msra.mxu3 %v1468_v34  ;;  %750 = vmatmul.bf16.vlgmr.msra.gmra.mxu0 %v1068_v46  ;;  %v1091_v34 = vld [vmem:[%s1966_s0 + $0x18] sm:$0xf]  ;;  %v1088_v39 = vor.u32 %v1428_v32, %v1085_v33  ;;  %v1441_v46 = vld [vmem:[%s1966_s0 + $0x78] sm:$0xf0] }
  0x22   :  { %818 = vmatpush.bf16.msrb.mxu0 %v1483_v44  ;;  %769 = vmatmul.bf16.vlgmr.msra.gmra.mxu1 %v1072_v47  ;;  %v1092_v40 = vor.u32 %v1433_v35, %v1091_v34  ;;  %v1512_v44 = vld [vmem:[%s1964_s1 + $0x220] sm:$0xff]  ;;  %v1437_v47 = vld [vmem:[%s1966_s0 + $0x5c] sm:$0xf] }
  0x23   :  { %837 = vmatpush.bf16.msrb.mxu1 %v1491_v45  ;;  %788 = vmatmul.bf16.vlgmr.msra.gmra.mxu2 %v1076_v48  ;;  %v1119_v45 = vld [vmem:[%s1966_s0 + $0x58] sm:$0xf]  ;;  %v1121_v48 = vld [vmem:[%s1966_s0 + $0x7c] sm:$0xf0] }
  0x24   :  { %807 = vmatmul.bf16.vlgmr.msra.gmra.mxu3 %v1080_v49  ;;  %856 = vmatpush.bf16.msrb.mxu2 %v1499_v50  ;;  %v1127_v49 = vld [vmem:[%s1966_s0 + $0x60] sm:$0xf]  ;;  %v1442_v50 = vld [vmem:[%s1966_s0 + $0x80] sm:$0xf0]  ;;  %v1120_v54 = vor.u32 %v1441_v46, %v1119_v45 }
  0x25   :  { %875 = vmatpush.bf16.msrb.mxu3 %v1507_v51  ;;  %v1511_v51 = vld [vmem:[%s1964_s1 + $0x218] sm:$0xff] }
  0x26   :  { %819 = vmatpush.bf16.msrb.mxu0 %v1482_v52  ;;  %v1438_v52 = vld [vmem:[%s1966_s0 + $0x64] sm:$0xf] }
  0x27   :  { %838 = vmatpush.bf16.msrb.mxu1 %v1490_v53  ;;  %v1129_v53 = vld [vmem:[%s1966_s0 + $0x84] sm:$0xf0] }
  0x28   :  { %857 = vmatpush.bf16.msrb.mxu2 %v1498_v55  ;;  %v1124_v55 = vor.u32 %v1437_v47, %v1121_v48  ;;  %v917_v47 = vlaneseq }
  0x29   :  { %876 = vmatpush.bf16.msrb.mxu3 %v1506_v56  ;;  %v1128_v56 = vor.u32 %v1442_v50, %v1127_v49 }
  0x2a   :  { %820 = vmatpush.bf16.msrb.mxu0 %v1481_v57  ;;  %v1132_v57 = vor.u32 %v1438_v52, %v1129_v53 }
  0x2b   :  { %839 = vmatpush.bf16.msrb.mxu1 %v1489_v58  ;;  %v1510_v58 = vld [vmem:[%s1964_s1 + $0x210] sm:$0xff] }
  0x2c   :  { %858 = vmatpush.bf16.msrb.mxu2 %v1497_v59  ;;  %v1509_v59 = vld [vmem:[%s1964_s1 + $0x208] sm:$0xff] }
  0x2d   :  { %877 = vmatpush.bf16.msrb.mxu3 %v1505_v60  ;;  %v1508_v60 = vld [vmem:[%s1964_s1 + $0x200] sm:$0xff] }
  0x2e   :  { %821 = vmatpush.bf16.msrb.mxu0 %v1480_v61  ;;  %v1099_v61 = vld [vmem:[%s1966_s0 + $0x20] sm:$0xf] }
  0x2f   :  { %840 = vmatpush.bf16.msrb.mxu1 %v1488_v62  ;;  %v1434_v62 = vld [vmem:[%s1966_s0 + $0x40] sm:$0xf0] }
  0x30   :  { %859 = vmatpush.bf16.msrb.mxu2 %v1496_v63  ;;  %v1135_v63 = vld [vmem:[%s1966_s0 + $0x68] sm:$0xf]  ;;  %v1100_v1 = vor.u32 %v1434_v62, %v1099_v61 }
  0x31   :  { %878 = vmatpush.bf16.msrb.mxu3 %v1504_v0  ;;  %755 = vmatmul.bf16.gmra.mxu0 %v1104_v11  ;;  %v1443_v0 = vld [vmem:[%s1966_s0 + $0x88] sm:$0xf0] }
  0x32   :  { %822 = vmatpush.bf16.msrb.mxu0 %v1479_v9  ;;  %774 = vmatmul.bf16.gmra.mxu1 %v1108_v12  ;;  %v1136_v2 = vor.u32 %v1443_v0, %v1135_v63 }
  0x33   :  { %841 = vmatpush.bf16.msrb.mxu1 %v1487_v10  ;;  %793 = vmatmul.bf16.gmra.mxu2 %v1112_v13 }
  0x34   :  { %812 = vmatmul.bf16.gmra.mxu3 %v1116_v14  ;;  %860 = vmatpush.bf16.msrb.mxu2 %v1495_v15 }
  0x35   :  { %879 = vmatpush.bf16.msrb.mxu3 %v1503_v16 }
  0x36   :  { %823 = vmatpush.bf16.msrb.mxu0 %v1478_v17 }
  0x37   :  { %842 = vmatpush.bf16.msrb.mxu1 %v1486_v18 }
  0x38   :  { %861 = vmatpush.bf16.msrb.mxu2 %v1494_v19 }
  0x39   :  { %880 = vmatpush.bf16.msrb.mxu3 %v1502_v20 }
  0x3a   :  { %824 = vmatpush.bf16.msrb.mxu0 %v1477_v21 }
  0x3b   :  { %843 = vmatpush.bf16.msrb.mxu1 %v1485_v22 }
  0x3c   :  { %862 = vmatpush.bf16.msrb.mxu2 %v1493_v23 }
  0x3d   :  { %881 = vmatpush.bf16.msrb.mxu3 %v1501_v24 }
  0x3e   :  { %825 = vmatpush.bf16.msrb.mxu0 %v1476_v25 }
  0x3f   :  { %844 = vmatpush.bf16.msrb.mxu1 %v1484_v26 }
  0x40   :  { %863 = vmatpush.bf16.msrb.mxu2 %v1492_v27 }
  0x41   :  { %882 = vmatpush.bf16.msrb.mxu3 %v1500_v28  ;;  %826 = vmatmul.bf16.vlgmr.msrb.gmra.mxu0 %v1084_v38 }
  0x42   :  { %894 = vmatpush.bf16.msra.mxu0 %v1515_v31  ;;  %845 = vmatmul.bf16.vlgmr.msrb.gmra.mxu1 %v1088_v39 }
  0x43   :  { %1516 = vmatpush.bf16.msra.mxu1 %v1515_v31  ;;  %864 = vmatmul.bf16.vlgmr.msrb.gmra.mxu2 %v1092_v40 }
  0x44   :  { %883 = vmatmul.bf16.vlgmr.msrb.gmra.mxu3 %v1096_v41 }
  0x46   :  { %895 = vmatpush.bf16.msra.mxu0 %v1514_v42 }
  0x47   :  { %1517 = vmatpush.bf16.msra.mxu1 %v1514_v42 }
  0x4a   :  { %896 = vmatpush.bf16.msra.mxu0 %v1513_v43 }
  0x4b   :  { %1518 = vmatpush.bf16.msra.mxu1 %v1513_v43 }
  0x4e   :  { %897 = vmatpush.bf16.msra.mxu0 %v1512_v44 }
  0x4f   :  { %1519 = vmatpush.bf16.msra.mxu1 %v1512_v44 }
  0x51   :  { %831 = vmatmul.bf16.gmra.mxu0 %v1120_v54 }
  0x52   :  { %898 = vmatpush.bf16.msra.mxu0 %v1511_v51  ;;  %850 = vmatmul.bf16.gmra.mxu1 %v1124_v55  ;;  %v918_v55 = vand.u32 127, %v917_v47 }
  0x53   :  { %1520 = vmatpush.bf16.msra.mxu1 %v1511_v51  ;;  %869 = vmatmul.bf16.gmra.mxu2 %v1128_v56 }
  0x54   :  { %888 = vmatmul.bf16.gmra.mxu3 %v1132_v57  ;;  %vm922_vm0 = vcmp.lt.s32.totalorder %v918_v55, 16 }
  0x56   :  { %899 = vmatpush.bf16.msra.mxu0 %v1510_v58 }
  0x57   :  { %1521 = vmatpush.bf16.msra.mxu1 %v1510_v58 }
  0x5a   :  { %900 = vmatpush.bf16.msra.mxu0 %v1509_v59 }
  0x5b   :  { %1522 = vmatpush.bf16.msra.mxu1 %v1509_v59 }
  0x5e   :  { %901 = vmatpush.bf16.msra.mxu0 %v1508_v60 }
  0x5f   :  { %1523 = vmatpush.bf16.msra.mxu1 %v1508_v60 }
  0x61   :  { %902 = vmatmul.bf16.vlgmr.msra.gmra.mxu0 %v1100_v1 }
  0x62   :  { %907 = vmatmul.bf16.vlgmr.msra.gmra.mxu1 %v1136_v2 }
  0x7c   :  { %v201_v21 = vpop.permute.xlu0 %200 }
  0x7d   :  { %v211_v22 = vpop.permute.xlu1 %210 }
  0x84   :  { %v206_v30 = vpop.permute.xlu0 %205 }
  0x85   :  { %v216_v32 = vpop.permute.xlu1 %215 }
  0x9e   :  { %v751_v3 = vpop.f32.mrf.mxu0 }
  0x9f   :  { %v770_v4 = vpop.f32.mrf.mxu1  ;;  %v752_v27 = vadd.f32 %v751_v3, %v201_v21 }
  0xa1   :  { %v771_v29 = vadd.f32 %v770_v4, %v752_v27  ;;  %v1537_v4 = vmov 0.0  }
  0xa2   :  { %24 = vst.msk [vmem:[#allocation2 + $0x10] sm:$0xff] %vm21_vm1, %v1537_v4 }
  0xa3   :  { %22 = vst.msk [vmem:[#allocation2] sm:$0xff] %vm21_vm1, %v1537_v4 }
  0xa4   :  { %23 = vst.msk [vmem:[#allocation2 + $0x8] sm:$0xff] %vm21_vm1, %v1537_v4 }
  0xa5   :  { %25 = vst.msk [vmem:[#allocation2 + $0x18] sm:$0xff] %vm21_vm1, %v1537_v4 }
  0xa6   :  { %v789_v5 = vpop.f32.mrf.mxu2  ;;  %v753_v7 = vpop.f32.mrf.mxu0  ;;  %26 = vst.msk [vmem:[#allocation3] sm:$0xff] %vm21_vm1, %v1537_v4 }
  0xa7   :  { %v808_v6 = vpop.f32.mrf.mxu3  ;;  %v772_v8 = vpop.f32.mrf.mxu1  ;;  %v790_v33 = vadd.f32 %v789_v5, %v771_v29  ;;  %v754_v37 = vadd.f32 %v753_v7, %v206_v30  ;;  %v1425_v5 = vsel %vm922_vm0, 1.0, %v1537_v4  ;;  %27 = vst.msk [vmem:[#allocation3 + $0x8] sm:$0xff] %vm21_vm1, %v1537_v4 }
  0xa8   :  { %28 = vst.msk [vmem:[#allocation3 + $0x10] sm:$0xff] %vm21_vm1, %v1537_v4 }
  0xa9   :  { %v809_v41 = vadd.f32 %v808_v6, %v790_v33  ;;  %v773_v43 = vadd.f32 %v772_v8, %v754_v37  ;;  %29 = vst.msk [vmem:[#allocation3 + $0x18] sm:$0xff] %vm21_vm1, %v1537_v4  ;;  %v931_v27 = vld [vmem:[#allocation2 + $0x10] sm:$0xff] }
  0xac   :  { %v932_v33 = vld [vmem:[#allocation2 + $0x18] sm:$0xff] }
  0xae   :  { %v791_v9 = vpop.f32.mrf.mxu2  ;;  %v756_v11 = vpop.f32.mrf.mxu0 }
  0xaf   :  { %v810_v10 = vpop.f32.mrf.mxu3  ;;  %v775_v12 = vpop.f32.mrf.mxu1  ;;  %v757_v28 = vadd.f32 %v756_v11, %v211_v22  ;;  %v792_v48 = vadd.f32 %v791_v9, %v773_v43  ;;  %v950_v43 = vld [vmem:[#allocation3] sm:$0xff] }
  0xb1   :  { %v776_v31 = vadd.f32 %v775_v12, %v757_v28  ;;  %v811_v57 = vadd.f32 %v810_v10, %v792_v48  ;;  %v929_v28 = vld [vmem:[#allocation2] sm:$0xff] }
  0xb6   :  { %v794_v13 = vpop.f32.mrf.mxu2  ;;  %v758_v15 = vpop.f32.mrf.mxu0 }
  0xb7   :  { %v813_v14 = vpop.f32.mrf.mxu3  ;;  %v777_v16 = vpop.f32.mrf.mxu1  ;;  %v795_v34 = vadd.f32 %v794_v13, %v776_v31  ;;  %v759_v40 = vadd.f32 %v758_v15, %v216_v32 }
  0xb9   :  { %v814_v42 = vadd.f32 %v813_v14, %v795_v34  ;;  %v778_v44 = vadd.f32 %v777_v16, %v759_v40  ;;  %v930_v34 = vld [vmem:[#allocation2 + $0x8] sm:$0xff] }
  0xbe   :  { %v796_v17 = vpop.f32.mrf.mxu2  ;;  %v827_v19 = vpop.f32.mrf.mxu0 }
  0xbf   :  { %v815_v18 = vpop.f32.mrf.mxu3  ;;  %v846_v20 = vpop.f32.mrf.mxu1  ;;  %v828_v45 = vadd.f32 %v827_v19, %v809_v41  ;;  %v797_v49 = vadd.f32 %v796_v17, %v778_v44 }
  0xc1   :  { %v847_v53 = vadd.f32 %v846_v20, %v828_v45  ;;  %v816_v58 = vadd.f32 %v815_v18, %v797_v49 }
  0xc6   :  { %v865_v23 = vpop.f32.mrf.mxu2  ;;  %v829_v25 = vpop.f32.mrf.mxu0 }
  0xc7   :  { %v884_v24 = vpop.f32.mrf.mxu3  ;;  %v848_v26 = vpop.f32.mrf.mxu1  ;;  %v866_v59 = vadd.f32 %v865_v23, %v847_v53  ;;  %v830_v61 = vadd.f32 %v829_v25, %v811_v57  ;;  %v951_v57 = vld [vmem:[#allocation3 + $0x8] sm:$0xff] }
  0xc9   :  { %v885_v63 = vadd.f32 %v884_v24, %v866_v59  ;;  %v849_v6 = vadd.f32 %v848_v26, %v830_v61 }
  0xce   :  { %v867_v35 = vpop.f32.mrf.mxu2  ;;  %v832_v38 = vpop.f32.mrf.mxu0 }
  0xcf   :  { %v886_v36 = vpop.f32.mrf.mxu3  ;;  %v851_v39 = vpop.f32.mrf.mxu1  ;;  %v833_v46 = vadd.f32 %v832_v38, %v814_v42  ;;  %v868_v11 = vadd.f32 %v867_v35, %v849_v6 }
  0xd1   :  { %v852_v54 = vadd.f32 %v851_v39, %v833_v46  ;;  %v887_v15 = vadd.f32 %v886_v36, %v868_v11 }
  0xd6   :  { %v870_v50 = vpop.f32.mrf.mxu2  ;;  %v834_v51 = vpop.f32.mrf.mxu0 }
  0xd7   :  { %v853_v52 = vpop.f32.mrf.mxu1  ;;  %v889_v56 = vpop.f32.mrf.mxu3  ;;  %v871_v60 = vadd.f32 %v870_v50, %v852_v54  ;;  %v835_v62 = vadd.f32 %v834_v51, %v816_v58  ;;  %v952_v50 = vld [vmem:[#allocation3 + $0x10] sm:$0xff] }
  0xd9   :  { %v890_v0 = vadd.f32 %v889_v56, %v871_v60  ;;  %v854_v7 = vadd.f32 %v853_v52, %v835_v62 }
  0xde   :  { %v872_v1 = vpop.f32.mrf.mxu2  ;;  %v903_v2 = vpop.f32.mrf.mxu0 }
  0xdf   :  { %v908_v3 = vpop.f32.mrf.mxu1  ;;  %v904_v8 = vadd.f32 %v903_v2, %v885_v63  ;;  %v873_v12 = vadd.f32 %v872_v1, %v854_v7  ;;  %v891_v14 = vpop.f32.mrf.mxu3  ;;  %v953_v1 = vld [vmem:[#allocation3 + $0x18] sm:$0xff] }
  0xe0   :  { %v909_v9 = vadd.f32 %v908_v3, %v890_v0 }
  0xe1   :  { %913 = vst [vmem:[%s1967_s3] sm:$0xff] %v904_v8  ;;  %v925_v13 = vmul.f32 %v1425_v5, %v904_v8  ;;  %v892_v16 = vadd.f32 %v891_v14, %v873_v12 }
  0xe2   :  { %v927_v10 = vmul.f32 %v1425_v5, %v909_v9  ;;  %915 = vst [vmem:[%s1967_s3 + $0x10] sm:$0xff] %v909_v9 }
  0xe3   :  { %933 = vadd.xlane.f32.xlu2 %v925_v13  ;;  %v954_v23 = vmul.f32 %v925_v13, %v925_v13 }
  0xe4   :  { %937 = vadd.xlane.f32.xlu0 %v927_v10  ;;  %v956_v24 = vmul.f32 %v927_v10, %v927_v10 }
  0xe6   :  { %v905_v17 = vpop.f32.mrf.mxu0 }
  0xe7   :  { %v910_v18 = vpop.f32.mrf.mxu1  ;;  %v906_v19 = vadd.f32 %v905_v17, %v887_v15 }
  0xe8   :  { %v911_v20 = vadd.f32 %v910_v18, %v892_v16 }
  0xe9   :  { %914 = vst [vmem:[%s1967_s3 + $0x8] sm:$0xff] %v906_v19  ;;  %v926_v22 = vmul.f32 %v1425_v5, %v906_v19 }
  0xea   :  { %v928_v21 = vmul.f32 %v1425_v5, %v911_v20  ;;  %916 = vst [vmem:[%s1967_s3 + $0x18] sm:$0xff] %v911_v20 }
  0xeb   :  { %935 = vadd.xlane.f32.xlu2 %v926_v22  ;;  %v955_v25 = vmul.f32 %v926_v22, %v926_v22 }
  0xec   :  { %939 = vadd.xlane.f32.xlu1 %v928_v21  ;;  %v957_v26 = vmul.f32 %v928_v21, %v928_v21 }
  0xf3   :  { %958 = vadd.xlane.f32.xlu2 %v954_v23 }
  0xfb   :  { %962 = vadd.xlane.f32.xlu2 %v956_v24 }
 0x103   :  { %960 = vadd.xlane.f32.xlu2 %v955_v25 }
 0x10b   :  { %964 = vadd.xlane.f32.xlu2 %v957_v26 }
 0x156   :  { %v934_v30 = vpop.xlane.xlu2 %933 }
 0x157   :  { %v938_v29 = vpop.xlane.xlu0 %937  ;;  %v941_v32 = vadd.f32 %v934_v30, %v929_v28 }
 0x158   :  { %v943_v31 = vadd.f32 %v938_v29, %v931_v27 }
 0x159   :  { %946 = vst.msk [vmem:[#allocation2] sm:$0xff] %vm21_vm1, %v941_v32 }
 0x15a   :  { %948 = vst.msk [vmem:[#allocation2 + $0x10] sm:$0xff] %vm21_vm1, %v943_v31 }
 0x15e   :  { %v936_v36 = vpop.xlane.xlu2 %935 }
 0x15f   :  { %v940_v35 = vpop.xlane.xlu1 %939  ;;  %v942_v38 = vadd.f32 %v936_v36, %v930_v34 }
 0x160   :  { %v944_v37 = vadd.f32 %v940_v35, %v932_v33  ;;  %v977_v41 = vld [vmem:[#allocation2] sm:$0xff] }
 0x161   :  { %v979_v39 = vld [vmem:[#allocation2 + $0x10] sm:$0xff]  ;;  %v981_v42 = vmul.f32 0.0625, %v977_v41  ;;  %947 = vst.msk [vmem:[#allocation2 + $0x8] sm:$0xff] %vm21_vm1, %v942_v38 }
 0x162   :  { %v983_v40 = vmul.f32 0.0625, %v979_v39  ;;  %949 = vst.msk [vmem:[#allocation2 + $0x18] sm:$0xff] %vm21_vm1, %v944_v37 }
 0x163   :  { %1001 = vst.msk [vmem:[%s1968_s4] sm:$0xff] %vm21_vm1, %v981_v42  ;;  %v993_v54 = vmul.f32 %v981_v42, %v981_v42 }
 0x164   :  { %1003 = vst.msk [vmem:[%s1968_s4 + $0x10] sm:$0xff] %vm21_vm1, %v983_v40  ;;  %v995_v62 = vmul.f32 %v983_v40, %v983_v40 }
 0x166   :  { %v959_v44 = vpop.xlane.xlu2 %958 }
 0x167   :  { %v966_v45 = vadd.f32 %v959_v44, %v950_v43 }
 0x168   :  { %v978_v48 = vld [vmem:[#allocation2 + $0x8] sm:$0xff] }
 0x169   :  { %v980_v46 = vld [vmem:[#allocation2 + $0x18] sm:$0xff]  ;;  %970 = vst.msk [vmem:[#allocation3] sm:$0xff] %vm21_vm1, %v966_v45  ;;  %v982_v49 = vmul.f32 0.0625, %v978_v48 }
 0x16a   :  { %v984_v47 = vmul.f32 0.0625, %v980_v46 }
 0x16b   :  { %1002 = vst.msk [vmem:[%s1968_s4 + $0x8] sm:$0xff] %vm21_vm1, %v982_v49  ;;  %v994_v9 = vmul.f32 %v982_v49, %v982_v49 }
 0x16c   :  { %1004 = vst.msk [vmem:[%s1968_s4 + $0x18] sm:$0xff] %vm21_vm1, %v984_v47  ;;  %v996_v21 = vmul.f32 %v984_v47, %v984_v47 }
 0x16e   :  { %v963_v51 = vpop.xlane.xlu2 %962 }
 0x16f   :  { %v968_v52 = vadd.f32 %v963_v51, %v952_v50 }
 0x170   :  { %v985_v53 = vld [vmem:[#allocation3] sm:$0xff] }
 0x171   :  { %v989_v55 = vmul.f32 0.0625, %v985_v53  ;;  %972 = vst.msk [vmem:[#allocation3 + $0x10] sm:$0xff] %vm21_vm1, %v968_v52 }
 0x173   :  { %v997_v56 = vsub.f32 %v989_v55, %v993_v54 }
 0x175   :  { %v1005_v58 = vadd.f32 1e-05, %v997_v56 }
 0x176   :  { %v961_v59 = vpop.xlane.xlu2 %960 }
 0x177   :  { %1528 = vrsqrt.f32 %v1005_v58  ;;  %v967_v60 = vadd.f32 %v961_v59, %v951_v57  ;;  %vm1015_vm3 = vweird.f32 %v1005_v58 }
 0x178   :  { %v987_v61 = vld [vmem:[#allocation3 + $0x10] sm:$0xff] }
 0x179   :  { %v991_v63 = vmul.f32 0.0625, %v987_v61  ;;  %971 = vst.msk [vmem:[#allocation3 + $0x8] sm:$0xff] %vm21_vm1, %v967_v60 }
 0x17b   :  { %v999_v0 = vsub.f32 %v991_v63, %v995_v62 }
 0x17d   :  { %v1529_v2 = vpop.eup %1528  ;;  %v1007_v3 = vadd.f32 1e-05, %v999_v0 }
 0x17e   :  { %v1010_v4 = vmul.f32 %v1529_v2, %v1005_v58  ;;  %v965_v5 = vpop.xlane.xlu2 %964  ;;  %vm1016_vm2 = vweird.f32 %v1529_v2 }
 0x17f   :  { %1530 = vrsqrt.f32 %v1007_v3  ;;  %v969_v6 = vadd.f32 %v965_v5, %v953_v1  ;;  %vm1017_vm4 = vmor %vm1015_vm3, %vm1016_vm2  ;;  %vm1035_vm6 = vweird.f32 %v1007_v3 }
 0x180   :  { %v1011_v7 = vmul.f32 %v1529_v2, %v1010_v4  ;;  %v986_v8 = vld [vmem:[#allocation3 + $0x8] sm:$0xff] }
 0x181   :  { %v990_v11 = vmul.f32 0.0625, %v986_v8  ;;  %973 = vst.msk [vmem:[#allocation3 + $0x18] sm:$0xff] %vm21_vm1, %v969_v6 }
 0x182   :  { %v1012_v12 = vmul.f32 0.5, %v1011_v7 }
 0x183   :  { %v998_v10 = vsub.f32 %v990_v11, %v994_v9 }
 0x184   :  { %v1013_v13 = vsub.f32 1.5, %v1012_v12 }
 0x185   :  { %v1531_v14 = vpop.eup %1530  ;;  %v1006_v15 = vadd.f32 1e-05, %v998_v10 }
 0x186   :  { %v1014_v16 = vmul.f32 %v1529_v2, %v1013_v13  ;;  %v1030_v17 = vmul.f32 %v1531_v14, %v1007_v3  ;;  %vm1036_vm5 = vweird.f32 %v1531_v14 }
 0x187   :  { %1532 = vrsqrt.f32 %v1006_v15  ;;  %vm1037_vm7 = vmor %vm1035_vm6, %vm1036_vm5  ;;  %vm1025_vm9 = vweird.f32 %v1006_v15 }
 0x188   :  { %v1018_v18 = vsel %vm1017_vm4, %v1529_v2, %v1014_v16  ;;  %v1031_v19 = vmul.f32 %v1531_v14, %v1030_v17  ;;  %v988_v20 = vld [vmem:[#allocation3 + $0x18] sm:$0xff] }
 0x189   :  { %1049 = vst.msk [vmem:[%s1969_s5] sm:$0xff] %vm21_vm1, %v1018_v18  ;;  %v992_v22 = vmul.f32 0.0625, %v988_v20 }
 0x18a   :  { %v1032_v23 = vmul.f32 0.5, %v1031_v19 }
 0x18b   :  { %v1000_v24 = vsub.f32 %v992_v22, %v996_v21 }
 0x18c   :  { %v1033_v25 = vsub.f32 1.5, %v1032_v23 }
 0x18d   :  { %v1533_v26 = vpop.eup %1532  ;;  %v1008_v27 = vadd.f32 1e-05, %v1000_v24 }
 0x18e   :  { %v1034_v28 = vmul.f32 %v1531_v14, %v1033_v25  ;;  %v1020_v29 = vmul.f32 %v1533_v26, %v1006_v15  ;;  %vm1026_vm8 = vweird.f32 %v1533_v26 }
 0x18f   :  { %1534 = vrsqrt.f32 %v1008_v27  ;;  %vm1027_vm10 = vmor %vm1025_vm9, %vm1026_vm8  ;;  %vm1045_vm12 = vweird.f32 %v1008_v27 }
 0x190   :  { %v1038_v30 = vsel %vm1037_vm7, %v1531_v14, %v1034_v28  ;;  %v1021_v31 = vmul.f32 %v1533_v26, %v1020_v29 }
 0x191   :  { %1051 = vst.msk [vmem:[%s1969_s5 + $0x10] sm:$0xff] %vm21_vm1, %v1038_v30 }
 0x192   :  { %v1022_v32 = vmul.f32 0.5, %v1021_v31 }
 0x194   :  { %v1023_v33 = vsub.f32 1.5, %v1022_v32 }
 0x195   :  { %v1535_v34 = vpop.eup %1534 }
 0x196   :  { %v1024_v35 = vmul.f32 %v1533_v26, %v1023_v33  ;;  %v1040_v36 = vmul.f32 %v1535_v34, %v1008_v27  ;;  %vm1046_vm11 = vweird.f32 %v1535_v34 }
 0x197   :  { %vm1047_vm13 = vmor %vm1045_vm12, %vm1046_vm11 }
 0x198   :  { %v1028_v37 = vsel %vm1027_vm10, %v1533_v26, %v1024_v35  ;;  %v1041_v38 = vmul.f32 %v1535_v34, %v1040_v36 }
 0x199   :  { %1050 = vst.msk [vmem:[%s1969_s5 + $0x8] sm:$0xff] %vm21_vm1, %v1028_v37 }
 0x19a   :  { %v1042_v39 = vmul.f32 0.5, %v1041_v38 }
 0x19c   :  { %v1043_v40 = vsub.f32 1.5, %v1042_v39 }
 0x19e   :  { %v1044_v41 = vmul.f32 %v1535_v34, %v1043_v40 }
 0x1a0   :  { %v1048_v42 = vsel %vm1047_vm13, %v1535_v34, %v1044_v41 }
 0x1a1   :  { %1052 = vst.msk [vmem:[%s1969_s5 + $0x18] sm:$0xff] %vm21_vm1, %v1048_v42 }

// kernel: critic_forward.13
= control target key start
LH: loop header
LB: loop body
LE: loop exit
PB: predicated region body
PF: predicated region fallthrough
CT: control target
= control target key end

     0   :  { %vm131_vm0 = vcmask 1043456   ;;  %vm127_vm1 = vcmask 31744   ;;  %s391_s1 = inlined_call_operand.vmem [shape: f32[256,128], index: 1, kind: input, shape index: {}]   ;;  %s392_s0 = inlined_call_operand.vmem [shape: f32[2,256], index: 0, kind: input, shape index: {}]   ;;  %s393_s4 = inlined_call_operand.vmem [shape: f32[128,128], index: 4, kind: input, shape index: {}]   ;;  %s394_s2 = inlined_call_operand.vmem [shape: f32[1,128], index: 2, kind: input, shape index: {}]   ;;  %s395_s5 = inlined_call_operand.vmem [shape: f32[4,128], index: 5, kind: input, shape index: {}]   ;;  %s396_s3 = inlined_call_operand.vmem [shape: f32[2,4], index: 3, kind: input, shape index: {}]   ;;  %s397_s6 = inlined_call_operand.vmem [shape: f32[1,128], index: 6, kind: input, shape index: {}]   ;;  %s398_s7 = inlined_call_operand.vmem [shape: f32[2,128], index: 7, kind: output, shape index: {}]  }
   0x1   :  { %v42_v0 = vld [vmem:[%s391_s1 + $0x78] sm:$0xff]  ;;  %v41_v1 = vld [vmem:[%s391_s1 + $0x70] sm:$0xff]  ;;  %v40_v4 = vld [vmem:[%s391_s1 + $0x68] sm:$0xff] }
   0x2   :  { %v58_v2 = vld [vmem:[%s391_s1 + $0xf8] sm:$0xff]  ;;  %69 = vmatpush.msra.mxu0 %v42_v0  ;;  %v57_v3 = vld [vmem:[%s391_s1 + $0xf0] sm:$0xff]  ;;  %v56_v5 = vld [vmem:[%s391_s1 + $0xe8] sm:$0xff] }
   0x3   :  { %89 = vmatpush.msra.mxu1 %v58_v2  ;;  %v39_v6 = vld [vmem:[%s391_s1 + $0x60] sm:$0xff]  ;;  %v38_v8 = vld [vmem:[%s391_s1 + $0x58] sm:$0xff]  ;;  %v37_v10 = vld [vmem:[%s391_s1 + $0x50] sm:$0xff] }
   0x4   :  { %70 = vmatpush.msra.mxu0 %v41_v1  ;;  %v55_v7 = vld [vmem:[%s391_s1 + $0xe0] sm:$0xff]  ;;  %v54_v9 = vld [vmem:[%s391_s1 + $0xd8] sm:$0xff]  ;;  %v53_v11 = vld [vmem:[%s391_s1 + $0xd0] sm:$0xff] }
   0x5   :  { %90 = vmatpush.msra.mxu1 %v57_v3  ;;  %v36_v12 = vld [vmem:[%s391_s1 + $0x48] sm:$0xff]  ;;  %v26_v14 = vld [vmem:[%s392_s0] sm:$0xf]  ;;  %v124_v15 = vld [vmem:[%s393_s4 + $0x78] sm:$0xff] }
   0x6   :  { %71 = vmatpush.msra.mxu0 %v40_v4  ;;  %v52_v13 = vld [vmem:[%s391_s1 + $0xc8] sm:$0xff]  ;;  %64 = vst [vmem:[#allocation1] ss:$4 sm:$0xff] %v26_v14  ;;  %v123_v16 = vld [vmem:[%s393_s4 + $0x70] sm:$0xff]  ;;  %v35_v17 = vld [vmem:[%s391_s1 + $0x40] sm:$0xff]  ;;  %155 = vmatpush.msra.mxu3 %v124_v15 }
   0x7   :  { %91 = vmatpush.msra.mxu1 %v56_v5  ;;  %v51_v18 = vld [vmem:[%s391_s1 + $0xc0] sm:$0xff]  ;;  %v122_v19 = vld [vmem:[%s393_s4 + $0x68] sm:$0xff]  ;;  %v34_v20 = vld [vmem:[%s391_s1 + $0x38] sm:$0xff] }
   0x8   :  { %72 = vmatpush.msra.mxu0 %v39_v6  ;;  %v50_v21 = vld [vmem:[%s391_s1 + $0xb8] sm:$0xff]  ;;  %156 = vmatpush.msra.mxu3 %v123_v16  ;;  %v121_v22 = vld [vmem:[%s393_s4 + $0x60] sm:$0xff]  ;;  %v33_v23 = vld [vmem:[%s391_s1 + $0x30] sm:$0xff] }
   0x9   :  { %92 = vmatpush.msra.mxu1 %v55_v7  ;;  %v49_v24 = vld [vmem:[%s391_s1 + $0xb0] sm:$0xff]  ;;  %v120_v25 = vld [vmem:[%s393_s4 + $0x58] sm:$0xff]  ;;  %v32_v26 = vld [vmem:[%s391_s1 + $0x28] sm:$0xff] }
   0xa   :  { %73 = vmatpush.msra.mxu0 %v38_v8  ;;  %157 = vmatpush.msra.mxu3 %v122_v19  ;;  %v48_v27 = vld [vmem:[%s391_s1 + $0xa8] sm:$0xff]  ;;  %v119_v28 = vld [vmem:[%s393_s4 + $0x50] sm:$0xff]  ;;  %v31_v29 = vld [vmem:[%s391_s1 + $0x20] sm:$0xff] }
   0xb   :  { %93 = vmatpush.msra.mxu1 %v54_v9  ;;  %v47_v30 = vld [vmem:[%s391_s1 + $0xa0] sm:$0xff]  ;;  %v118_v31 = vld [vmem:[%s393_s4 + $0x48] sm:$0xff]  ;;  %v30_v32 = vld [vmem:[%s391_s1 + $0x18] sm:$0xff] }
   0xc   :  { %74 = vmatpush.msra.mxu0 %v37_v10  ;;  %158 = vmatpush.msra.mxu3 %v121_v22  ;;  %v46_v33 = vld [vmem:[%s391_s1 + $0x98] sm:$0xff]  ;;  %v117_v34 = vld [vmem:[%s393_s4 + $0x40] sm:$0xff]  ;;  %v29_v35 = vld [vmem:[%s391_s1 + $0x10] sm:$0xff] }
   0xd   :  { %94 = vmatpush.msra.mxu1 %v53_v11  ;;  %v45_v36 = vld [vmem:[%s391_s1 + $0x90] sm:$0xff]  ;;  %v116_v37 = vld [vmem:[%s393_s4 + $0x38] sm:$0xff]  ;;  %v28_v38 = vld [vmem:[%s391_s1 + $0x8] sm:$0xff] }
   0xe   :  { %75 = vmatpush.msra.mxu0 %v36_v12  ;;  %159 = vmatpush.msra.mxu3 %v120_v25  ;;  %v44_v39 = vld [vmem:[%s391_s1 + $0x88] sm:$0xff]  ;;  %v115_v40 = vld [vmem:[%s393_s4 + $0x30] sm:$0xff]  ;;  %v27_v41 = vld [vmem:[%s391_s1] sm:$0xff] }
   0xf   :  { %95 = vmatpush.msra.mxu1 %v52_v13  ;;  %v43_v42 = vld [vmem:[%s391_s1 + $0x80] sm:$0xff]  ;;  %v66_v44 = vld.sshfl [vmem:[#allocation1 + $0x8] sm:$0xff pattern:$0x73625140]  ;;  %v112_v47 = vld [vmem:[%s393_s4 + $0x18] sm:$0xff] }
  0x10   :  { %76 = vmatpush.msra.mxu0 %v35_v17  ;;  %160 = vmatpush.msra.mxu3 %v119_v28  ;;  %v65_v43 = vld.sshfl [vmem:[#allocation1] sm:$0xff pattern:$0x73625140]  ;;  %v114_v45 = vld [vmem:[%s393_s4 + $0x28] sm:$0xff]  ;;  %v111_v48 = vld [vmem:[%s393_s4 + $0x10] sm:$0xff] }
  0x11   :  { %96 = vmatpush.msra.mxu1 %v51_v18  ;;  %v113_v46 = vld [vmem:[%s393_s4 + $0x20] sm:$0xff]  ;;  %v110_v49 = vld [vmem:[%s393_s4 + $0x8] sm:$0xff] }
  0x12   :  { %77 = vmatpush.msra.mxu0 %v34_v20  ;;  %161 = vmatpush.msra.mxu3 %v118_v31  ;;  %v126_v50 = vld [vmem:[%s395_s5] sm:$0xf] }
  0x13   :  { %97 = vmatpush.msra.mxu1 %v50_v21  ;;  %v109_v51 = vld [vmem:[%s393_s4] sm:$0xff]  ;;  %185 = vmatpush.msk.msra.mxu2 %vm131_vm0, %v126_v50 }
  0x14   :  { %78 = vmatpush.msra.mxu0 %v33_v23  ;;  %162 = vmatpush.msra.mxu3 %v117_v34  ;;  %v125_v52 = vld [vmem:[%s396_s3] sm:$0x3] }
  0x15   :  { %98 = vmatpush.msra.mxu1 %v49_v24  ;;  %186 = vmatmul.msk.f32.vlgmr.msra.gmra.mxu2 %vm127_vm1, %v125_v52  ;;  %v187_v53 = vld [vmem:[%s394_s2] ss:$0 sm:$0xff] }
  0x16   :  { %79 = vmatpush.msra.mxu0 %v32_v26  ;;  %163 = vmatpush.msra.mxu3 %v116_v37  ;;  %v188_v59 = vld [vmem:[%s397_s6] ss:$0 sm:$0xff] }
  0x17   :  { %99 = vmatpush.msra.mxu1 %v48_v27 }
  0x18   :  { %80 = vmatpush.msra.mxu0 %v31_v29  ;;  %164 = vmatpush.msra.mxu3 %v115_v40 }
  0x19   :  { %100 = vmatpush.msra.mxu1 %v47_v30 }
  0x1a   :  { %81 = vmatpush.msra.mxu0 %v30_v32  ;;  %165 = vmatpush.msra.mxu3 %v114_v45 }
  0x1b   :  { %101 = vmatpush.msra.mxu1 %v46_v33 }
  0x1c   :  { %82 = vmatpush.msra.mxu0 %v29_v35  ;;  %166 = vmatpush.msra.mxu3 %v113_v46 }
  0x1d   :  { %102 = vmatpush.msra.mxu1 %v45_v36 }
  0x1e   :  { %83 = vmatpush.msra.mxu0 %v28_v38  ;;  %167 = vmatpush.msra.mxu3 %v112_v47 }
  0x1f   :  { %103 = vmatpush.msra.mxu1 %v44_v39 }
  0x20   :  { %84 = vmatpush.msra.mxu0 %v27_v41  ;;  %168 = vmatpush.msra.mxu3 %v111_v48 }
  0x21   :  { %104 = vmatpush.msra.mxu1 %v43_v42  ;;  %85 = vmatmul.f32.vlgmr.msra.gmra.mxu0 %v65_v43 }
  0x22   :  { %105 = vmatmul.f32.vlgmr.msra.gmra.mxu1 %v66_v44  ;;  %169 = vmatpush.msra.mxu3 %v110_v49 }
  0x24   :  { %170 = vmatpush.msra.mxu3 %v109_v51 }
  0x98   :  { %v152_v58 = vpop.f32.mrf.mxu2 }
  0x9e   :  { %v86_v54 = vpop.f32.mrf.mxu0 }
  0x9f   :  { %v106_v55 = vpop.f32.mrf.mxu1  ;;  %v87_v56 = vadd.f32 %v187_v53, %v86_v54 }
  0xa1   :  { %v107_v57 = vadd.f32 %v106_v55, %v87_v56 }
  0xa3   :  { %171 = vmatmul.f32.vlgmr.msra.gmra.mxu3 %v107_v57 }
 0x126   :  { %v172_v60 = vpop.f32.mrf.mxu3 }
 0x127   :  { %v173_v61 = vadd.f32 %v172_v60, %v152_v58 }
 0x129   :  { %v179_v62 = vadd.f32 %v188_v59, %v173_v61 }
 0x12b   :  { %180 = vst [vmem:[%s398_s7] sm:$0x3] %v179_v62 }

</bundles_post_ra>
